<compile_context>
chip_gen: v7x
topology: tpu7x:2x2x1
jax: 0.10.0
libtpu: 0.0.40
codegen_flags: <defaults>
</compile_context>

<pallas_src>
import jax
import jax.numpy as jnp
from jax.experimental import pallas as pl
from jax.experimental.pallas import tpu as pltpu

# Exact f32 matmuls everywhere (reference convs/einsums and in-kernel MXU dots).
jax.config.update("jax_default_matmul_precision", "highest")

EPS = 1e-5        # PyTorch BatchNorm2d default eps
NC_PAD = 128      # lane-dense padded class dimension


def _kernel(x_ref, wc1_ref, bc1_ref, wc2_ref, bc2_ref, wc3_ref, bc3_ref,
            wq_ref, bq_ref, wk_ref, bk_ref, wv_ref, bv_ref,
            wf1_ref, bf1_ref, wf2_ref, bf2_ref,
            out_ref, h1p_ref, h2p_ref):
    f32 = jnp.float32
    Wp = x_ref.shape[1]          # padded input width (W + 2)
    W = Wp - 2
    W1, W2, W3 = W - 1, W - 2, W - 3
    T = W3 // 2                  # attention sequence length after the (1,2) max-pool

    # ---- conv1 (4x4, width pad 1) + folded BN1 + ReLU: 4 shifted MXU matmuls ----
    acc = jnp.dot(x_ref[0, 0:W1, :], wc1_ref[0:4, :], preferred_element_type=f32)
    for k in range(1, 4):
        acc = acc + jnp.dot(x_ref[0, k:k + W1, :], wc1_ref[4 * k:4 * k + 4, :],
                            preferred_element_type=f32)
    h1 = jnp.maximum(acc + bc1_ref[...], 0.0)                      # (W1, 8)

    # zero-padded staging (width pad 1) for conv2
    h1p_ref[...] = jnp.zeros_like(h1p_ref)
    h1p_ref[1:W1 + 1, :] = h1

    # ---- conv2 (1x4, width pad 1) + folded BN2 + ReLU ----
    acc = jnp.dot(h1p_ref[0:W2, :], wc2_ref[0:8, :], preferred_element_type=f32)
    for k in range(1, 4):
        acc = acc + jnp.dot(h1p_ref[k:k + W2, :], wc2_ref[8 * k:8 * k + 8, :],
                            preferred_element_type=f32)
    h2 = jnp.maximum(acc + bc2_ref[...], 0.0)                      # (W2, 16)

    h2p_ref[...] = jnp.zeros_like(h2p_ref)
    h2p_ref[1:W2 + 1, :] = h2

    # ---- conv3 (1x4, width pad 1) + folded BN3 + ReLU ----
    acc = jnp.dot(h2p_ref[0:W3, :], wc3_ref[0:16, :], preferred_element_type=f32)
    for k in range(1, 4):
        acc = acc + jnp.dot(h2p_ref[k:k + W3, :], wc3_ref[16 * k:16 * k + 16, :],
                            preferred_element_type=f32)
    h3 = jnp.maximum(acc + bc3_ref[...], 0.0)                      # (W3, 32)

    # ---- MaxPool2d((1,2)): even/odd row selection via one-hot matmuls + max ----
    rows = jax.lax.broadcasted_iota(jnp.int32, (T, W3), 0)
    cols = jax.lax.broadcasted_iota(jnp.int32, (T, W3), 1)
    sel_even = (cols == 2 * rows).astype(f32)
    sel_odd = (cols == 2 * rows + 1).astype(f32)
    pooled = jnp.maximum(
        jnp.dot(sel_even, h3, preferred_element_type=f32),
        jnp.dot(sel_odd, h3, preferred_element_type=f32))          # (T, 32)
    # TODO(synk): nn.Dropout(p=0.5) is treated as identity (eval/inference mode).

    # ---- single-head self-attention over the T width tokens (feature 32) ----
    q = jnp.dot(pooled, wq_ref[...], preferred_element_type=f32) + bq_ref[...]
    kmat = jnp.dot(pooled, wk_ref[...], preferred_element_type=f32) + bk_ref[...]
    v = jnp.dot(pooled, wv_ref[...], preferred_element_type=f32) + bv_ref[...]
    scores = jax.lax.dot_general(q, kmat, (((1,), (1,)), ((), ())),
                                 preferred_element_type=f32)       # (T, T)
    scores = scores * (1.0 / float(q.shape[-1]) ** 0.5)
    m = jnp.max(scores, axis=-1, keepdims=True)
    e = jnp.exp(scores - m)
    attn = e / jnp.sum(e, axis=-1, keepdims=True)
    ctx = jnp.dot(attn, v, preferred_element_type=f32)             # (T, 32)

    # ---- mean over tokens -> fc1 -> ReLU -> fc2 (lane-dense, padded to 128) ----
    feat = jnp.sum(ctx, axis=0, keepdims=True) * (1.0 / T)         # (1, 32)
    hidden = jnp.maximum(
        jnp.dot(feat, wf1_ref[...], preferred_element_type=f32) + bf1_ref[...], 0.0)
    out_ref[0] = (jnp.dot(hidden, wf2_ref[...], preferred_element_type=f32)
                  + bf2_ref[...])                                  # (1, NC_PAD)


def _fold_bn(w, b, gamma, beta, mean, var):
    """Fold eval-mode BatchNorm into the preceding conv's weight/bias."""
    s = gamma / jnp.sqrt(var + EPS)
    return w * s[:, None, None, None], b * s + (beta - mean * s)


def twod_conv_attention(x, params):
    """x: (B, 1, 4, W) float32 (conv1's 4-tall kernel consumes the height). Returns (B, nc)."""
    p = params
    f32 = jnp.float32
    B, W = x.shape[0], x.shape[-1]
    Wp, W1, W2, W3 = W + 2, W - 1, W - 2, W - 3
    T = W3 // 2
    fdim = p["wf1"].shape[0]          # feature_size (64)
    nc = p["wf2"].shape[0]            # num_classes

    # ---- glue: stage input as (B, W+2, 4) — width on sublanes (zero-padded), height on lanes
    x_stage = jnp.transpose(x[:, 0].astype(f32), (0, 2, 1))
    x_stage = jnp.pad(x_stage, ((0, 0), (1, 1), (0, 0)))

    # ---- fold BN into conv weights; lay conv weights out as (4*Cin_or_H, Cout), taps stacked
    c1w, c1b = _fold_bn(p["c1w"], p["c1b"], p["g1"], p["be1"], p["m1"], p["v1"])
    c2w, c2b = _fold_bn(p["c2w"], p["c2b"], p["g2"], p["be2"], p["m2"], p["v2"])
    c3w, c3b = _fold_bn(p["c3w"], p["c3b"], p["g3"], p["be3"], p["m3"], p["v3"])
    wc1 = jnp.transpose(c1w[:, 0], (2, 1, 0)).reshape(16, 8).astype(f32)         # [k*4+h,  cout]
    wc2 = jnp.transpose(c2w[:, :, 0, :], (2, 1, 0)).reshape(32, 16).astype(f32)  # [k*8+cin, cout]
    wc3 = jnp.transpose(c3w[:, :, 0, :], (2, 1, 0)).reshape(64, 32).astype(f32)  # [k*16+cin,cout]
    bc1 = c1b.reshape(1, 8).astype(f32)
    bc2 = c2b.reshape(1, 16).astype(f32)
    bc3 = c3b.reshape(1, 32).astype(f32)

    # attention / FC weights stored (in, out); fc2 zero-padded to 128 output lanes
    wq, bq = p["wq"].T.astype(f32), p["bq"].reshape(1, 32).astype(f32)
    wk, bk = p["wk"].T.astype(f32), p["bk"].reshape(1, 32).astype(f32)
    wv, bv = p["wv"].T.astype(f32), p["bv"].reshape(1, 32).astype(f32)
    wf1, bf1 = p["wf1"].T.astype(f32), p["bf1"].reshape(1, fdim).astype(f32)
    wf2 = jnp.zeros((fdim, NC_PAD), f32).at[:, :nc].set(p["wf2"].T.astype(f32))
    bf2 = jnp.zeros((1, NC_PAD), f32).at[:, :nc].set(p["bf2"].reshape(1, nc).astype(f32))

    def full(shape):
        return pl.BlockSpec(shape, lambda b, _s=shape: (0,) * len(_s))

    flops = 2 * B * (W1 * 16 * 8 + W2 * 32 * 16 + W3 * 64 * 32 + 2 * T * W3 * 32
                     + 3 * T * 32 * 32 + 2 * T * T * 32 + 32 * fdim + fdim * NC_PAD)
    param_elems = (wc1.size + bc1.size + wc2.size + bc2.size + wc3.size + bc3.size
                   + wq.size + bq.size + wk.size + bk.size + wv.size + bv.size
                   + wf1.size + bf1.size + wf2.size + bf2.size)
    bytes_acc = 4 * (x_stage.size + param_elems + B * NC_PAD)

    out = pl.pallas_call(
        _kernel,
        grid=(B,),
        in_specs=[
            pl.BlockSpec((1, Wp, 4), lambda b: (b, 0, 0)),
            full((16, 8)), full((1, 8)),
            full((32, 16)), full((1, 16)),
            full((64, 32)), full((1, 32)),
            full((32, 32)), full((1, 32)),
            full((32, 32)), full((1, 32)),
            full((32, 32)), full((1, 32)),
            full((32, fdim)), full((1, fdim)),
            full((fdim, NC_PAD)), full((1, NC_PAD)),
        ],
        out_specs=pl.BlockSpec((1, 1, NC_PAD), lambda b: (b, 0, 0)),
        out_shape=jax.ShapeDtypeStruct((B, 1, NC_PAD), f32),
        scratch_shapes=[
            pltpu.VMEM((W1 + 2, 8), f32),    # width-padded conv1 activations
            pltpu.VMEM((W2 + 2, 16), f32),   # width-padded conv2 activations
        ],
        compiler_params=pltpu.CompilerParams(
            dimension_semantics=("parallel",),
            vmem_limit_bytes=32 * 1024 * 1024),
        cost_estimate=pl.CostEstimate(flops=flops, transcendentals=B * T * T,
                                      bytes_accessed=bytes_acc),
    )(x_stage, wc1, bc1, wc2, bc2, wc3, bc3,
      wq, bq, wk, bk, wv, bv, wf1, bf1, wf2, bf2)

    return out.reshape(B, NC_PAD)[:, :nc]


def reference(x, params):
    """Pure-JAX eval-mode forward that mirrors the PyTorch module exactly."""
    p = params
    hi = jax.lax.Precision.HIGHEST

    def block(h, w, b, g, beta, mean, var):
        out = jax.lax.conv_general_dilated(
            h, w, window_strides=(1, 1), padding=((0, 0), (1, 1)),
            dimension_numbers=("NCHW", "OIHW", "NCHW"), precision=hi)
        out = out + b[None, :, None, None]
        s = g / jnp.sqrt(var + EPS)
        out = out * s[None, :, None, None] + (beta - mean * s)[None, :, None, None]
        return jnp.maximum(out, 0.0)

    h = block(x, p["c1w"], p["c1b"], p["g1"], p["be1"], p["m1"], p["v1"])
    h = block(h, p["c2w"], p["c2b"], p["g2"], p["be2"], p["m2"], p["v2"])
    h = block(h, p["c3w"], p["c3b"], p["g3"], p["be3"], p["m3"], p["v3"])
    B, C, _, W3 = h.shape
    T = W3 // 2
    h = jnp.max(h[..., :2 * T].reshape(B, C, 1, T, 2), axis=-1)        # MaxPool2d((1,2))
    seq = jnp.transpose(h[:, :, 0, :], (0, 2, 1))                      # (B, T, 32)
    q = jnp.einsum("btc,dc->btd", seq, p["wq"], precision=hi) + p["bq"]
    k = jnp.einsum("btc,dc->btd", seq, p["wk"], precision=hi) + p["bk"]
    v = jnp.einsum("btc,dc->btd", seq, p["wv"], precision=hi) + p["bv"]
    scores = jnp.einsum("btd,bsd->bts", q, k, precision=hi) / float(C) ** 0.5
    attn = jax.nn.softmax(scores, axis=-1)
    ctx = jnp.einsum("bts,bsd->btd", attn, v, precision=hi)
    feat = jnp.mean(ctx, axis=1)
    hidden = jnp.maximum(
        jnp.einsum("bc,dc->bd", feat, p["wf1"], precision=hi) + p["bf1"], 0.0)
    return jnp.einsum("bd,cd->bc", hidden, p["wf2"], precision=hi) + p["bf2"]


if __name__ == "__main__":
    B, W, NUM_CLASSES, FEATURE_SIZE = 2, 19, 2, 64   # (B,1,4,19) -> T = 8 attention tokens

    key = jax.random.PRNGKey(0)
    ks = jax.random.split(key, 32)
    it = iter(range(32))

    def rnd(shape, scale=1.0):
        return scale * jax.random.normal(ks[next(it)], shape, jnp.float32)

    params = {
        "c1w": rnd((8, 1, 4, 4), 0.25), "c1b": rnd((8,), 0.1),
        "g1": 1.0 + rnd((8,), 0.1), "be1": rnd((8,), 0.1),
        "m1": rnd((8,), 0.1), "v1": 0.5 + jax.nn.sigmoid(rnd((8,))),
        "c2w": rnd((16, 8, 1, 4), 0.18), "c2b": rnd((16,), 0.1),
        "g2": 1.0 + rnd((16,), 0.1), "be2": rnd((16,), 0.1),
        "m2": rnd((16,), 0.1), "v2": 0.5 + jax.nn.sigmoid(rnd((16,))),
        "c3w": rnd((32, 16, 1, 4), 0.125), "c3b": rnd((32,), 0.1),
        "g3": 1.0 + rnd((32,), 0.1), "be3": rnd((32,), 0.1),
        "m3": rnd((32,), 0.1), "v3": 0.5 + jax.nn.sigmoid(rnd((32,))),
        "wq": rnd((32, 32), 0.18), "bq": rnd((32,), 0.1),
        "wk": rnd((32, 32), 0.18), "bk": rnd((32,), 0.1),
        "wv": rnd((32, 32), 0.18), "bv": rnd((32,), 0.1),
        "wf1": rnd((FEATURE_SIZE, 32), 0.18), "bf1": rnd((FEATURE_SIZE,), 0.1),
        "wf2": rnd((NUM_CLASSES, FEATURE_SIZE), 0.125), "bf2": rnd((NUM_CLASSES,), 0.1),
    }
    x = jax.random.normal(ks[next(it)], (B, 1, 4, W), jnp.float32)

    out = twod_conv_attention(x, params)
    out = jax.block_until_ready(out)

    ref = reference(x, params)
    assert out.shape == (B, NUM_CLASSES), out.shape
    if not bool(jnp.allclose(out, ref, rtol=2e-3, atol=2e-3)):
        raise AssertionError(
            f"mismatch: max|diff|={float(jnp.max(jnp.abs(out - ref)))}\n"
            f"kernel={out}\nref={ref}")
    print("KERNEL_OK")
</pallas_src>

<mosaic_0001>
module attributes {stable_mosaic.version = 11 : i64} {
  func.func @_kernel(%arg0: i32, %arg1: memref<1x21x4xf32, #tpu.memory_space<vmem>>, %arg2: memref<16x8xf32, #tpu.memory_space<vmem>>, %arg3: memref<1x8xf32, #tpu.memory_space<vmem>>, %arg4: memref<32x16xf32, #tpu.memory_space<vmem>>, %arg5: memref<1x16xf32, #tpu.memory_space<vmem>>, %arg6: memref<64x32xf32, #tpu.memory_space<vmem>>, %arg7: memref<1x32xf32, #tpu.memory_space<vmem>>, %arg8: memref<32x32xf32, #tpu.memory_space<vmem>>, %arg9: memref<1x32xf32, #tpu.memory_space<vmem>>, %arg10: memref<32x32xf32, #tpu.memory_space<vmem>>, %arg11: memref<1x32xf32, #tpu.memory_space<vmem>>, %arg12: memref<32x32xf32, #tpu.memory_space<vmem>>, %arg13: memref<1x32xf32, #tpu.memory_space<vmem>>, %arg14: memref<32x64xf32, #tpu.memory_space<vmem>>, %arg15: memref<1x64xf32, #tpu.memory_space<vmem>>, %arg16: memref<64x128xf32, #tpu.memory_space<vmem>>, %arg17: memref<1x128xf32, #tpu.memory_space<vmem>>, %arg18: memref<1x1x128xf32, #tpu.memory_space<vmem>>, %arg19: memref<20x8xf32, #tpu.memory_space<vmem>>, %arg20: memref<19x16xf32, #tpu.memory_space<vmem>>) attributes {dimension_semantics = [#tpu.dimension_semantics<parallel>], iteration_bounds = array<i64: 2>, scalar_prefetch = 0 : i64, scratch_operands = 2 : i64, tpu.core_type = #tpu.core_type<tc>, window_params = [{transform_indices = @transform_0, window_bounds = array<i64: 1, 21, 4>}, {pipeline_mode = #tpu.pipeline_mode<synchronous>, transform_indices = @transform_1, window_bounds = array<i64: 16, 8>}, {pipeline_mode = #tpu.pipeline_mode<synchronous>, transform_indices = @transform_2, window_bounds = array<i64: 1, 8>}, {pipeline_mode = #tpu.pipeline_mode<synchronous>, transform_indices = @transform_3, window_bounds = array<i64: 32, 16>}, {pipeline_mode = #tpu.pipeline_mode<synchronous>, transform_indices = @transform_4, window_bounds = array<i64: 1, 16>}, {pipeline_mode = #tpu.pipeline_mode<synchronous>, transform_indices = @transform_5, window_bounds = array<i64: 64, 32>}, {pipeline_mode = #tpu.pipeline_mode<synchronous>, transform_indices = @transform_6, window_bounds = array<i64: 1, 32>}, {pipeline_mode = #tpu.pipeline_mode<synchronous>, transform_indices = @transform_7, window_bounds = array<i64: 32, 32>}, {pipeline_mode = #tpu.pipeline_mode<synchronous>, transform_indices = @transform_8, window_bounds = array<i64: 1, 32>}, {pipeline_mode = #tpu.pipeline_mode<synchronous>, transform_indices = @transform_9, window_bounds = array<i64: 32, 32>}, {pipeline_mode = #tpu.pipeline_mode<synchronous>, transform_indices = @transform_10, window_bounds = array<i64: 1, 32>}, {pipeline_mode = #tpu.pipeline_mode<synchronous>, transform_indices = @transform_11, window_bounds = array<i64: 32, 32>}, {pipeline_mode = #tpu.pipeline_mode<synchronous>, transform_indices = @transform_12, window_bounds = array<i64: 1, 32>}, {pipeline_mode = #tpu.pipeline_mode<synchronous>, transform_indices = @transform_13, window_bounds = array<i64: 32, 64>}, {pipeline_mode = #tpu.pipeline_mode<synchronous>, transform_indices = @transform_14, window_bounds = array<i64: 1, 64>}, {pipeline_mode = #tpu.pipeline_mode<synchronous>, transform_indices = @transform_15, window_bounds = array<i64: 64, 128>}, {pipeline_mode = #tpu.pipeline_mode<synchronous>, transform_indices = @transform_16, window_bounds = array<i64: 1, 128>}, {transform_indices = @transform_17, window_bounds = array<i64: 1, 1, 128>}]} {
    %c0 = arith.constant 0 : index
    %c0_0 = arith.constant 0 : index
    %c0_1 = arith.constant 0 : index
    %0 = vector.load %arg1[%c0, %c0_0, %c0_1] : memref<1x21x4xf32, #tpu.memory_space<vmem>>, vector<1x18x4xf32>
    %1 = vector.shape_cast %0 : vector<1x18x4xf32> to vector<18x4xf32>
    %c0_2 = arith.constant 0 : index
    %c0_3 = arith.constant 0 : index
    %2 = vector.load %arg2[%c0_2, %c0_3] : memref<16x8xf32, #tpu.memory_space<vmem>>, vector<4x8xf32>
    %cst = arith.constant dense<0.000000e+00> : vector<18x8xf32>
    %3 = tpu.matmul %1, %2, %cst {dimension_numbers = #tpu.dot_dimension_numbers<[1], [0], [0], [1], [0, 0, 1, 1], [], []>, precision = #tpu.contract_precision<fp32>} : vector<18x4xf32>, vector<4x8xf32>, vector<18x8xf32> -> vector<18x8xf32>
    %c0_4 = arith.constant 0 : index
    %c1 = arith.constant 1 : index
    %c0_5 = arith.constant 0 : index
    %4 = vector.load %arg1[%c0_4, %c1, %c0_5] : memref<1x21x4xf32, #tpu.memory_space<vmem>>, vector<1x18x4xf32>
    %5 = vector.shape_cast %4 : vector<1x18x4xf32> to vector<18x4xf32>
    %c4 = arith.constant 4 : index
    %c0_6 = arith.constant 0 : index
    %6 = vector.load %arg2[%c4, %c0_6] : memref<16x8xf32, #tpu.memory_space<vmem>>, vector<4x8xf32>
    %cst_7 = arith.constant dense<0.000000e+00> : vector<18x8xf32>
    %7 = tpu.matmul %5, %6, %cst_7 {dimension_numbers = #tpu.dot_dimension_numbers<[1], [0], [0], [1], [0, 0, 1, 1], [], []>, precision = #tpu.contract_precision<fp32>} : vector<18x4xf32>, vector<4x8xf32>, vector<18x8xf32> -> vector<18x8xf32>
    %8 = arith.addf %3, %7 : vector<18x8xf32>
    %c0_8 = arith.constant 0 : index
    %c2 = arith.constant 2 : index
    %c0_9 = arith.constant 0 : index
    %9 = vector.load %arg1[%c0_8, %c2, %c0_9] : memref<1x21x4xf32, #tpu.memory_space<vmem>>, vector<1x18x4xf32>
    %10 = vector.shape_cast %9 : vector<1x18x4xf32> to vector<18x4xf32>
    %c8 = arith.constant 8 : index
    %c0_10 = arith.constant 0 : index
    %11 = vector.load %arg2[%c8, %c0_10] : memref<16x8xf32, #tpu.memory_space<vmem>>, vector<4x8xf32>
    %cst_11 = arith.constant dense<0.000000e+00> : vector<18x8xf32>
    %12 = tpu.matmul %10, %11, %cst_11 {dimension_numbers = #tpu.dot_dimension_numbers<[1], [0], [0], [1], [0, 0, 1, 1], [], []>, precision = #tpu.contract_precision<fp32>} : vector<18x4xf32>, vector<4x8xf32>, vector<18x8xf32> -> vector<18x8xf32>
    %13 = arith.addf %8, %12 : vector<18x8xf32>
    %c0_12 = arith.constant 0 : index
    %c3 = arith.constant 3 : index
    %c0_13 = arith.constant 0 : index
    %14 = vector.load %arg1[%c0_12, %c3, %c0_13] : memref<1x21x4xf32, #tpu.memory_space<vmem>>, vector<1x18x4xf32>
    %15 = vector.shape_cast %14 : vector<1x18x4xf32> to vector<18x4xf32>
    %c12 = arith.constant 12 : index
    %c0_14 = arith.constant 0 : index
    %16 = vector.load %arg2[%c12, %c0_14] : memref<16x8xf32, #tpu.memory_space<vmem>>, vector<4x8xf32>
    %cst_15 = arith.constant dense<0.000000e+00> : vector<18x8xf32>
    %17 = tpu.matmul %15, %16, %cst_15 {dimension_numbers = #tpu.dot_dimension_numbers<[1], [0], [0], [1], [0, 0, 1, 1], [], []>, precision = #tpu.contract_precision<fp32>} : vector<18x4xf32>, vector<4x8xf32>, vector<18x8xf32> -> vector<18x8xf32>
    %18 = arith.addf %13, %17 : vector<18x8xf32>
    %c0_16 = arith.constant 0 : index
    %c0_17 = arith.constant 0 : index
    %19 = vector.load %arg3[%c0_16, %c0_17] : memref<1x8xf32, #tpu.memory_space<vmem>>, vector<1x8xf32>
    %20 = vector.broadcast %19 : vector<1x8xf32> to vector<18x8xf32>
    %21 = arith.addf %18, %20 : vector<18x8xf32>
    %cst_18 = arith.constant 0.000000e+00 : f32
    %22 = vector.broadcast %cst_18 : f32 to vector<18x8xf32>
    %23 = arith.maximumf %21, %22 : vector<18x8xf32>
    %cst_19 = arith.constant 0.000000e+00 : f32
    %24 = vector.broadcast %cst_19 : f32 to vector<20x8xf32>
    %c0_20 = arith.constant 0 : index
    %c0_21 = arith.constant 0 : index
    %25 = vector.load %arg19[%c0_20, %c0_21] : memref<20x8xf32, #tpu.memory_space<vmem>>, vector<20x8xf32>
    tpu.vector_store %arg19[%c0_20, %c0_21], %24 {strides = array<i32>} : memref<20x8xf32, #tpu.memory_space<vmem>>, vector<20x8xf32>,
    %c1_22 = arith.constant 1 : index
    %c0_23 = arith.constant 0 : index
    %26 = vector.load %arg19[%c1_22, %c0_23] : memref<20x8xf32, #tpu.memory_space<vmem>>, vector<18x8xf32>
    tpu.vector_store %arg19[%c1_22, %c0_23], %23 {strides = array<i32>} : memref<20x8xf32, #tpu.memory_space<vmem>>, vector<18x8xf32>,
    %c0_24 = arith.constant 0 : index
    %c0_25 = arith.constant 0 : index
    %27 = vector.load %arg19[%c0_24, %c0_25] : memref<20x8xf32, #tpu.memory_space<vmem>>, vector<17x8xf32>
    %c0_26 = arith.constant 0 : index
    %c0_27 = arith.constant 0 : index
    %28 = vector.load %arg4[%c0_26, %c0_27] : memref<32x16xf32, #tpu.memory_space<vmem>>, vector<8x16xf32>
    %cst_28 = arith.constant dense<0.000000e+00> : vector<17x16xf32>
    %29 = tpu.matmul %27, %28, %cst_28 {dimension_numbers = #tpu.dot_dimension_numbers<[1], [0], [0], [1], [0, 0, 1, 1], [], []>, precision = #tpu.contract_precision<fp32>} : vector<17x8xf32>, vector<8x16xf32>, vector<17x16xf32> -> vector<17x16xf32>
    %c1_29 = arith.constant 1 : index
    %c0_30 = arith.constant 0 : index
    %30 = vector.load %arg19[%c1_29, %c0_30] : memref<20x8xf32, #tpu.memory_space<vmem>>, vector<17x8xf32>
    %c8_31 = arith.constant 8 : index
    %c0_32 = arith.constant 0 : index
    %31 = vector.load %arg4[%c8_31, %c0_32] : memref<32x16xf32, #tpu.memory_space<vmem>>, vector<8x16xf32>
    %cst_33 = arith.constant dense<0.000000e+00> : vector<17x16xf32>
    %32 = tpu.matmul %30, %31, %cst_33 {dimension_numbers = #tpu.dot_dimension_numbers<[1], [0], [0], [1], [0, 0, 1, 1], [], []>, precision = #tpu.contract_precision<fp32>} : vector<17x8xf32>, vector<8x16xf32>, vector<17x16xf32> -> vector<17x16xf32>
    %33 = arith.addf %29, %32 : vector<17x16xf32>
    %c2_34 = arith.constant 2 : index
    %c0_35 = arith.constant 0 : index
    %34 = vector.load %arg19[%c2_34, %c0_35] : memref<20x8xf32, #tpu.memory_space<vmem>>, vector<17x8xf32>
    %c16 = arith.constant 16 : index
    %c0_36 = arith.constant 0 : index
    %35 = vector.load %arg4[%c16, %c0_36] : memref<32x16xf32, #tpu.memory_space<vmem>>, vector<8x16xf32>
    %cst_37 = arith.constant dense<0.000000e+00> : vector<17x16xf32>
    %36 = tpu.matmul %34, %35, %cst_37 {dimension_numbers = #tpu.dot_dimension_numbers<[1], [0], [0], [1], [0, 0, 1, 1], [], []>, precision = #tpu.contract_precision<fp32>} : vector<17x8xf32>, vector<8x16xf32>, vector<17x16xf32> -> vector<17x16xf32>
    %37 = arith.addf %33, %36 : vector<17x16xf32>
    %c3_38 = arith.constant 3 : index
    %c0_39 = arith.constant 0 : index
    %38 = vector.load %arg19[%c3_38, %c0_39] : memref<20x8xf32, #tpu.memory_space<vmem>>, vector<17x8xf32>
    %c24 = arith.constant 24 : index
    %c0_40 = arith.constant 0 : index
    %39 = vector.load %arg4[%c24, %c0_40] : memref<32x16xf32, #tpu.memory_space<vmem>>, vector<8x16xf32>
    %cst_41 = arith.constant dense<0.000000e+00> : vector<17x16xf32>
    %40 = tpu.matmul %38, %39, %cst_41 {dimension_numbers = #tpu.dot_dimension_numbers<[1], [0], [0], [1], [0, 0, 1, 1], [], []>, precision = #tpu.contract_precision<fp32>} : vector<17x8xf32>, vector<8x16xf32>, vector<17x16xf32> -> vector<17x16xf32>
    %41 = arith.addf %37, %40 : vector<17x16xf32>
    %c0_42 = arith.constant 0 : index
    %c0_43 = arith.constant 0 : index
    %42 = vector.load %arg5[%c0_42, %c0_43] : memref<1x16xf32, #tpu.memory_space<vmem>>, vector<1x16xf32>
    %43 = vector.broadcast %42 : vector<1x16xf32> to vector<17x16xf32>
    %44 = arith.addf %41, %43 : vector<17x16xf32>
    %cst_44 = arith.constant 0.000000e+00 : f32
    %45 = vector.broadcast %cst_44 : f32 to vector<17x16xf32>
    %46 = arith.maximumf %44, %45 : vector<17x16xf32>
    %cst_45 = arith.constant 0.000000e+00 : f32
    %47 = vector.broadcast %cst_45 : f32 to vector<19x16xf32>
    %c0_46 = arith.constant 0 : index
    %c0_47 = arith.constant 0 : index
    %48 = vector.load %arg20[%c0_46, %c0_47] : memref<19x16xf32, #tpu.memory_space<vmem>>, vector<19x16xf32>
    tpu.vector_store %arg20[%c0_46, %c0_47], %47 {strides = array<i32>} : memref<19x16xf32, #tpu.memory_space<vmem>>, vector<19x16xf32>,
    %c1_48 = arith.constant 1 : index
    %c0_49 = arith.constant 0 : index
    %49 = vector.load %arg20[%c1_48, %c0_49] : memref<19x16xf32, #tpu.memory_space<vmem>>, vector<17x16xf32>
    tpu.vector_store %arg20[%c1_48, %c0_49], %46 {strides = array<i32>} : memref<19x16xf32, #tpu.memory_space<vmem>>, vector<17x16xf32>,
    %c0_50 = arith.constant 0 : index
    %c0_51 = arith.constant 0 : index
    %50 = vector.load %arg20[%c0_50, %c0_51] : memref<19x16xf32, #tpu.memory_space<vmem>>, vector<16x16xf32>
    %c0_52 = arith.constant 0 : index
    %c0_53 = arith.constant 0 : index
    %51 = vector.load %arg6[%c0_52, %c0_53] : memref<64x32xf32, #tpu.memory_space<vmem>>, vector<16x32xf32>
    %cst_54 = arith.constant dense<0.000000e+00> : vector<16x32xf32>
    %52 = tpu.matmul %50, %51, %cst_54 {dimension_numbers = #tpu.dot_dimension_numbers<[1], [0], [0], [1], [0, 0, 1, 1], [], []>, precision = #tpu.contract_precision<fp32>} : vector<16x16xf32>, vector<16x32xf32>, vector<16x32xf32> -> vector<16x32xf32>
    %c1_55 = arith.constant 1 : index
    %c0_56 = arith.constant 0 : index
    %53 = vector.load %arg20[%c1_55, %c0_56] : memref<19x16xf32, #tpu.memory_space<vmem>>, vector<16x16xf32>
    %c16_57 = arith.constant 16 : index
    %c0_58 = arith.constant 0 : index
    %54 = vector.load %arg6[%c16_57, %c0_58] : memref<64x32xf32, #tpu.memory_space<vmem>>, vector<16x32xf32>
    %cst_59 = arith.constant dense<0.000000e+00> : vector<16x32xf32>
    %55 = tpu.matmul %53, %54, %cst_59 {dimension_numbers = #tpu.dot_dimension_numbers<[1], [0], [0], [1], [0, 0, 1, 1], [], []>, precision = #tpu.contract_precision<fp32>} : vector<16x16xf32>, vector<16x32xf32>, vector<16x32xf32> -> vector<16x32xf32>
    %56 = arith.addf %52, %55 : vector<16x32xf32>
    %c2_60 = arith.constant 2 : index
    %c0_61 = arith.constant 0 : index
    %57 = vector.load %arg20[%c2_60, %c0_61] : memref<19x16xf32, #tpu.memory_space<vmem>>, vector<16x16xf32>
    %c32 = arith.constant 32 : index
    %c0_62 = arith.constant 0 : index
    %58 = vector.load %arg6[%c32, %c0_62] : memref<64x32xf32, #tpu.memory_space<vmem>>, vector<16x32xf32>
    %cst_63 = arith.constant dense<0.000000e+00> : vector<16x32xf32>
    %59 = tpu.matmul %57, %58, %cst_63 {dimension_numbers = #tpu.dot_dimension_numbers<[1], [0], [0], [1], [0, 0, 1, 1], [], []>, precision = #tpu.contract_precision<fp32>} : vector<16x16xf32>, vector<16x32xf32>, vector<16x32xf32> -> vector<16x32xf32>
    %60 = arith.addf %56, %59 : vector<16x32xf32>
    %c3_64 = arith.constant 3 : index
    %c0_65 = arith.constant 0 : index
    %61 = vector.load %arg20[%c3_64, %c0_65] : memref<19x16xf32, #tpu.memory_space<vmem>>, vector<16x16xf32>
    %c48 = arith.constant 48 : index
    %c0_66 = arith.constant 0 : index
    %62 = vector.load %arg6[%c48, %c0_66] : memref<64x32xf32, #tpu.memory_space<vmem>>, vector<16x32xf32>
    %cst_67 = arith.constant dense<0.000000e+00> : vector<16x32xf32>
    %63 = tpu.matmul %61, %62, %cst_67 {dimension_numbers = #tpu.dot_dimension_numbers<[1], [0], [0], [1], [0, 0, 1, 1], [], []>, precision = #tpu.contract_precision<fp32>} : vector<16x16xf32>, vector<16x32xf32>, vector<16x32xf32> -> vector<16x32xf32>
    %64 = arith.addf %60, %63 : vector<16x32xf32>
    %c0_68 = arith.constant 0 : index
    %c0_69 = arith.constant 0 : index
    %65 = vector.load %arg7[%c0_68, %c0_69] : memref<1x32xf32, #tpu.memory_space<vmem>>, vector<1x32xf32>
    %66 = vector.broadcast %65 : vector<1x32xf32> to vector<16x32xf32>
    %67 = arith.addf %64, %66 : vector<16x32xf32>
    %cst_70 = arith.constant 0.000000e+00 : f32
    %68 = vector.broadcast %cst_70 : f32 to vector<16x32xf32>
    %69 = arith.maximumf %67, %68 : vector<16x32xf32>
    %70 = tpu.iota {dimensions = array<i32: 0>} : vector<8x16xi32>
    %71 = tpu.iota {dimensions = array<i32: 1>} : vector<8x16xi32>
    %c2_i32 = arith.constant 2 : i32
    %72 = vector.broadcast %c2_i32 : i32 to vector<8x16xi32>
    %73 = arith.muli %72, %70 : vector<8x16xi32>
    %74 = arith.cmpi eq, %71, %73 : vector<8x16xi32>
    %75 = arith.extui %74 : vector<8x16xi1> to vector<8x16xi32>
    %76 = arith.sitofp %75 : vector<8x16xi32> to vector<8x16xf32>
    %c2_i32_71 = arith.constant 2 : i32
    %77 = vector.broadcast %c2_i32_71 : i32 to vector<8x16xi32>
    %78 = arith.muli %77, %70 : vector<8x16xi32>
    %c1_i32 = arith.constant 1 : i32
    %79 = vector.broadcast %c1_i32 : i32 to vector<8x16xi32>
    %80 = arith.addi %78, %79 : vector<8x16xi32>
    %81 = arith.cmpi eq, %71, %80 : vector<8x16xi32>
    %82 = arith.extui %81 : vector<8x16xi1> to vector<8x16xi32>
    %83 = arith.sitofp %82 : vector<8x16xi32> to vector<8x16xf32>
    %cst_72 = arith.constant dense<0.000000e+00> : vector<8x32xf32>
    %84 = tpu.matmul %76, %69, %cst_72 {dimension_numbers = #tpu.dot_dimension_numbers<[1], [0], [0], [1], [0, 0, 1, 1], [], []>, precision = #tpu.contract_precision<fp32>} : vector<8x16xf32>, vector<16x32xf32>, vector<8x32xf32> -> vector<8x32xf32>
    %cst_73 = arith.constant dense<0.000000e+00> : vector<8x32xf32>
    %85 = tpu.matmul %83, %69, %cst_73 {dimension_numbers = #tpu.dot_dimension_numbers<[1], [0], [0], [1], [0, 0, 1, 1], [], []>, precision = #tpu.contract_precision<fp32>} : vector<8x16xf32>, vector<16x32xf32>, vector<8x32xf32> -> vector<8x32xf32>
    %86 = arith.maximumf %84, %85 : vector<8x32xf32>
    %c0_74 = arith.constant 0 : index
    %c0_75 = arith.constant 0 : index
    %87 = vector.load %arg8[%c0_74, %c0_75] : memref<32x32xf32, #tpu.memory_space<vmem>>, vector<32x32xf32>
    %cst_76 = arith.constant dense<0.000000e+00> : vector<8x32xf32>
    %88 = tpu.matmul %86, %87, %cst_76 {dimension_numbers = #tpu.dot_dimension_numbers<[1], [0], [0], [1], [0, 0, 1, 1], [], []>, precision = #tpu.contract_precision<fp32>} : vector<8x32xf32>, vector<32x32xf32>, vector<8x32xf32> -> vector<8x32xf32>
    %c0_77 = arith.constant 0 : index
    %c0_78 = arith.constant 0 : index
    %89 = vector.load %arg9[%c0_77, %c0_78] : memref<1x32xf32, #tpu.memory_space<vmem>>, vector<1x32xf32>
    %90 = vector.broadcast %89 : vector<1x32xf32> to vector<8x32xf32>
    %91 = arith.addf %88, %90 : vector<8x32xf32>
    %c0_79 = arith.constant 0 : index
    %c0_80 = arith.constant 0 : index
    %92 = vector.load %arg10[%c0_79, %c0_80] : memref<32x32xf32, #tpu.memory_space<vmem>>, vector<32x32xf32>
    %cst_81 = arith.constant dense<0.000000e+00> : vector<8x32xf32>
    %93 = tpu.matmul %86, %92, %cst_81 {dimension_numbers = #tpu.dot_dimension_numbers<[1], [0], [0], [1], [0, 0, 1, 1], [], []>, precision = #tpu.contract_precision<fp32>} : vector<8x32xf32>, vector<32x32xf32>, vector<8x32xf32> -> vector<8x32xf32>
    %c0_82 = arith.constant 0 : index
    %c0_83 = arith.constant 0 : index
    %94 = vector.load %arg11[%c0_82, %c0_83] : memref<1x32xf32, #tpu.memory_space<vmem>>, vector<1x32xf32>
    %95 = vector.broadcast %94 : vector<1x32xf32> to vector<8x32xf32>
    %96 = arith.addf %93, %95 : vector<8x32xf32>
    %c0_84 = arith.constant 0 : index
    %c0_85 = arith.constant 0 : index
    %97 = vector.load %arg12[%c0_84, %c0_85] : memref<32x32xf32, #tpu.memory_space<vmem>>, vector<32x32xf32>
    %cst_86 = arith.constant dense<0.000000e+00> : vector<8x32xf32>
    %98 = tpu.matmul %86, %97, %cst_86 {dimension_numbers = #tpu.dot_dimension_numbers<[1], [0], [0], [1], [0, 0, 1, 1], [], []>, precision = #tpu.contract_precision<fp32>} : vector<8x32xf32>, vector<32x32xf32>, vector<8x32xf32> -> vector<8x32xf32>
    %c0_87 = arith.constant 0 : index
    %c0_88 = arith.constant 0 : index
    %99 = vector.load %arg13[%c0_87, %c0_88] : memref<1x32xf32, #tpu.memory_space<vmem>>, vector<1x32xf32>
    %100 = vector.broadcast %99 : vector<1x32xf32> to vector<8x32xf32>
    %101 = arith.addf %98, %100 : vector<8x32xf32>
    %cst_89 = arith.constant dense<0.000000e+00> : vector<8x8xf32>
    %102 = tpu.matmul %91, %96, %cst_89 {dimension_numbers = #tpu.dot_dimension_numbers<[1], [1], [0], [0], [0, 0, 1, 0], [], []>, precision = #tpu.contract_precision<fp32>} : vector<8x32xf32>, vector<8x32xf32>, vector<8x8xf32> -> vector<8x8xf32>
    %cst_90 = arith.constant 0.176776692 : f32
    %103 = vector.broadcast %cst_90 : f32 to vector<8x8xf32>
    %104 = arith.mulf %102, %103 : vector<8x8xf32>
    %cst_91 = arith.constant dense<0xFF800000> : vector<8xf32>
    %105 = vector.multi_reduction <maximumf>, %104, %cst_91 [1] : vector<8x8xf32> to vector<8xf32>
    %106 = vector.shape_cast %105 : vector<8xf32> to vector<8x1xf32>
    %107 = vector.broadcast %106 : vector<8x1xf32> to vector<8x8xf32>
    %108 = arith.subf %104, %107 : vector<8x8xf32>
    %109 = math.exp %108 : vector<8x8xf32>
    %cst_92 = arith.constant dense<0.000000e+00> : vector<8xf32>
    %110 = vector.multi_reduction <add>, %109, %cst_92 [1] : vector<8x8xf32> to vector<8xf32>
    %111 = vector.shape_cast %110 : vector<8xf32> to vector<8x1xf32>
    %112 = vector.broadcast %111 : vector<8x1xf32> to vector<8x8xf32>
    %113 = arith.divf %109, %112 : vector<8x8xf32>
    %cst_93 = arith.constant dense<0.000000e+00> : vector<8x32xf32>
    %114 = tpu.matmul %113, %101, %cst_93 {dimension_numbers = #tpu.dot_dimension_numbers<[1], [0], [0], [1], [0, 0, 1, 1], [], []>, precision = #tpu.contract_precision<fp32>} : vector<8x8xf32>, vector<8x32xf32>, vector<8x32xf32> -> vector<8x32xf32>
    %cst_94 = arith.constant dense<0.000000e+00> : vector<32xf32>
    %115 = vector.multi_reduction <add>, %114, %cst_94 [0] : vector<8x32xf32> to vector<32xf32>
    %116 = vector.shape_cast %115 : vector<32xf32> to vector<1x32xf32>
    %cst_95 = arith.constant 1.250000e-01 : f32
    %117 = vector.broadcast %cst_95 : f32 to vector<1x32xf32>
    %118 = arith.mulf %116, %117 : vector<1x32xf32>
    %c0_96 = arith.constant 0 : index
    %c0_97 = arith.constant 0 : index
    %119 = vector.load %arg14[%c0_96, %c0_97] : memref<32x64xf32, #tpu.memory_space<vmem>>, vector<32x64xf32>
    %cst_98 = arith.constant dense<0.000000e+00> : vector<1x64xf32>
    %120 = tpu.matmul %118, %119, %cst_98 {dimension_numbers = #tpu.dot_dimension_numbers<[1], [0], [0], [1], [0, 0, 1, 1], [], []>, precision = #tpu.contract_precision<fp32>} : vector<1x32xf32>, vector<32x64xf32>, vector<1x64xf32> -> vector<1x64xf32>
    %c0_99 = arith.constant 0 : index
    %c0_100 = arith.constant 0 : index
    %121 = vector.load %arg15[%c0_99, %c0_100] : memref<1x64xf32, #tpu.memory_space<vmem>>, vector<1x64xf32>
    %122 = arith.addf %120, %121 : vector<1x64xf32>
    %cst_101 = arith.constant 0.000000e+00 : f32
    %123 = vector.broadcast %cst_101 : f32 to vector<1x64xf32>
    %124 = arith.maximumf %122, %123 : vector<1x64xf32>
    %c0_102 = arith.constant 0 : index
    %c0_103 = arith.constant 0 : index
    %125 = vector.load %arg16[%c0_102, %c0_103] : memref<64x128xf32, #tpu.memory_space<vmem>>, vector<64x128xf32>
    %cst_104 = arith.constant dense<0.000000e+00> : vector<1x128xf32>
    %126 = tpu.matmul %124, %125, %cst_104 {dimension_numbers = #tpu.dot_dimension_numbers<[1], [0], [0], [1], [0, 0, 1, 1], [], []>, precision = #tpu.contract_precision<fp32>} : vector<1x64xf32>, vector<64x128xf32>, vector<1x128xf32> -> vector<1x128xf32>
    %c0_105 = arith.constant 0 : index
    %c0_106 = arith.constant 0 : index
    %127 = vector.load %arg17[%c0_105, %c0_106] : memref<1x128xf32, #tpu.memory_space<vmem>>, vector<1x128xf32>
    %128 = arith.addf %126, %127 : vector<1x128xf32>
    %c0_107 = arith.constant 0 : index
    %c0_108 = arith.constant 0 : index
    %c0_109 = arith.constant 0 : index
    %129 = vector.load %arg18[%c0_107, %c0_108, %c0_109] : memref<1x1x128xf32, #tpu.memory_space<vmem>>, vector<1x1x128xf32>
    %130 = vector.shape_cast %129 : vector<1x1x128xf32> to vector<1x128xf32>
    %131 = vector.shape_cast %128 : vector<1x128xf32> to vector<1x1x128xf32>
    tpu.vector_store %arg18[%c0_107, %c0_108, %c0_109], %131 {strides = array<i32>} : memref<1x1x128xf32, #tpu.memory_space<vmem>>, vector<1x1x128xf32>,
    return
  }
  func.func @transform_0(%arg0: i32) -> (i32, i32, i32) {
    %c0_i32 = arith.constant 0 : i32
    %c0_i32_0 = arith.constant 0 : i32
    %c0_i32_1 = arith.constant 0 : i32
    return %arg0, %c0_i32, %c0_i32_0 : i32, i32, i32
  }
  func.func @transform_1(%arg0: i32) -> (i32, i32) {
    %c0_i32 = arith.constant 0 : i32
    %c0_i32_0 = arith.constant 0 : i32
    %c0_i32_1 = arith.constant 0 : i32
    return %c0_i32, %c0_i32_0 : i32, i32
  }
  func.func @transform_2(%arg0: i32) -> (i32, i32) {
    %c0_i32 = arith.constant 0 : i32
    %c0_i32_0 = arith.constant 0 : i32
    %c0_i32_1 = arith.constant 0 : i32
    return %c0_i32, %c0_i32_0 : i32, i32
  }
  func.func @transform_3(%arg0: i32) -> (i32, i32) {
    %c0_i32 = arith.constant 0 : i32
    %c0_i32_0 = arith.constant 0 : i32
    %c0_i32_1 = arith.constant 0 : i32
    return %c0_i32, %c0_i32_0 : i32, i32
  }
  func.func @transform_4(%arg0: i32) -> (i32, i32) {
    %c0_i32 = arith.constant 0 : i32
    %c0_i32_0 = arith.constant 0 : i32
    %c0_i32_1 = arith.constant 0 : i32
    return %c0_i32, %c0_i32_0 : i32, i32
  }
  func.func @transform_5(%arg0: i32) -> (i32, i32) {
    %c0_i32 = arith.constant 0 : i32
    %c0_i32_0 = arith.constant 0 : i32
    %c0_i32_1 = arith.constant 0 : i32
    return %c0_i32, %c0_i32_0 : i32, i32
  }
  func.func @transform_6(%arg0: i32) -> (i32, i32) {
    %c0_i32 = arith.constant 0 : i32
    %c0_i32_0 = arith.constant 0 : i32
    %c0_i32_1 = arith.constant 0 : i32
    return %c0_i32, %c0_i32_0 : i32, i32
  }
  func.func @transform_7(%arg0: i32) -> (i32, i32) {
    %c0_i32 = arith.constant 0 : i32
    %c0_i32_0 = arith.constant 0 : i32
    %c0_i32_1 = arith.constant 0 : i32
    return %c0_i32, %c0_i32_0 : i32, i32
  }
  func.func @transform_8(%arg0: i32) -> (i32, i32) {
    %c0_i32 = arith.constant 0 : i32
    %c0_i32_0 = arith.constant 0 : i32
    %c0_i32_1 = arith.constant 0 : i32
    return %c0_i32, %c0_i32_0 : i32, i32
  }
  func.func @transform_9(%arg0: i32) -> (i32, i32) {
    %c0_i32 = arith.constant 0 : i32
    %c0_i32_0 = arith.constant 0 : i32
    %c0_i32_1 = arith.constant 0 : i32
    return %c0_i32, %c0_i32_0 : i32, i32
  }
  func.func @transform_10(%arg0: i32) -> (i32, i32) {
    %c0_i32 = arith.constant 0 : i32
    %c0_i32_0 = arith.constant 0 : i32
    %c0_i32_1 = arith.constant 0 : i32
    return %c0_i32, %c0_i32_0 : i32, i32
  }
  func.func @transform_11(%arg0: i32) -> (i32, i32) {
    %c0_i32 = arith.constant 0 : i32
    %c0_i32_0 = arith.constant 0 : i32
    %c0_i32_1 = arith.constant 0 : i32
    return %c0_i32, %c0_i32_0 : i32, i32
  }
  func.func @transform_12(%arg0: i32) -> (i32, i32) {
    %c0_i32 = arith.constant 0 : i32
    %c0_i32_0 = arith.constant 0 : i32
    %c0_i32_1 = arith.constant 0 : i32
    return %c0_i32, %c0_i32_0 : i32, i32
  }
  func.func @transform_13(%arg0: i32) -> (i32, i32) {
    %c0_i32 = arith.constant 0 : i32
    %c0_i32_0 = arith.constant 0 : i32
    %c0_i32_1 = arith.constant 0 : i32
    return %c0_i32, %c0_i32_0 : i32, i32
  }
  func.func @transform_14(%arg0: i32) -> (i32, i32) {
    %c0_i32 = arith.constant 0 : i32
    %c0_i32_0 = arith.constant 0 : i32
    %c0_i32_1 = arith.constant 0 : i32
    return %c0_i32, %c0_i32_0 : i32, i32
  }
  func.func @transform_15(%arg0: i32) -> (i32, i32) {
    %c0_i32 = arith.constant 0 : i32
    %c0_i32_0 = arith.constant 0 : i32
    %c0_i32_1 = arith.constant 0 : i32
    return %c0_i32, %c0_i32_0 : i32, i32
  }
  func.func @transform_16(%arg0: i32) -> (i32, i32) {
    %c0_i32 = arith.constant 0 : i32
    %c0_i32_0 = arith.constant 0 : i32
    %c0_i32_1 = arith.constant 0 : i32
    return %c0_i32, %c0_i32_0 : i32, i32
  }
  func.func @transform_17(%arg0: i32) -> (i32, i32, i32) {
    %c0_i32 = arith.constant 0 : i32
    %c0_i32_0 = arith.constant 0 : i32
    %c0_i32_1 = arith.constant 0 : i32
    return %arg0, %c0_i32, %c0_i32_0 : i32, i32, i32
  }
}

</mosaic_0001>

<bundles_post_ra>
// kernel: tpu_custom_call.1
= control target key start
LH: loop header
LB: loop body
LE: loop exit
PB: predicated region body
PF: predicated region fallthrough
CT: control target
= control target key end

     0   :  { %s15376_s0 = inlined_call_operand.vmem [shape: f32[2,21,4], index: 0, kind: input, shape index: {}]   ;;  %s15377_s1 = inlined_call_operand.vmem [shape: f32[16,8], index: 1, kind: input, shape index: {}]   ;;  %s15378_s2 = inlined_call_operand.vmem [shape: f32[1,8], index: 2, kind: input, shape index: {}]   ;;  %s15379_s3 = inlined_call_operand.vmem [shape: f32[32,16], index: 3, kind: input, shape index: {}]   ;;  %s15380_s4 = inlined_call_operand.vmem [shape: f32[1,16], index: 4, kind: input, shape index: {}]   ;;  %s15381_s5 = inlined_call_operand.vmem [shape: f32[64,32], index: 5, kind: input, shape index: {}]   ;;  %s15382_s6 = inlined_call_operand.vmem [shape: f32[1,32], index: 6, kind: input, shape index: {}]   ;;  %s15383_s7 = inlined_call_operand.vmem [shape: f32[32,32], index: 7, kind: input, shape index: {}]   ;;  %s15384_s8 = inlined_call_operand.vmem [shape: f32[1,32], index: 8, kind: input, shape index: {}]   ;;  %s15385_s9 = inlined_call_operand.vmem [shape: f32[32,32], index: 9, kind: input, shape index: {}]   ;;  %s15386_s10 = inlined_call_operand.vmem [shape: f32[1,32], index: 10, kind: input, shape index: {}]   ;;  %s15387_s11 = inlined_call_operand.vmem [shape: f32[32,32], index: 11, kind: input, shape index: {}]   ;;  %s15388_s12 = inlined_call_operand.vmem [shape: f32[1,32], index: 12, kind: input, shape index: {}]   ;;  %s15389_s13 = inlined_call_operand.vmem [shape: f32[32,64], index: 13, kind: input, shape index: {}]   ;;  %s15390_s14 = inlined_call_operand.vmem [shape: f32[1,64], index: 14, kind: input, shape index: {}]   ;;  %s15391_s15 = inlined_call_operand.vmem [shape: f32[64,128], index: 15, kind: input, shape index: {}]   ;;  %s15392_s16 = inlined_call_operand.vmem [shape: f32[1,128], index: 16, kind: input, shape index: {}]   ;;  %s15393_s17 = inlined_call_operand.hbm [shape: f32[2,1,128], index: 17, kind: output, shape index: {}]  }
   0x1   :  { %15398 = sst [smem:[#allocation10_spill]] %s15376_s0 }
   0x2   :  { %15399 = sst [smem:[#allocation11_spill]] %s15377_s1 }
   0x3   :  { %15400 = sst [smem:[#allocation12_spill]] %s15378_s2 }
   0x4   :  { %15401 = sst [smem:[#allocation13_spill]] %s15379_s3 }
   0x5   :  { %15402 = sst [smem:[#allocation14_spill]] %s15380_s4 }
   0x6   :  { %22 = vsyncpa [#allocation5], 0 }
   0x7   :  { %24 = vsyncpa [#allocation5 + $0x1], 0  ;;  %s13959_s24 = smov 0   ;;  %s13961_s25 = smov 0  }
   0x8   :  { %s13963_s26 = smov 0   ;;  %s13965_s27 = smov 0  }
   0x9 LB: > { %15403 = sst [smem:[#allocation7_spill]] %s13859_s26  ;;  %s13980_s28 = sadd.s32 4294967295, %s13863_s27   ;;  %s13863_s27 = sphi %s13965_s27, %s15413_s27   ;;  %s13859_s26 = sphi %s13963_s26, %s15418_s26   ;;  %s13855_s25 = sphi %s13961_s25, %s15417_s25   ;;  %s13851_s24 = sphi %s13959_s24, %s15416_s24  }
   0xa   : > { %s11502_s29 = sadd.s32 4294967294, %s13863_s27   ;;  %s13984_s0 = sadd.s32 1, %s13863_s27  }
   0xb   : > { %15404 = sst [smem:[#allocation8_spill]] %s13984_s0  ;;  %s399_s30 = sadd.s32 1, %s13859_s26 }
   0xc   : > { %s396_s18 = ssub.s32 %s13863_s27, %s13984_s0  ;;  %p409_p0 = scmp.ne.s32.totalorder %s13859_s26, %s13855_s25 }
   0xd   : > { %p397_p1 = scmp.eq.s32.totalorder %s396_s18, 0  ;;  %p410_p2 = scmp.eq.s32.totalorder %s13980_s28, 1 }
   0xe   : > { %p415_p3 = scmp.ne.s32.totalorder %s13855_s25, %s13851_s24  ;;  %p416_p4 = scmp.eq.s32.totalorder %s11502_s29, 1 }
   0xf   : > { %s13995_s19 = scalar_select %p397_p1, %s13859_s26, %s399_s30  }
  0x10   : > { %p13997_p5 = por %p410_p2, %p409_p0  ;;  %p14001_p6 = por %p416_p4, %p415_p3 }
  0x11   : > { %15405 = sst [smem:[#allocation9_spill]] %s13995_s19  ;;  %p11505_p7 = scmp.ge.s32.totalorder %s13863_s27, 1 }
  0x12   : > { %p490_p8 = scmp.lt.s32.totalorder %s13863_s27, 3 }
  0x14   : > { %p491_p9 = pnand %p11505_p7, %p490_p8 }
  0x15   : > { %s15408_s23 = sld [smem:[#allocation11_spill]] (!%p491_p9)  ;;  %vm564_vm0 = vcmask (!%p491_p9), 1043456   ;;  %p541_p10 = scmp.lt.s32.totalorder (!%p491_p9), %s13980_s28, 1  ;;  %v13865_v1 = vmov (!%p491_p9), 0.0   ;;  %vm13866_vm1 = vmmov (!%p491_p9), 0   ;;  %vm554_vm2 = vcmask (!%p491_p9), 31744  }
  0x16   : > { %494 = sbr.rel (%p491_p9) target bundleno = 3194 (0xc7a), region = 88  ;;  %12046 = vmatprep.subr.mxu0 (!%p491_p9), %v13865_v1  ;;  %12048 = vmatprep.mubr.msk.f32.mxu0 (!%p491_p9), %vm13866_vm1, %v13865_v1  ;;  %s15409_s26 = sld [smem:[#allocation10_spill]] (!%p491_p9)  ;;  %vm2759_vm3 = vcmask (!%p491_p9), 64512   ;;  %vm2762_vm4 = vcmask (!%p491_p9), 60416   ;;  %vm2766_vm5 = vcmask (!%p491_p9), 58368   ;;  %vm4967_vm6 = vcmask (!%p491_p9), 130048  }
  0x17   : > { %13612 = vmatprep.subr.mxu1 (!%p491_p9), %v13865_v1  ;;  %12065 = vmatprep.mubr.msk.f32.mxu1 (!%p491_p9), %vm13866_vm1, %v13865_v1  ;;  %2760 = vst.msk [vmem:[#allocation2] sm:$0xff] (!%p491_p9), %vm2759_vm3, %v13865_v1  ;;  %2761 = vst.msk [vmem:[#allocation2 + $0x8] sm:$0xff] (!%p491_p9), %vm2759_vm3, %v13865_v1  ;;  %s15410_s3 = sld [smem:[#allocation13_spill]] (!%p491_p9)  ;;  %s15411_s2 = sld [smem:[#allocation12_spill]] (!%p491_p9)  ;;  %vm4970_vm7 = vcmask (!%p491_p9), 124928   ;;  %vm4974_vm8 = vcmask (!%p491_p9), 122880  }
  0x18   : > { %2763 = vst.msk [vmem:[#allocation2 + $0x10] sm:$0xf] (!%p491_p9), %vm2762_vm4, %v13865_v1  ;;  %s15412_s4 = sld [smem:[#allocation14_spill]] (!%p491_p9)  ;;  %vm7987_vm11 = vcmask (!%p491_p9), 261120   ;;  %vm10892_vm12 = vcmask (!%p491_p9), 523264   ;;  %s11521_s19 = sshll.u32 (!%p491_p9), %s13980_s28, 4 }
  0x19   : > { %4968 = vst.msk [vmem:[#allocation3] sm:$0xff] (!%p491_p9), %vm4967_vm6, %v13865_v1  ;;  %4969 = vst.msk [vmem:[#allocation3 + $0x8] sm:$0xff] (!%p491_p9), %vm4967_vm6, %v13865_v1  ;;  %s15334_s21 = scalar_lea.hbm (!%p491_p9), %s15393_s17, %s11521_s19 }
  0x1a   : > { %4971 = vst.msk [vmem:[#allocation3 + $0x10] sm:$0x7] (!%p491_p9), %vm4970_vm7, %v13865_v1 }
  0x1b   : > { %v553_v0 = vld [vmem:[%s15408_s23 + $0x4] sm:$0xf] (!%p491_p9)  ;;  %v549_v5 = vld [vmem:[%s15408_s23] sm:$0xf] (!%p491_p9)  ;;  %v1647_v53 = vld [vmem:[%s15408_s23 + $0x8] sm:$0xf] (!%p491_p9) }
  0x1c   : > { %v566_v2 = vsel (!%p491_p9), %vm564_vm0, %v553_v0, 0  ;;  %v1110_v10 = vsel (!%p491_p9), %vm564_vm0, %v549_v5, 0  ;;  %v1658_v56 = vsel (!%p491_p9), %vm564_vm0, %v1647_v53, 0 }
  0x1d   : > { %v569_v3 = vand.u32 4294901760, %v566_v2  ;;  %s542_s29 = scalar_select %p541_p10, %s13980_s28, 1  ;;  %v14047_v19 = vand.u32 4294901760, %v1110_v10  ;;  %v14163_v58 = vand.u32 4294901760, %v1658_v56 }
  0x1e   : > { %s13868_s28 = smov [#allocation4]  }
  0x1f   : > { %12047 = vmatpush3.msra.mxu0 %v569_v3  ;;  %s13754_s30 = smul.u32 24, %s542_s29  ;;  %v14019_v4 = vsub.f32 %v566_v2, %v569_v3  ;;  %v14070_v28 = vsub.f32 %v1110_v10, %v14047_v19  ;;  %v14175_v61 = vsub.f32 %v1658_v56, %v14163_v58 }
  0x20   : > { %12057 = vmatprep.subr.mxu0 %v13865_v1 }
  0x21   : > { %s14028_s0 = scalar_lea.vmem %s15409_s26, %s13754_s30  ;;  %v667_v6 = vand.u32 4294901760, %v14019_v4  ;;  %v1211_v36 = vand.u32 4294901760, %v14070_v28  ;;  %v1759_v0 = vand.u32 4294901760, %v14175_v61  ;;  %s13805_s26 = sshll.u32 %s13868_s28, 4  ;;  %s13806_s26 = int_to_ptr.vmem [resolvable:$false] %s13805_s26 }
  0x22   : > { %v550_v7 = vld [vmem:[%s14028_s0 + $0x1] sm:$0xff]  ;;  %v551_v8 = vld [vmem:[%s14028_s0 + $0x9] sm:$0xff]  ;;  %v552_v9 = vld [vmem:[%s14028_s0 + $0x11] sm:$0x3] }
  0x23   : > { %v556_v11 = vsel %vm554_vm2, %v550_v7, 0  ;;  %v559_v12 = vsel %vm554_vm2, %v551_v8, 0  ;;  %v668_v13 = vsub.f32 %v14019_v4, %v667_v6  ;;  %v562_v14 = vsel %vm554_vm2, %v552_v9, 0  ;;  %v1644_v20 = vld [vmem:[%s14028_s0 + $0x2] sm:$0xff]  ;;  %v1645_v27 = vld [vmem:[%s14028_s0 + $0xa] sm:$0xff] }
  0x24   : > { %v14041_v15 = vand.u32 4294901760, %v556_v11  ;;  %v14043_v16 = vand.u32 4294901760, %v559_v12  ;;  %v14045_v17 = vand.u32 4294901760, %v562_v14  ;;  %v14064_v26 = vsel %vm554_vm2, %v1644_v20, 0  ;;  %v1646_v33 = vld [vmem:[%s14028_s0 + $0x12] sm:$0x3] }
  0x25   : > { %v669_v18 = vand.u32 4294901760, %v668_v13  ;;  %v14077_v32 = vsel %vm554_vm2, %v1645_v27, 0  ;;  %v2195_v34 = vld [vmem:[%s14028_s0 + $0x3] sm:$0xff]  ;;  %v14087_v39 = vsel %vm554_vm2, %v1646_v33, 0  ;;  %v2196_v41 = vld [vmem:[%s14028_s0 + $0xb] sm:$0xff]  ;;  %v1212_v43 = vsub.f32 %v14070_v28, %v1211_v36 }
  0x26   : > { %v14051_v21 = vsub.f32 %v556_v11, %v14041_v15  ;;  %v14054_v22 = vsub.f32 %v559_v12, %v14043_v16  ;;  %v14057_v23 = vsub.f32 %v562_v14, %v14045_v17  ;;  %v14090_v40 = vsel %vm554_vm2, %v2195_v34, 0  ;;  %v2197_v42 = vld [vmem:[%s14028_s0 + $0x13] sm:$0x3]  ;;  %v546_v48 = vld [vmem:[%s14028_s0] sm:$0xff]  ;;  %v547_v50 = vld [vmem:[%s14028_s0 + $0x8] sm:$0xff] }
  0x27   : > { %13613 = vmatpush3.msra.mxu1 %v669_v18  ;;  %v14103_v44 = vsel %vm554_vm2, %v2196_v41, 0  ;;  %v14106_v45 = vsel %vm554_vm2, %v2197_v42, 0  ;;  %v1213_v47 = vand.u32 4294901760, %v1212_v43  ;;  %v1101_v49 = vsel %vm554_vm2, %v546_v48, 0  ;;  %v548_v54 = vld [vmem:[%s14028_s0 + $0x10] sm:$0x3] }
  0x28   : > { %v636_v24 = vand.u32 4294901760, %v14051_v21  ;;  %v646_v25 = vand.u32 4294901760, %v14054_v22  ;;  %12066 = vmatmul.mubr.f32.vlgmr.msra.gmra.mrb[0].mxu1 %v14045_v17  ;;  %12079 = vmatprep.subr.mxu1 %v13865_v1  ;;  %v656_v31 = vand.u32 4294901760, %v14057_v23  ;;  %v14136_v51 = vand.u32 4294901760, %v1101_v49  ;;  %v2198_v14 = vld [vmem:[%s15408_s23 + $0xc] sm:$0xf] }
  0x29   : > { %12080 = vmatpush3.msra.mxu1 %v569_v3  ;;  %12081 = vmatprep.mubr.msk.f32.mxu1 %vm13866_vm1, %v13865_v1  ;;  %v1104_v52 = vsel %vm554_vm2, %v547_v50, 0  ;;  %v1107_v57 = vsel %vm554_vm2, %v548_v54, 0  ;;  %v1760_v5 = vsub.f32 %v14175_v61, %v1759_v0  ;;  %v14221_v13 = vand.u32 4294901760, %v14064_v26 }
  0x2a   : > { %v637_v29 = vsub.f32 %v14051_v21, %v636_v24  ;;  %v647_v30 = vsub.f32 %v14054_v22, %v646_v25  ;;  %12101 = vmatprep.subr.mxu1 %v13865_v1  ;;  %v657_v38 = vsub.f32 %v14057_v23, %v656_v31  ;;  %v14153_v55 = vand.u32 4294901760, %v1104_v52 }
  0x2b   : > { %v1179_v59 = vsub.f32 %v1101_v49, %v14136_v51  ;;  %v14167_v60 = vand.u32 4294901760, %v1107_v57  ;;  %v1761_v9 = vand.u32 4294901760, %v1760_v5 }
  0x2c   : > { %v638_v35 = vand.u32 4294901760, %v637_v29  ;;  %12082 = vmatmul.mubr.f32.vlgmr.msra.gmra.mrb[2].mxu1 %v636_v24  ;;  %v648_v37 = vand.u32 4294901760, %v647_v30  ;;  %v658_v46 = vand.u32 4294901760, %v657_v38  ;;  %v1189_v63 = vsub.f32 %v1104_v52, %v14153_v55 }
  0x2d   : > { %12084 = vmatprep.mubr.msk.f32.mxu1 %vm13866_vm1, %v13865_v1  ;;  %12102 = vmatpush3.msra.mxu1 %v569_v3  ;;  %v1180_v62 = vand.u32 4294901760, %v1179_v59  ;;  %v2297_v38 = vand.u32 4294901760, %v14106_v45 }
  0x2e   : > { %12049 = vmatmul.mubr.f32.vlgmr.msra.gmra.mrb[0].mxu0 %v638_v35  ;;  %12123 = vmatprep.subr.mxu1 %v13865_v1  ;;  %v1190_v3 = vand.u32 4294901760, %v1189_v63  ;;  %v14306_v35 = vand.u32 4294901760, %v14090_v40 }
  0x2f   : > { %12051 = vmatprep.mubr.msk.f32.mxu0 %vm13866_vm1, %v13865_v1  ;;  %12058 = vmatpush3.msra.mxu0 %v669_v18  ;;  %v1181_v2 = vsub.f32 %v1179_v59, %v1180_v62  ;;  %v1727_v18 = vsub.f32 %v14064_v26, %v14221_v13  ;;  %v2298_v43 = vsub.f32 %v14106_v45, %v2297_v38 }
  0x30   : > { %12068 = vmatprep.subr.mxu0 %v13865_v1  ;;  %12085 = vmatmul.mubr.f32.gmra.mrb[4].mxu1 %v646_v25  ;;  %v1191_v7 = vsub.f32 %v1189_v63, %v1190_v3 }
  0x31   : > { %12087 = vmatprep.mubr.msk.f32.mxu1 %vm13866_vm1, %v13865_v1 }
  0x32   : > { %12052 = vmatmul.mubr.f32.gmra.mrb[2].mxu0 %v648_v37  ;;  %v1192_v10 = vand.u32 4294901760, %v1191_v7  ;;  %v2278_v37 = vsub.f32 %v14090_v40, %v14306_v35 }
  0x33   : > { %12054 = vmatprep.mubr.msk.f32.mxu0 %vm13866_vm1, %v13865_v1 }
  0x34   : > { %12088 = vmatmul.mubr.f32.gmra.mrb[6].mxu1 %v656_v31 }
  0x35   : > { %12103 = vmatprep.mubr.msk.f32.mxu1 %vm13866_vm1, %v13865_v1 }
  0x36   : > { %12055 = vmatmul.mubr.f32.gmra.mrb[4].mxu0 %v658_v46 }
  0x37   : > { %12059 = vmatprep.mubr.msk.f32.mxu0 %vm13866_vm1, %v13865_v1 }
  0x38   : > { %12104 = vmatmul.mubr.f32.vlgmr.msra.gmra.mrb[8].mxu1 %v14041_v15 }
  0x39   : > { %12106 = vmatprep.mubr.msk.f32.mxu1 %vm13866_vm1, %v13865_v1  ;;  %12124 = vmatpush3.msra.mxu1 %v1213_v47  ;;  %v2299_v47 = vand.u32 4294901760, %v2298_v43 }
  0x3a   : > { %12060 = vmatmul.mubr.f32.vlgmr.msra.gmra.mrb[6].mxu0 %v14041_v15  ;;  %12145 = vmatprep.subr.mxu1 %v13865_v1 }
  0x3b   : > { %12062 = vmatprep.mubr.msk.f32.mxu0 %vm13866_vm1, %v13865_v1  ;;  %12069 = vmatpush3.msra.mxu0 %v14019_v4  ;;  %v1199_v4 = vsub.f32 %v1107_v57, %v14167_v60  ;;  %v2300_v48 = vsub.f32 %v2298_v43, %v2299_v47 }
  0x3c   : > { %12090 = vmatprep.subr.mxu0 %v13865_v1  ;;  %12107 = vmatmul.mubr.f32.gmra.mrb[10].mxu1 %v14043_v16 }
  0x3d   : > { %12109 = vmatprep.mubr.msk.f32.mxu1 %vm13866_vm1, %v13865_v1  ;;  %v1200_v8 = vand.u32 4294901760, %v1199_v4  ;;  %v2301_v49 = vand.u32 4294901760, %v2300_v48 }
  0x3e   : > { %12063 = vmatmul.mubr.f32.gmra.mrb[8].mxu0 %v14043_v16 }
  0x3f   : > { %12070 = vmatprep.mubr.msk.f32.mxu0 %vm13866_vm1, %v13865_v1  ;;  %v1201_v11 = vsub.f32 %v1199_v4, %v1200_v8 }
  0x40   : > { %12110 = vmatmul.mubr.f32.gmra.mrb[12].mxu1 %v14045_v17 }
  0x41   : > { %12125 = vmatprep.mubr.msk.f32.mxu1 %vm13866_vm1, %v13865_v1  ;;  %v1202_v12 = vand.u32 4294901760, %v1201_v11 }
  0x42   : > { %12071 = vmatmul.mubr.f32.vlgmr.msra.gmra.mrb[10].mxu0 %v14051_v21  ;;  %v1728_v21 = vand.u32 4294901760, %v1727_v18 }
  0x43   : > { %12073 = vmatprep.mubr.msk.f32.mxu0 %vm13866_vm1, %v13865_v1  ;;  %12091 = vmatpush3.msra.mxu0 %v667_v6  ;;  %v1182_v6 = vand.u32 4294901760, %v1181_v2 }
  0x44   : > { %12112 = vmatprep.subr.mxu0 %v13865_v1  ;;  %12126 = vmatmul.mubr.f32.vlgmr.msra.gmra.mrb[14].mxu1 %v14136_v51  ;;  %v1729_v24 = vsub.f32 %v1727_v18, %v1728_v21 }
  0x45   : > { %12128 = vmatprep.mubr.msk.f32.mxu1 %vm13866_vm1, %v13865_v1  ;;  %12146 = vmatpush3.msra.mxu1 %v14047_v19 }
  0x46   : > { %12074 = vmatmul.mubr.f32.gmra.mrb[12].mxu0 %v14054_v22  ;;  %12167 = vmatprep.subr.mxu1 %v13865_v1 }
  0x47   : > { %12076 = vmatprep.mubr.msk.f32.mxu0 %vm13866_vm1, %v13865_v1 }
  0x48   : > { %12129 = vmatmul.mubr.f32.gmra.mrb[16].mxu1 %v14153_v55 }
  0x49   : > { %12131 = vmatprep.mubr.msk.f32.mxu1 %vm13866_vm1, %v13865_v1 }
  0x4a   : > { %12077 = vmatmul.mubr.f32.gmra.mrb[14].mxu0 %v14057_v23 }
  0x4b   : > { %12092 = vmatprep.mubr.msk.f32.mxu0 %vm13866_vm1, %v13865_v1 }
  0x4c   : > { %12132 = vmatmul.mubr.f32.gmra.mrb[18].mxu1 %v14167_v60 }
  0x4d   : > { %12147 = vmatprep.mubr.msk.f32.mxu1 %vm13866_vm1, %v13865_v1 }
  0x4e   : > { %12093 = vmatmul.mubr.f32.vlgmr.msra.gmra.mrb[16].mxu0 %v14041_v15  ;;  %v14236_v15 = vand.u32 4294901760, %v14077_v32 }
  0x4f   : > { %12095 = vmatprep.mubr.msk.f32.mxu0 %vm13866_vm1, %v13865_v1  ;;  %12113 = vmatpush3.msra.mxu0 %v14047_v19 }
  0x50   : > { %12134 = vmatprep.subr.mxu0 %v13865_v1  ;;  %12148 = vmatmul.mubr.f32.vlgmr.msra.gmra.mrb[20].mxu1 %v1180_v62  ;;  %v1737_v22 = vsub.f32 %v14077_v32, %v14236_v15 }
  0x51   : > { %12150 = vmatprep.mubr.msk.f32.mxu1 %vm13866_vm1, %v13865_v1  ;;  %12168 = vmatpush3.msra.mxu1 %v14047_v19  ;;  %v14250_v19 = vand.u32 4294901760, %v14087_v39 }
  0x52   : > { %12096 = vmatmul.mubr.f32.gmra.mrb[18].mxu0 %v14043_v16  ;;  %12189 = vmatprep.subr.mxu1 %v13865_v1  ;;  %v2209_v16 = vsel %vm564_vm0, %v2198_v14, 0  ;;  %v1738_v25 = vand.u32 4294901760, %v1737_v22 }
  0x53   : > { %12098 = vmatprep.mubr.msk.f32.mxu0 %vm13866_vm1, %v13865_v1  ;;  %v1747_v26 = vsub.f32 %v14087_v39, %v14250_v19  ;;  %v2279_v39 = vand.u32 4294901760, %v2278_v37 }
  0x54   : > { %12151 = vmatmul.mubr.f32.gmra.mrb[22].mxu1 %v1190_v3  ;;  %v1739_v29 = vsub.f32 %v1737_v22, %v1738_v25 }
  0x55   : > { %12153 = vmatprep.mubr.msk.f32.mxu1 %vm13866_vm1, %v13865_v1  ;;  %v1748_v30 = vand.u32 4294901760, %v1747_v26  ;;  %v2280_v40 = vsub.f32 %v2278_v37, %v2279_v39 }
  0x56   : > { %12099 = vmatmul.mubr.f32.gmra.mrb[20].mxu0 %v14045_v17  ;;  %v14245_v17 = vand.u32 4294901760, %v2209_v16  ;;  %v1740_v32 = vand.u32 4294901760, %v1739_v29 }
  0x57   : > { %12114 = vmatprep.mubr.msk.f32.mxu0 %vm13866_vm1, %v13865_v1  ;;  %v1749_v33 = vsub.f32 %v1747_v26, %v1748_v30 }
  0x58   : > { %12154 = vmatmul.mubr.f32.gmra.mrb[24].mxu1 %v1200_v8  ;;  %v14258_v20 = vsub.f32 %v2209_v16, %v14245_v17 }
  0x59   : > { %12169 = vmatprep.mubr.msk.f32.mxu1 %vm13866_vm1, %v13865_v1  ;;  %v1750_v34 = vand.u32 4294901760, %v1749_v33 }
  0x5a   : > { %12115 = vmatmul.mubr.f32.vlgmr.msra.gmra.mrb[22].mxu0 %v1182_v6  ;;  %v2310_v23 = vand.u32 4294901760, %v14258_v20 }
  0x5b   : > { %12117 = vmatprep.mubr.msk.f32.mxu0 %vm13866_vm1, %v13865_v1  ;;  %12135 = vmatpush3.msra.mxu0 %v14070_v28  ;;  %v1730_v28 = vand.u32 4294901760, %v1729_v24 }
  0x5c   : > { %12156 = vmatprep.subr.mxu0 %v13865_v1  ;;  %12170 = vmatmul.mubr.f32.vlgmr.msra.gmra.mrb[26].mxu1 %v14136_v51  ;;  %v2311_v27 = vsub.f32 %v14258_v20, %v2310_v23 }
  0x5d   : > { %12172 = vmatprep.mubr.msk.f32.mxu1 %vm13866_vm1, %v13865_v1  ;;  %12190 = vmatpush3.msra.mxu1 %v1761_v9 }
  0x5e   : > { %12118 = vmatmul.mubr.f32.gmra.mrb[24].mxu0 %v1192_v10  ;;  %12211 = vmatprep.subr.mxu1 %v13865_v1  ;;  %v2312_v31 = vand.u32 4294901760, %v2311_v27 }
  0x5f   : > { %12120 = vmatprep.mubr.msk.f32.mxu0 %vm13866_vm1, %v13865_v1 }
  0x60   : > { %12173 = vmatmul.mubr.f32.gmra.mrb[28].mxu1 %v14153_v55 }
  0x61   : > { %12175 = vmatprep.mubr.msk.f32.mxu1 %vm13866_vm1, %v13865_v1 }
  0x62   : > { %12121 = vmatmul.mubr.f32.gmra.mrb[26].mxu0 %v1202_v12 }
  0x63   : > { %12136 = vmatprep.mubr.msk.f32.mxu0 %vm13866_vm1, %v13865_v1 }
  0x64   : > { %12176 = vmatmul.mubr.f32.gmra.mrb[30].mxu1 %v14167_v60 }
  0x65   : > { %12191 = vmatprep.mubr.msk.f32.mxu1 %vm13866_vm1, %v13865_v1 }
  0x66   : > { %12137 = vmatmul.mubr.f32.vlgmr.msra.gmra.mrb[28].mxu0 %v1179_v59 }
  0x67   : > { %12139 = vmatprep.mubr.msk.f32.mxu0 %vm13866_vm1, %v13865_v1  ;;  %12157 = vmatpush3.msra.mxu0 %v1211_v36  ;;  %v2287_v36 = vand.u32 4294901760, %v14103_v44 }
  0x68   : > { %12178 = vmatprep.subr.mxu0 %v13865_v1  ;;  %12192 = vmatmul.mubr.f32.vlgmr.msra.gmra.mrb[32].mxu1 %v14221_v13 }
  0x69   : > { %12194 = vmatprep.mubr.msk.f32.mxu1 %vm13866_vm1, %v13865_v1  ;;  %12212 = vmatpush3.msra.mxu1 %v14163_v58  ;;  %v2288_v41 = vsub.f32 %v14103_v44, %v2287_v36  ;;  %v2281_v44 = vand.u32 4294901760, %v2280_v40 }
  0x6a   : > { %12140 = vmatmul.mubr.f32.gmra.mrb[30].mxu0 %v1189_v63  ;;  %12233 = vmatprep.subr.mxu1 %v13865_v1 }
  0x6b   : > { %12142 = vmatprep.mubr.msk.f32.mxu0 %vm13866_vm1, %v13865_v1  ;;  %v2289_v42 = vand.u32 4294901760, %v2288_v41 }
  0x6c   : > { %12195 = vmatmul.mubr.f32.gmra.mrb[34].mxu1 %v14236_v15 }
  0x6d   : > { %12197 = vmatprep.mubr.msk.f32.mxu1 %vm13866_vm1, %v13865_v1  ;;  %v2290_v46 = vsub.f32 %v2288_v41, %v2289_v42 }
  0x6e   : > { %12143 = vmatmul.mubr.f32.gmra.mrb[32].mxu0 %v1199_v4 }
  0x6f   : > { %12158 = vmatprep.mubr.msk.f32.mxu0 %vm13866_vm1, %v13865_v1  ;;  %v2291_v45 = vand.u32 4294901760, %v2290_v46 }
  0x70   : > { %12198 = vmatmul.mubr.f32.gmra.mrb[36].mxu1 %v14250_v19 }
  0x71   : > { %12213 = vmatprep.mubr.msk.f32.mxu1 %vm13866_vm1, %v13865_v1 }
  0x72   : > { %12159 = vmatmul.mubr.f32.vlgmr.msra.gmra.mrb[34].mxu0 %v14136_v51 }
  0x73   : > { %12161 = vmatprep.mubr.msk.f32.mxu0 %vm13866_vm1, %v13865_v1  ;;  %12179 = vmatpush3.msra.mxu0 %v14163_v58 }
  0x74   : > { %12200 = vmatprep.subr.mxu0 %v13865_v1  ;;  %12214 = vmatmul.mubr.f32.vlgmr.msra.gmra.mrb[38].mxu1 %v1728_v21 }
  0x75   : > { %12216 = vmatprep.mubr.msk.f32.mxu1 %vm13866_vm1, %v13865_v1  ;;  %12234 = vmatpush3.msra.mxu1 %v14163_v58 }
  0x76   : > { %12162 = vmatmul.mubr.f32.gmra.mrb[36].mxu0 %v14153_v55  ;;  %12255 = vmatprep.subr.mxu1 %v13865_v1 }
  0x77   : > { %12164 = vmatprep.mubr.msk.f32.mxu0 %vm13866_vm1, %v13865_v1 }
  0x78   : > { %12217 = vmatmul.mubr.f32.gmra.mrb[40].mxu1 %v1738_v25 }
  0x79   : > { %12219 = vmatprep.mubr.msk.f32.mxu1 %vm13866_vm1, %v13865_v1 }
  0x7a   : > { %12165 = vmatmul.mubr.f32.gmra.mrb[38].mxu0 %v14167_v60 }
  0x7b   : > { %12180 = vmatprep.mubr.msk.f32.mxu0 %vm13866_vm1, %v13865_v1 }
  0x7c   : > { %12220 = vmatmul.mubr.f32.gmra.mrb[42].mxu1 %v1748_v30 }
  0x7d   : > { %12235 = vmatprep.mubr.msk.f32.mxu1 %vm13866_vm1, %v13865_v1 }
  0x7e   : > { %12181 = vmatmul.mubr.f32.vlgmr.msra.gmra.mrb[40].mxu0 %v1730_v28 }
  0x7f   : > { %12183 = vmatprep.mubr.msk.f32.mxu0 %vm13866_vm1, %v13865_v1  ;;  %12201 = vmatpush3.msra.mxu0 %v14175_v61 }
  0x80   : > { %12222 = vmatprep.subr.mxu0 %v13865_v1  ;;  %12236 = vmatmul.mubr.f32.vlgmr.msra.gmra.mrb[44].mxu1 %v14221_v13 }
  0x81   : > { %12238 = vmatprep.mubr.msk.f32.mxu1 %vm13866_vm1, %v13865_v1  ;;  %12256 = vmatpush3.msra.mxu1 %v2312_v31 }
  0x82   : > { %12184 = vmatmul.mubr.f32.gmra.mrb[42].mxu0 %v1740_v32  ;;  %12277 = vmatprep.subr.mxu1 %v13865_v1 }
  0x83   : > { %12186 = vmatprep.mubr.msk.f32.mxu0 %vm13866_vm1, %v13865_v1 }
  0x84   : > { %12239 = vmatmul.mubr.f32.gmra.mrb[46].mxu1 %v14236_v15 }
  0x85   : > { %12241 = vmatprep.mubr.msk.f32.mxu1 %vm13866_vm1, %v13865_v1 }
  0x86   : > { %12187 = vmatmul.mubr.f32.gmra.mrb[44].mxu0 %v1750_v34 }
  0x87   : > { %12202 = vmatprep.mubr.msk.f32.mxu0 %vm13866_vm1, %v13865_v1 }
  0x88   : > { %12242 = vmatmul.mubr.f32.gmra.mrb[48].mxu1 %v14250_v19 }
  0x89   : > { %12257 = vmatprep.mubr.msk.f32.mxu1 %vm13866_vm1, %v13865_v1 }
  0x8a   : > { %12203 = vmatmul.mubr.f32.vlgmr.msra.gmra.mrb[46].mxu0 %v1727_v18  ;;  %v2775_v18 = vld [vmem:[%s15410_s3 + $0x8] sm:$0xff] }
  0x8b   : > { %12205 = vmatprep.mubr.msk.f32.mxu0 %vm13866_vm1, %v13865_v1  ;;  %12223 = vmatpush3.msra.mxu0 %v1759_v0  ;;  %v14389_v21 = vand.u32 4294901760, %v2775_v18 }
  0x8c   : > { %12244 = vmatprep.subr.mxu0 %v13865_v1  ;;  %12258 = vmatmul.mubr.f32.vlgmr.msra.gmra.mrb[50].mxu1 %v14306_v35 }
  0x8d   : > { %12260 = vmatprep.mubr.msk.f32.mxu1 %vm13866_vm1, %v13865_v1  ;;  %12278 = vmatpush3.msra.mxu1 %v14245_v17  ;;  %v14392_v25 = vsub.f32 %v2775_v18, %v14389_v21 }
  0x8e   : > { %12206 = vmatmul.mubr.f32.gmra.mrb[48].mxu0 %v1737_v22  ;;  %12299 = vmatprep.subr.mxu1 %v13865_v1 }
  0x8f   : > { %12208 = vmatprep.mubr.msk.f32.mxu0 %vm13866_vm1, %v13865_v1  ;;  %v2884_v29 = vand.u32 4294901760, %v14392_v25 }
  0x90   : > { %12261 = vmatmul.mubr.f32.gmra.mrb[52].mxu1 %v2287_v36 }
  0x91   : > { %12263 = vmatprep.mubr.msk.f32.mxu1 %vm13866_vm1, %v13865_v1  ;;  %v2885_v33 = vsub.f32 %v14392_v25, %v2884_v29 }
  0x92   : > { %12209 = vmatmul.mubr.f32.gmra.mrb[50].mxu0 %v1747_v26 }
  0x93   : > { %12224 = vmatprep.mubr.msk.f32.mxu0 %vm13866_vm1, %v13865_v1 }
  0x94   : > { %12264 = vmatmul.mubr.f32.gmra.mrb[54].mxu1 %v2297_v38 }
  0x95   : > { %12279 = vmatprep.mubr.msk.f32.mxu1 %vm13866_vm1, %v13865_v1 }
  0x96   : > { %12225 = vmatmul.mubr.f32.vlgmr.msra.gmra.mrb[52].mxu0 %v14221_v13 }
  0x97   : > { %12227 = vmatprep.mubr.msk.f32.mxu0 %vm13866_vm1, %v13865_v1  ;;  %12245 = vmatpush3.msra.mxu0 %v14245_v17 }
  0x98   : > { %12266 = vmatprep.subr.mxu0 %v13865_v1  ;;  %12280 = vmatmul.mubr.f32.vlgmr.msra.gmra.mrb[56].mxu1 %v2279_v39 }
  0x99   : > { %12282 = vmatprep.mubr.msk.f32.mxu1 %vm13866_vm1, %v13865_v1  ;;  %12300 = vmatpush3.msra.mxu1 %v14245_v17 }
  0x9a   : > { %12228 = vmatmul.mubr.f32.gmra.mrb[54].mxu0 %v14236_v15  ;;  %12321 = vmatprep.subr.mxu1 %v13865_v1 }
  0x9b   : > { %12230 = vmatprep.mubr.msk.f32.mxu0 %vm13866_vm1, %v13865_v1 }
  0x9c   : > { %12283 = vmatmul.mubr.f32.gmra.mrb[58].mxu1 %v2289_v42 }
  0x9d   : > { %12285 = vmatprep.mubr.msk.f32.mxu1 %vm13866_vm1, %v13865_v1 }
  0x9e   : > { %12231 = vmatmul.mubr.f32.gmra.mrb[56].mxu0 %v14250_v19 }
  0x9f   : > { %12246 = vmatprep.mubr.msk.f32.mxu0 %vm13866_vm1, %v13865_v1 }
  0xa0   : > { %12286 = vmatmul.mubr.f32.gmra.mrb[60].mxu1 %v2299_v47 }
  0xa1   : > { %12301 = vmatprep.mubr.msk.f32.mxu1 %vm13866_vm1, %v13865_v1 }
  0xa2   : > { %12247 = vmatmul.mubr.f32.vlgmr.msra.gmra.mrb[58].mxu0 %v2281_v44 }
  0xa3   : > { %12249 = vmatprep.mubr.msk.f32.mxu0 %vm13866_vm1, %v13865_v1  ;;  %12267 = vmatpush3.msra.mxu0 %v14258_v20 }
  0xa4   : > { %12288 = vmatprep.subr.mxu0 %v13865_v1  ;;  %12302 = vmatmul.mubr.f32.vlgmr.msra.gmra.mrb[62].mxu1 %v14306_v35 }
  0xa5   : > { %12304 = vmatprep.mubr.msk.f32.mxu1 %vm13866_vm1, %v13865_v1 }
  0xa6   : > { %12250 = vmatmul.mubr.f32.gmra.mrb[60].mxu0 %v2291_v45 }
  0xa7   : > { %12252 = vmatprep.mubr.msk.f32.mxu0 %vm13866_vm1, %v13865_v1 }
  0xa8   : > { %12305 = vmatmul.mubr.f32.gmra.mrb[64].mxu1 %v2287_v36 }
  0xa9   : > { %12307 = vmatprep.mubr.msk.f32.mxu1 %vm13866_vm1, %v13865_v1 }
  0xaa   : > { %12253 = vmatmul.mubr.f32.gmra.mrb[62].mxu0 %v2301_v49 }
  0xab   : > { %12268 = vmatprep.mubr.msk.f32.mxu0 %vm13866_vm1, %v13865_v1 }
  0xac   : > { %12308 = vmatmul.mubr.f32.gmra.mrb[66].mxu1 %v2297_v38 }
  0xad   : > { %12323 = vmatprep.mubr.msk.f32.mxu1 %vm13866_vm1, %v13865_v1 }
  0xae   : > { %12269 = vmatmul.mubr.f32.vlgmr.msra.gmra.mrb[64].mxu0 %v2278_v37  ;;  %v2886_v37 = vand.u32 4294901760, %v2885_v33 }
  0xaf   : > { %12271 = vmatprep.mubr.msk.f32.mxu0 %vm13866_vm1, %v13865_v1  ;;  %12289 = vmatpush3.msra.mxu0 %v2310_v23 }
  0xb0   : > { %12310 = vmatprep.subr.mxu0 %v13865_v1  ;;  %12322 = vmatpush3.msra.mxu1 %v2886_v37 }
  0xb1   : > { %12343 = vmatprep.subr.mxu1 %v13865_v1 }
  0xb2   : > { %12272 = vmatmul.mubr.f32.gmra.mrb[66].mxu0 %v2288_v41 }
  0xb3   : > { %12274 = vmatprep.mubr.msk.f32.mxu0 %vm13866_vm1, %v13865_v1 }
  0xb6   : > { %12275 = vmatmul.mubr.f32.gmra.mrb[68].mxu0 %v2298_v43 }
  0xb7   : > { %12290 = vmatprep.mubr.msk.f32.mxu0 %vm13866_vm1, %v13865_v1 }
  0xba   : > { %12291 = vmatmul.mubr.f32.vlgmr.msra.gmra.mrb[70].mxu0 %v14306_v35 }
  0xbb   : > { %12293 = vmatprep.mubr.msk.f32.mxu0 %vm13866_vm1, %v13865_v1  ;;  %12311 = vmatpush3.msra.mxu0 %v14389_v21 }
  0xbc   : > { %12332 = vmatprep.subr.mxu0 %v13865_v1 }
  0xbe   : > { %12294 = vmatmul.mubr.f32.gmra.mrb[72].mxu0 %v2287_v36 }
  0xbf   : > { %12296 = vmatprep.mubr.msk.f32.mxu0 %vm13866_vm1, %v13865_v1 }
  0xc2   : > { %12297 = vmatmul.mubr.f32.gmra.mrb[74].mxu0 %v2297_v38 }
  0xc3   : > { %12312 = vmatprep.mubr.msk.f32.mxu0 %vm13866_vm1, %v13865_v1 }
  0xfb   : > { %v748_v50 = vpop.f32.mrb[0].mxu1 }
  0xfc   : > { %v12067_v51 = vpop.f32.mrb[1].mxu1 }
  0xff   : > { %v910_v52 = vpop.f32.mrb[2].mxu1 }
 0x100   : > { %v12083_v53 = vpop.f32.mrb[3].mxu1 }
 0x101   : > { %v640_v54 = vpop.f32.mrb[0].mxu0 }
 0x102   : > { %v12050_v55 = vpop.f32.mrb[1].mxu0 }
 0x103   : > { %v918_v56 = vpop.f32.mrb[4].mxu1 }
 0x104   : > { %v12086_v57 = vpop.f32.mrb[5].mxu1 }
 0x105   : > { %v650_v58 = vpop.f32.mrb[2].mxu0 }
 0x106   : > { %v12053_v59 = vpop.f32.mrb[3].mxu0 }
 0x107   : > { %v926_v60 = vpop.f32.mrb[6].mxu1 }
 0x108   : > { %v12089_v61 = vpop.f32.mrb[7].mxu1 }
 0x109   : > { %v660_v62 = vpop.f32.mrb[4].mxu0 }
 0x10a   : > { %v749_v63 = vadd.f32 %v748_v50, %v660_v62  ;;  %v12056_v0 = vpop.f32.mrb[5].mxu0 }
 0x10b   : > { %v1084_v2 = vpop.f32.mrb[8].mxu1 }
 0x10c   : > { %v12105_v3 = vpop.f32.mrb[9].mxu1 }
 0x10d   : > { %v736_v4 = vpop.f32.mrb[6].mxu0 }
 0x10e   : > { %v737_v5 = vadd.f32 %v736_v4, %v640_v54  ;;  %v12061_v6 = vpop.f32.mrb[7].mxu0 }
 0x10f   : > { %v1090_v7 = vpop.f32.mrb[10].mxu1 }
 0x110   : > { %v12108_v8 = vpop.f32.mrb[11].mxu1 }
 0x111   : > { %v742_v9 = vpop.f32.mrb[8].mxu0 }
 0x112   : > { %v743_v10 = vadd.f32 %v742_v9, %v650_v58  ;;  %v12064_v11 = vpop.f32.mrb[9].mxu0 }
 0x113   : > { %v1096_v12 = vpop.f32.mrb[12].mxu1 }
 0x114   : > { %v12111_v13 = vpop.f32.mrb[13].mxu1 }
 0x115   : > { %v822_v14 = vpop.f32.mrb[10].mxu0 }
 0x116   : > { %v823_v15 = vadd.f32 %v822_v14, %v737_v5  ;;  %v12072_v16 = vpop.f32.mrb[11].mxu0 }
 0x117   : > { %v1280_v17 = vpop.f32.mrb[14].mxu1 }
 0x118   : > { %v911_v19 = vadd.f32 %v910_v52, %v823_v15  ;;  %v12127_v20 = vpop.f32.mrb[15].mxu1 }
 0x119   : > { %v829_v22 = vpop.f32.mrb[12].mxu0 }
 0x11a   : > { %v830_v23 = vadd.f32 %v829_v22, %v743_v10  ;;  %v12075_v24 = vpop.f32.mrb[13].mxu0 }
 0x11b   : > { %v1286_v26 = vpop.f32.mrb[16].mxu1 }
 0x11c   : > { %v919_v27 = vadd.f32 %v918_v56, %v830_v23  ;;  %v12130_v28 = vpop.f32.mrb[17].mxu1 }
 0x11d   : > { %v836_v30 = vpop.f32.mrb[14].mxu0 }
 0x11e   : > { %v837_v31 = vadd.f32 %v836_v30, %v749_v63  ;;  %v12078_v32 = vpop.f32.mrb[15].mxu0 }
 0x11f   : > { %v1292_v34 = vpop.f32.mrb[18].mxu1 }
 0x120   : > { %v927_v35 = vadd.f32 %v926_v60, %v837_v31  ;;  %v12133_v36 = vpop.f32.mrb[19].mxu1 }
 0x121   : > { %v1000_v38 = vpop.f32.mrb[16].mxu0 }
 0x122   : > { %v1001_v39 = vadd.f32 %v1000_v38, %v911_v19  ;;  %v12094_v41 = vpop.f32.mrb[17].mxu0 }
 0x123   : > { %v1454_v40 = vpop.f32.mrb[20].mxu1 }
 0x124   : > { %v1085_v42 = vadd.f32 %v1084_v2, %v1001_v39  ;;  %v12149_v43 = vpop.f32.mrb[21].mxu1 }
 0x125   : > { %v1006_v44 = vpop.f32.mrb[18].mxu0 }
 0x126   : > { %v1007_v46 = vadd.f32 %v1006_v44, %v919_v27  ;;  %v12097_v47 = vpop.f32.mrb[19].mxu0 }
 0x127   : > { %v1462_v45 = vpop.f32.mrb[22].mxu1 }
 0x128   : > { %v1091_v48 = vadd.f32 %v1090_v7, %v1007_v46  ;;  %v12152_v49 = vpop.f32.mrb[23].mxu1 }
 0x129   : > { %v1012_v50 = vpop.f32.mrb[20].mxu0 }
 0x12a   : > { %v1013_v51 = vadd.f32 %v1012_v50, %v927_v35  ;;  %v12100_v52 = vpop.f32.mrb[21].mxu0 }
 0x12b   : > { %v1470_v53 = vpop.f32.mrb[24].mxu1 }
 0x12c   : > { %v1097_v54 = vadd.f32 %v1096_v12, %v1013_v51  ;;  %v12155_v55 = vpop.f32.mrb[25].mxu1 }
 0x12d   : > { %v1184_v56 = vpop.f32.mrb[22].mxu0 }
 0x12e   : > { %v1185_v57 = vadd.f32 %v1184_v56, %v1085_v42  ;;  %v12116_v58 = vpop.f32.mrb[23].mxu0 }
 0x12f   : > { %v1628_v59 = vpop.f32.mrb[26].mxu1 }
 0x130   : > { %v1281_v60 = vadd.f32 %v1280_v17, %v1185_v57  ;;  %v12171_v61 = vpop.f32.mrb[27].mxu1 }
 0x131   : > { %v1194_v62 = vpop.f32.mrb[24].mxu0 }
 0x132   : > { %v1195_v63 = vadd.f32 %v1194_v62, %v1091_v48  ;;  %v12119_v0 = vpop.f32.mrb[25].mxu0 }
 0x133   : > { %v1634_v2 = vpop.f32.mrb[28].mxu1 }
 0x134   : > { %v1287_v3 = vadd.f32 %v1286_v26, %v1195_v63  ;;  %v12174_v4 = vpop.f32.mrb[29].mxu1 }
 0x135   : > { %v1204_v5 = vpop.f32.mrb[26].mxu0 }
 0x136   : > { %v1205_v6 = vadd.f32 %v1204_v5, %v1097_v54  ;;  %v12122_v7 = vpop.f32.mrb[27].mxu0 }
 0x137   : > { %v1640_v8 = vpop.f32.mrb[30].mxu1 }
 0x138   : > { %v1293_v9 = vadd.f32 %v1292_v34, %v1205_v6  ;;  %v12177_v10 = vpop.f32.mrb[31].mxu1 }
 0x139   : > { %v1366_v11 = vpop.f32.mrb[28].mxu0 }
 0x13a   : > { %v1367_v12 = vadd.f32 %v1366_v11, %v1281_v60  ;;  %v12138_v13 = vpop.f32.mrb[29].mxu0 }
 0x13b   : > { %v1828_v14 = vpop.f32.mrb[32].mxu1 }
 0x13c   : > { %v1455_v15 = vadd.f32 %v1454_v40, %v1367_v12  ;;  %v12193_v16 = vpop.f32.mrb[33].mxu1 }
 0x13d   : > { %v1373_v17 = vpop.f32.mrb[30].mxu0 }
 0x13e   : > { %v1374_v18 = vadd.f32 %v1373_v17, %v1287_v3  ;;  %v12141_v19 = vpop.f32.mrb[31].mxu0 }
 0x13f   : > { %v1834_v20 = vpop.f32.mrb[34].mxu1 }
 0x140   : > { %v1463_v22 = vadd.f32 %v1462_v45, %v1374_v18  ;;  %v12196_v23 = vpop.f32.mrb[35].mxu1 }
 0x141   : > { %v1380_v24 = vpop.f32.mrb[32].mxu0 }
 0x142   : > { %v1381_v26 = vadd.f32 %v1380_v24, %v1293_v9  ;;  %v12144_v27 = vpop.f32.mrb[33].mxu0 }
 0x143   : > { %v1840_v28 = vpop.f32.mrb[36].mxu1 }
 0x144   : > { %v1471_v30 = vadd.f32 %v1470_v53, %v1381_v26  ;;  %v12199_v31 = vpop.f32.mrb[37].mxu1 }
 0x145   : > { %v1544_v32 = vpop.f32.mrb[34].mxu0 }
 0x146   : > { %v1545_v33 = vadd.f32 %v1544_v32, %v1455_v15  ;;  %v12160_v34 = vpop.f32.mrb[35].mxu0 }
 0x147   : > { %v2002_v35 = vpop.f32.mrb[38].mxu1 }
 0x148   : > { %v1629_v36 = vadd.f32 %v1628_v59, %v1545_v33  ;;  %v12215_v37 = vpop.f32.mrb[39].mxu1 }
 0x149   : > { %v1550_v38 = vpop.f32.mrb[36].mxu0 }
 0x14a   : > { %v1551_v39 = vadd.f32 %v1550_v38, %v1463_v22  ;;  %v12163_v41 = vpop.f32.mrb[37].mxu0 }
 0x14b   : > { %v2010_v40 = vpop.f32.mrb[40].mxu1 }
 0x14c   : > { %v1635_v42 = vadd.f32 %v1634_v2, %v1551_v39  ;;  %v12218_v43 = vpop.f32.mrb[41].mxu1 }
 0x14d   : > { %v1556_v44 = vpop.f32.mrb[38].mxu0 }
 0x14e   : > { %v1557_v46 = vadd.f32 %v1556_v44, %v1471_v30  ;;  %v12166_v47 = vpop.f32.mrb[39].mxu0 }
 0x14f   : > { %v2018_v45 = vpop.f32.mrb[42].mxu1 }
 0x150   : > { %v1641_v48 = vadd.f32 %v1640_v8, %v1557_v46  ;;  %v12221_v49 = vpop.f32.mrb[43].mxu1 }
 0x151   : > { %v1732_v50 = vpop.f32.mrb[40].mxu0 }
 0x152   : > { %v1829_v51 = vadd.f32 %v1828_v14, %v1732_v50  ;;  %v12182_v52 = vpop.f32.mrb[41].mxu0 }
 0x153   : > { %v2176_v53 = vpop.f32.mrb[44].mxu1 }
 0x154   : > { %v12237_v54 = vpop.f32.mrb[45].mxu1 }
 0x155   : > { %v1742_v55 = vpop.f32.mrb[42].mxu0 }
 0x156   : > { %v1835_v56 = vadd.f32 %v1834_v20, %v1742_v55  ;;  %v12185_v57 = vpop.f32.mrb[43].mxu0 }
 0x157   : > { %v2182_v58 = vpop.f32.mrb[46].mxu1 }
 0x158   : > { %v12240_v59 = vpop.f32.mrb[47].mxu1 }
 0x159   : > { %v1752_v60 = vpop.f32.mrb[44].mxu0 }
 0x15a   : > { %v1841_v61 = vadd.f32 %v1840_v28, %v1752_v60  ;;  %v12188_v62 = vpop.f32.mrb[45].mxu0 }
 0x15b   : > { %v2188_v63 = vpop.f32.mrb[48].mxu1 }
 0x15c   : > { %v12243_v0 = vpop.f32.mrb[49].mxu1 }
 0x15d   : > { %v1914_v2 = vpop.f32.mrb[46].mxu0 }
 0x15e   : > { %v1915_v3 = vadd.f32 %v1914_v2, %v1829_v51  ;;  %v12204_v4 = vpop.f32.mrb[47].mxu0 }
 0x15f   : > { %v2379_v5 = vpop.f32.mrb[50].mxu1 }
 0x160   : > { %v2003_v6 = vadd.f32 %v2002_v35, %v1915_v3  ;;  %v12259_v7 = vpop.f32.mrb[51].mxu1 }
 0x161   : > { %v1921_v8 = vpop.f32.mrb[48].mxu0 }
 0x162   : > { %v1922_v9 = vadd.f32 %v1921_v8, %v1835_v56  ;;  %v12207_v10 = vpop.f32.mrb[49].mxu0 }
 0x163   : > { %v2385_v11 = vpop.f32.mrb[52].mxu1 }
 0x164   : > { %v2011_v12 = vadd.f32 %v2010_v40, %v1922_v9  ;;  %v12262_v13 = vpop.f32.mrb[53].mxu1 }
 0x165   : > { %v1928_v14 = vpop.f32.mrb[50].mxu0 }
 0x166   : > { %v1929_v15 = vadd.f32 %v1928_v14, %v1841_v61  ;;  %v12210_v16 = vpop.f32.mrb[51].mxu0 }
 0x167   : > { %v2391_v17 = vpop.f32.mrb[54].mxu1 }
 0x168   : > { %v2019_v18 = vadd.f32 %v2018_v45, %v1929_v15  ;;  %v12265_v19 = vpop.f32.mrb[55].mxu1 }
 0x169   : > { %v2092_v20 = vpop.f32.mrb[52].mxu0 }
 0x16a   : > { %v2093_v22 = vadd.f32 %v2092_v20, %v2003_v6  ;;  %v12226_v23 = vpop.f32.mrb[53].mxu0 }
 0x16b   : > { %v2553_v24 = vpop.f32.mrb[56].mxu1 }
 0x16c   : > { %v2177_v26 = vadd.f32 %v2176_v53, %v2093_v22  ;;  %v12281_v27 = vpop.f32.mrb[57].mxu1 }
 0x16d   : > { %v2098_v28 = vpop.f32.mrb[54].mxu0 }
 0x16e   : > { %v2192_v30 = vadd.f32 %v2177_v26, %v1629_v36  ;;  %v2099_v31 = vadd.f32 %v2098_v28, %v2011_v12  ;;  %v12229_v32 = vpop.f32.mrb[55].mxu0  ;;  %v11507_v12 = vld [vmem:[%s15411_s2] ss:$0 sm:$0xff]  ;;  %s539_s2 = sand.u32 1, %s13855_s25  }
 0x16f   : > { %v2561_v33 = vpop.f32.mrb[58].mxu1  ;;  %s540_s0 = scalar_lea.vmem [#allocation4], %s539_s2  ;;  %s11435_s22 = scalar_lea.sflag [#allocation5], %s539_s2 }
 0x170   : > { %v2183_v34 = vadd.f32 %v2182_v58, %v2099_v31  ;;  %v12284_v35 = vpop.f32.mrb[59].mxu1  ;;  %s11447_s29 = sshll.u32 %s540_s0, 4  ;;  %s15336_s29 = int_to_ptr.vmem [resolvable:$true] %s11447_s29 }
 0x171   : > { %v2104_v37 = vpop.f32.mrb[56].mxu0  ;;  %p13808_p0 = scmp.lt.s32.totalorder %s15336_s29, %s13806_s26 }
 0x172   : > { %v2193_v38 = vadd.f32 %v2183_v34, %v1635_v42  ;;  %v2105_v39 = vadd.f32 %v2104_v37, %v2019_v18  ;;  %v12232_v41 = vpop.f32.mrb[57].mxu0 }
 0x173   : > { %v2569_v40 = vpop.f32.mrb[60].mxu1 }
 0x174   : > { %v2189_v43 = vadd.f32 %v2188_v63, %v2105_v39  ;;  %v12287_v44 = vpop.f32.mrb[61].mxu1 }
 0x175   : > { %v2283_v46 = vpop.f32.mrb[58].mxu0 }
 0x176   : > { %v2194_v47 = vadd.f32 %v2189_v43, %v1641_v48  ;;  %v2380_v45 = vadd.f32 %v2379_v5, %v2283_v46  ;;  %v12248_v49 = vpop.f32.mrb[59].mxu0  ;;  %v2771_v43 = vld [vmem:[%s15410_s3] sm:$0xff] }
 0x177   : > { %v2727_v50 = vpop.f32.mrb[62].mxu1 }
 0x178   : > { %v12303_v51 = vpop.f32.mrb[63].mxu1 }
 0x179   : > { %v2293_v52 = vpop.f32.mrb[60].mxu0 }
 0x17a   : > { %v2386_v36 = vadd.f32 %v2385_v11, %v2293_v52  ;;  %v12251_v53 = vpop.f32.mrb[61].mxu0  ;;  %v14429_v52 = vand.u32 4294901760, %v2771_v43 }
 0x17b   : > { %v2733_v54 = vpop.f32.mrb[64].mxu1 }
 0x17c   : > { %v12306_v55 = vpop.f32.mrb[65].mxu1 }
 0x17d   : > { %v2303_v56 = vpop.f32.mrb[62].mxu0 }
 0x17e   : > { %v2392_v57 = vadd.f32 %v2391_v17, %v2303_v56  ;;  %v12254_v58 = vpop.f32.mrb[63].mxu0  ;;  %v14439_v56 = vsub.f32 %v2771_v43, %v14429_v52 }
 0x17f   : > { %v2739_v42 = vpop.f32.mrb[66].mxu1 }
 0x180   : > { %v12309_v59 = vpop.f32.mrb[67].mxu1 }
 0x181   : > { %v2465_v60 = vpop.f32.mrb[64].mxu0 }
 0x182   : > { %v2466_v61 = vadd.f32 %v2465_v60, %v2380_v45  ;;  %v12270_v62 = vpop.f32.mrb[65].mxu0 }
 0x184   : > { %v2554_v63 = vadd.f32 %v2553_v24, %v2466_v61 }
 0x185   : > { %v2472_v0 = vpop.f32.mrb[66].mxu0 }
 0x186   : > { %v2473_v48 = vadd.f32 %v2472_v0, %v2386_v36  ;;  %v12273_v2 = vpop.f32.mrb[67].mxu0 }
 0x188   : > { %v2562_v3 = vadd.f32 %v2561_v33, %v2473_v48 }
 0x189   : > { %v2479_v4 = vpop.f32.mrb[68].mxu0 }
 0x18a   : > { %v2480_v5 = vadd.f32 %v2479_v4, %v2392_v57  ;;  %v12276_v6 = vpop.f32.mrb[69].mxu0 }
 0x18c   : > { %v2570_v7 = vadd.f32 %v2569_v40, %v2480_v5 }
 0x18d   : > { %v2643_v8 = vpop.f32.mrb[70].mxu0 }
 0x18e   : > { %v2644_v9 = vadd.f32 %v2643_v8, %v2554_v63  ;;  %v12292_v10 = vpop.f32.mrb[71].mxu0 }
 0x190   : > { %v2728_v11 = vadd.f32 %v2727_v50, %v2644_v9  ;;  %v3861_v9 = vld [vmem:[%s15410_s3 + $0x10] sm:$0xff] }
 0x191   : > { %v2649_v13 = vpop.f32.mrb[72].mxu0 }
 0x192   : > { %v2743_v14 = vadd.f32 %v2728_v11, %v2192_v30  ;;  %v2650_v15 = vadd.f32 %v2649_v13, %v2562_v3  ;;  %v12295_v16 = vpop.f32.mrb[73].mxu0  ;;  %v14511_v13 = vand.u32 4294901760, %v3861_v9 }
 0x194   : > { %v2753_v17 = vadd.f32 %v11507_v12, %v2743_v14  ;;  %v2734_v18 = vadd.f32 %v2733_v54, %v2650_v15  ;;  %v14520_v16 = vsub.f32 %v3861_v9, %v14511_v13 }
 0x195   : > { %v2655_v19 = vpop.f32.mrb[74].mxu0 }
 0x196   : > { %v2756_v20 = vmax.f32 %v2753_v17, 0.0  ;;  %v2744_v22 = vadd.f32 %v2734_v18, %v2193_v38  ;;  %v2656_v23 = vadd.f32 %v2655_v19, %v2570_v7  ;;  %v12298_v24 = vpop.f32.mrb[75].mxu0  ;;  %v3970_v18 = vand.u32 4294901760, %v14520_v16 }
 0x198   : > { %2764 = vst.msk [vmem:[#allocation2 + $0x1] sm:$0xff] %vm2759_vm3, %v2756_v20  ;;  %v2754_v26 = vadd.f32 %v11507_v12, %v2744_v22  ;;  %v2740_v27 = vadd.f32 %v2739_v42, %v2656_v23  ;;  %v3425_v42 = vand.u32 4294901760, %v14439_v56  ;;  %v3971_v19 = vsub.f32 %v14520_v16, %v3970_v18 }
 0x19a   : > { %v2757_v28 = vmax.f32 %v2754_v26, 0.0  ;;  %v2745_v31 = vadd.f32 %v2740_v27, %v2194_v47  ;;  %v3426_v59 = vsub.f32 %v14439_v56, %v3425_v42  ;;  %v3972_v22 = vand.u32 4294901760, %v3971_v19 }
 0x19c   : > { %v2755_v32 = vadd.f32 %v11507_v12, %v2745_v31  ;;  %2765 = vst.msk [vmem:[#allocation2 + $0x9] sm:$0xff] %vm2759_vm3, %v2757_v28 }
 0x19e   : > { %v2758_v30 = vmax.f32 %v2755_v32, 0.0 }
 0x19f   : > { %v2772_v33 = vld [vmem:[#allocation2 + $0x1] sm:$0xff] }
 0x1a0   : > { %2767 = vst.msk [vmem:[#allocation2 + $0x11] sm:$0x3] %vm2766_vm5, %v2758_v30  ;;  %v2777_v34 = vsel %vm2759_vm3, %v2772_v33, 0  ;;  %v2768_v60 = vld [vmem:[#allocation2] sm:$0xff] }
 0x1a1   : > { %v14408_v35 = vand.u32 4294901760, %v2777_v34  ;;  %v3318_v61 = vsel %vm2759_vm3, %v2768_v60, 0 }
 0x1a2   : > { %v14469_v63 = vand.u32 4294901760, %v3318_v61 }
 0x1a3   : > { %v2852_v37 = vsub.f32 %v2777_v34, %v14408_v35  ;;  %12324 = vmatmul.mubr.f32.vlgmr.msra.gmra.mrb[68].mxu1 %v14408_v35  ;;  %v2773_v38 = vld [vmem:[#allocation2 + $0x9] sm:$0xff] }
 0x1a4   : > { %12326 = vmatprep.mubr.msk.f32.mxu1 %vm13866_vm1, %v13865_v1  ;;  %v2780_v39 = vsel %vm2759_vm3, %v2773_v38, 0  ;;  %12344 = vmatpush3.msra.mxu1 %v14389_v21  ;;  %v2769_v62 = vld [vmem:[#allocation2 + $0x8] sm:$0xff]  ;;  %v3393_v0 = vsub.f32 %v3318_v61, %v14469_v63 }
 0x1a5   : > { %v14416_v41 = vand.u32 4294901760, %v2780_v39  ;;  %v2853_v40 = vand.u32 4294901760, %v2852_v37  ;;  %12365 = vmatprep.subr.mxu1 %v13865_v1  ;;  %v3858_v20 = vld [vmem:[#allocation2 + $0x2] sm:$0xff] }
 0x1a6   : > { %v3394_v3 = vand.u32 4294901760, %v3393_v0  ;;  %v3863_v23 = vsel %vm2759_vm3, %v3858_v20, 0 }
 0x1a7   : > { %12327 = vmatmul.mubr.f32.gmra.mrb[70].mxu1 %v14416_v41  ;;  %v2854_v44 = vsub.f32 %v2852_v37, %v2853_v40  ;;  %v2774_v46 = vld [vmem:[#allocation2 + $0x11] sm:$0x1]  ;;  %v2862_v47 = vsub.f32 %v2780_v39, %v14416_v41  ;;  %v14550_v26 = vand.u32 4294901760, %v3863_v23  ;;  %v3860_v28 = vld [vmem:[#allocation2 + $0x12] sm:$0x1] }
 0x1a8   : > { %12329 = vmatprep.mubr.msk.f32.mxu1 %vm13866_vm1, %v13865_v1  ;;  %v2783_v45 = vsel %vm2759_vm3, %v2774_v46, 0  ;;  %v3395_v6 = vsub.f32 %v3393_v0, %v3394_v3  ;;  %v3859_v24 = vld [vmem:[#allocation2 + $0xa] sm:$0xff]  ;;  %v3869_v30 = vsel %vm2759_vm3, %v3860_v28, 0 }
 0x1a9   : > { %v2855_v49 = vand.u32 4294901760, %v2854_v44  ;;  %v14427_v50 = vand.u32 4294901760, %v2783_v45  ;;  %v2863_v51 = vand.u32 4294901760, %v2862_v47  ;;  %v3866_v27 = vsel %vm2759_vm3, %v3859_v24, 0 }
 0x1aa   : > { %v3396_v10 = vand.u32 4294901760, %v3395_v6  ;;  %v3938_v31 = vsub.f32 %v3863_v23, %v14550_v26  ;;  %v14560_v32 = vand.u32 4294901760, %v3866_v27  ;;  %v14570_v34 = vand.u32 4294901760, %v3869_v30 }
 0x1ab   : > { %12313 = vmatmul.mubr.f32.vlgmr.msra.gmra.mrb[76].mxu0 %v2855_v49  ;;  %12330 = vmatmul.mubr.f32.gmra.mrb[72].mxu1 %v14427_v50  ;;  %v2864_v36 = vsub.f32 %v2862_v47, %v2863_v51  ;;  %v2872_v53 = vsub.f32 %v2783_v45, %v14427_v50 }
 0x1ac   : > { %12315 = vmatprep.mubr.msk.f32.mxu0 %vm13866_vm1, %v13865_v1  ;;  %12345 = vmatprep.mubr.msk.f32.mxu1 %vm13866_vm1, %v13865_v1  ;;  %v3939_v33 = vand.u32 4294901760, %v3938_v31  ;;  %v3958_v39 = vsub.f32 %v3869_v30, %v14570_v34 }
 0x1ad   : > { %v2865_v54 = vand.u32 4294901760, %v2864_v36  ;;  %v2873_v55 = vand.u32 4294901760, %v2872_v53  ;;  %12333 = vmatpush3.msra.mxu0 %v14392_v25  ;;  %v3321_v25 = vsel %vm2759_vm3, %v2769_v62, 0  ;;  %v4406_v36 = vld [vmem:[#allocation2 + $0x3] sm:$0xff] }
 0x1ae   : > { %12354 = vmatprep.subr.mxu0 %v13865_v1  ;;  %v14479_v48 = vand.u32 4294901760, %v3321_v25  ;;  %v3959_v44 = vand.u32 4294901760, %v3958_v39 }
 0x1af   : > { %12316 = vmatmul.mubr.f32.gmra.mrb[78].mxu0 %v2865_v54  ;;  %12346 = vmatmul.mubr.f32.vlgmr.msra.gmra.mrb[74].mxu1 %v2853_v40  ;;  %v2874_v57 = vsub.f32 %v2872_v53, %v2873_v55  ;;  %v4411_v54 = vsel %vm2759_vm3, %v4406_v36, 0 }
 0x1b0   : > { %12318 = vmatprep.mubr.msk.f32.mxu0 %vm13866_vm1, %v13865_v1  ;;  %12348 = vmatprep.mubr.msk.f32.mxu1 %vm13866_vm1, %v13865_v1  ;;  %v3403_v5 = vsub.f32 %v3321_v25, %v14479_v48  ;;  %v3960_v45 = vsub.f32 %v3958_v39, %v3959_v44 }
 0x1b1   : > { %v2875_v58 = vand.u32 4294901760, %v2874_v57  ;;  %12366 = vmatpush3.msra.mxu1 %v14389_v21  ;;  %v3427_v21 = vand.u32 4294901760, %v3426_v59  ;;  %v4408_v57 = vld [vmem:[#allocation2 + $0x13] sm:$0x1] }
 0x1b2   : > { %12387 = vmatprep.subr.mxu1 %v13865_v1  ;;  %v3404_v7 = vand.u32 4294901760, %v3403_v5 }
 0x1b3   : > { %12319 = vmatmul.mubr.f32.gmra.mrb[80].mxu0 %v2875_v58  ;;  %12349 = vmatmul.mubr.f32.gmra.mrb[76].mxu1 %v2863_v51 }
 0x1b4   : > { %12334 = vmatprep.mubr.msk.f32.mxu0 %vm13866_vm1, %v13865_v1  ;;  %12351 = vmatprep.mubr.msk.f32.mxu1 %vm13866_vm1, %v13865_v1  ;;  %v3405_v11 = vsub.f32 %v3403_v5, %v3404_v7 }
 0x1b6   : > { %v3406_v14 = vand.u32 4294901760, %v3405_v11 }
 0x1b7   : > { %12335 = vmatmul.mubr.f32.vlgmr.msra.gmra.mrb[82].mxu0 %v2852_v37  ;;  %12352 = vmatmul.mubr.f32.gmra.mrb[78].mxu1 %v2873_v55  ;;  %v3940_v37 = vsub.f32 %v3938_v31, %v3939_v33  ;;  %v4407_v55 = vld [vmem:[#allocation2 + $0xb] sm:$0xff] }
 0x1b8   : > { %12337 = vmatprep.mubr.msk.f32.mxu0 %vm13866_vm1, %v13865_v1  ;;  %12367 = vmatprep.mubr.msk.f32.mxu1 %vm13866_vm1, %v13865_v1  ;;  %v4414_v58 = vsel %vm2759_vm3, %v4407_v55, 0 }
 0x1b9   : > { %12355 = vmatpush3.msra.mxu0 %v2884_v29  ;;  %v2770_v29 = vld [vmem:[#allocation2 + $0x10] sm:$0x1]  ;;  %v3941_v40 = vand.u32 4294901760, %v3940_v37  ;;  %v4495_v60 = vand.u32 4294901760, %v4414_v58 }
 0x1ba   : > { %12376 = vmatprep.subr.mxu0 %v13865_v1  ;;  %v3324_v2 = vsel %vm2759_vm3, %v2770_v29, 0 }
 0x1bb   : > { %12338 = vmatmul.mubr.f32.gmra.mrb[84].mxu0 %v2862_v47  ;;  %12368 = vmatmul.mubr.f32.vlgmr.msra.gmra.mrb[80].mxu1 %v14408_v35  ;;  %v14489_v4 = vand.u32 4294901760, %v3324_v2  ;;  %v4496_v62 = vsub.f32 %v4414_v58, %v4495_v60 }
 0x1bc   : > { %12340 = vmatprep.mubr.msk.f32.mxu0 %vm13866_vm1, %v13865_v1  ;;  %12370 = vmatprep.mubr.msk.f32.mxu1 %vm13866_vm1, %v13865_v1 }
 0x1bd   : > { %12388 = vmatpush3.msra.mxu1 %v3427_v21  ;;  %v3413_v8 = vsub.f32 %v3324_v2, %v14489_v4  ;;  %v4497_v29 = vand.u32 4294901760, %v4496_v62 }
 0x1be   : > { %12409 = vmatprep.subr.mxu1 %v13865_v1 }
 0x1bf   : > { %12341 = vmatmul.mubr.f32.gmra.mrb[86].mxu0 %v2872_v53  ;;  %12371 = vmatmul.mubr.f32.gmra.mrb[82].mxu1 %v14416_v41  ;;  %v3414_v12 = vand.u32 4294901760, %v3413_v8  ;;  %v4498_v2 = vsub.f32 %v4496_v62, %v4497_v29 }
 0x1c0   : > { %12356 = vmatprep.mubr.msk.f32.mxu0 %vm13866_vm1, %v13865_v1  ;;  %12373 = vmatprep.mubr.msk.f32.mxu1 %vm13866_vm1, %v13865_v1 }
 0x1c1   : > { %v3415_v15 = vsub.f32 %v3413_v8, %v3414_v12 }
 0x1c3   : > { %12357 = vmatmul.mubr.f32.vlgmr.msra.gmra.mrb[88].mxu0 %v14408_v35  ;;  %12374 = vmatmul.mubr.f32.gmra.mrb[84].mxu1 %v14427_v50  ;;  %v3416_v17 = vand.u32 4294901760, %v3415_v15  ;;  %v3948_v35 = vsub.f32 %v3866_v27, %v14560_v32 }
 0x1c4   : > { %12359 = vmatprep.mubr.msk.f32.mxu0 %vm13866_vm1, %v13865_v1  ;;  %12389 = vmatprep.mubr.msk.f32.mxu1 %vm13866_vm1, %v13865_v1 }
 0x1c5   : > { %12377 = vmatpush3.msra.mxu0 %v14429_v52  ;;  %v3949_v38 = vand.u32 4294901760, %v3948_v35 }
 0x1c6   : > { %12398 = vmatprep.subr.mxu0 %v13865_v1 }
 0x1c7   : > { %12360 = vmatmul.mubr.f32.gmra.mrb[90].mxu0 %v14416_v41  ;;  %12390 = vmatmul.mubr.f32.vlgmr.msra.gmra.mrb[86].mxu1 %v14469_v63  ;;  %v4409_v41 = vld [vmem:[%s15410_s3 + $0x18] sm:$0xff]  ;;  %v3950_v43 = vsub.f32 %v3948_v35, %v3949_v38  ;;  %s13801_s3 = scalar_lea.vmem %s15336_s29, 16 }
 0x1c8   : > { %12362 = vmatprep.mubr.msk.f32.mxu0 %vm13866_vm1, %v13865_v1  ;;  %12392 = vmatprep.mubr.msk.f32.mxu1 %vm13866_vm1, %v13865_v1  ;;  %v14592_v46 = vand.u32 4294901760, %v4409_v41  ;;  %p13802_p11 = scmp.ne.s32.totalorder %s15336_s29, %s13801_s3 }
 0x1c9   : > { %12410 = vmatpush3.msra.mxu1 %v14429_v52  ;;  %v3951_v47 = vand.u32 4294901760, %v3950_v43 }
 0x1ca   : > { %12431 = vmatprep.subr.mxu1 %v13865_v1  ;;  %v14601_v49 = vsub.f32 %v4409_v41, %v14592_v46  ;;  %p13803_p12 = pnand %p13802_p11, %p13997_p5 }
 0x1cb   : > { %12363 = vmatmul.mubr.f32.gmra.mrb[92].mxu0 %v14427_v50  ;;  %12393 = vmatmul.mubr.f32.gmra.mrb[88].mxu1 %v14479_v48  ;;  %v3961_v50 = vand.u32 4294901760, %v3960_v45 }
 0x1cc   : > { %12378 = vmatprep.mubr.msk.f32.mxu0 %vm13866_vm1, %v13865_v1  ;;  %12395 = vmatprep.mubr.msk.f32.mxu1 %vm13866_vm1, %v13865_v1  ;;  %v4518_v51 = vand.u32 4294901760, %v14601_v49  ;;  %p13804_p13 = pneg %p13803_p12 }
 0x1cf   : > { %12379 = vmatmul.mubr.f32.vlgmr.msra.gmra.mrb[94].mxu0 %v3396_v10  ;;  %12396 = vmatmul.mubr.f32.gmra.mrb[90].mxu1 %v14489_v4 }
 0x1d0   : > { %12381 = vmatprep.mubr.msk.f32.mxu0 %vm13866_vm1, %v13865_v1  ;;  %12411 = vmatprep.mubr.msk.f32.mxu1 %vm13866_vm1, %v13865_v1 }
 0x1d1   : > { %12399 = vmatpush3.msra.mxu0 %v14439_v56  ;;  %v14631_v56 = vand.u32 4294901760, %v4411_v54 }
 0x1d2   : > { %12420 = vmatprep.subr.mxu0 %v13865_v1 }
 0x1d3   : > { %12382 = vmatmul.mubr.f32.gmra.mrb[96].mxu0 %v3406_v14  ;;  %12412 = vmatmul.mubr.f32.vlgmr.msra.gmra.mrb[92].mxu1 %v3394_v3  ;;  %v4486_v59 = vsub.f32 %v4411_v54, %v14631_v56 }
 0x1d4   : > { %12384 = vmatprep.mubr.msk.f32.mxu0 %vm13866_vm1, %v13865_v1  ;;  %12414 = vmatprep.mubr.msk.f32.mxu1 %vm13866_vm1, %v13865_v1 }
 0x1d5   : > { %12432 = vmatpush3.msra.mxu1 %v14429_v52  ;;  %v4519_v52 = vsub.f32 %v14601_v49, %v4518_v51  ;;  %v4487_v61 = vand.u32 4294901760, %v4486_v59 }
 0x1d6   : > { %12453 = vmatprep.subr.mxu1 %v13865_v1 }
 0x1d7   : > { %12385 = vmatmul.mubr.f32.gmra.mrb[98].mxu0 %v3416_v17  ;;  %12415 = vmatmul.mubr.f32.gmra.mrb[94].mxu1 %v3404_v7  ;;  %v4520_v53 = vand.u32 4294901760, %v4519_v52  ;;  %v4488_v25 = vsub.f32 %v4486_v59, %v4487_v61 }
 0x1d8   : > { %12400 = vmatprep.mubr.msk.f32.mxu0 %vm13866_vm1, %v13865_v1  ;;  %12417 = vmatprep.mubr.msk.f32.mxu1 %vm13866_vm1, %v13865_v1 }
 0x1db   : > { %12401 = vmatmul.mubr.f32.vlgmr.msra.gmra.mrb[100].mxu0 %v3393_v0  ;;  %12418 = vmatmul.mubr.f32.gmra.mrb[96].mxu1 %v3414_v12 }
 0x1dc   : > { %12403 = vmatprep.mubr.msk.f32.mxu0 %vm13866_vm1, %v13865_v1  ;;  %12433 = vmatprep.mubr.msk.f32.mxu1 %vm13866_vm1, %v13865_v1 }
 0x1dd   : > { %12421 = vmatpush3.msra.mxu0 %v3425_v42  ;;  %v4417_v42 = vsel %vm2759_vm3, %v4408_v57, 0 }
 0x1de   : > { %12442 = vmatprep.subr.mxu0 %v13865_v1  ;;  %v4505_v21 = vand.u32 4294901760, %v4417_v42 }
 0x1df   : > { %12404 = vmatmul.mubr.f32.gmra.mrb[102].mxu0 %v3403_v5  ;;  %12434 = vmatmul.mubr.f32.vlgmr.msra.gmra.mrb[98].mxu1 %v14469_v63 }
 0x1e0   : > { %12406 = vmatprep.mubr.msk.f32.mxu0 %vm13866_vm1, %v13865_v1  ;;  %12436 = vmatprep.mubr.msk.f32.mxu1 %vm13866_vm1, %v13865_v1 }
 0x1e1   : > { %12454 = vmatpush3.msra.mxu1 %v3972_v22 }
 0x1e2   : > { %12475 = vmatprep.subr.mxu1 %v13865_v1 }
 0x1e3   : > { %12407 = vmatmul.mubr.f32.gmra.mrb[104].mxu0 %v3413_v8  ;;  %12437 = vmatmul.mubr.f32.gmra.mrb[100].mxu1 %v14479_v48 }
 0x1e4   : > { %12422 = vmatprep.mubr.msk.f32.mxu0 %vm13866_vm1, %v13865_v1  ;;  %12439 = vmatprep.mubr.msk.f32.mxu1 %vm13866_vm1, %v13865_v1 }
 0x1e7   : > { %12423 = vmatmul.mubr.f32.vlgmr.msra.gmra.mrb[106].mxu0 %v14469_v63  ;;  %12440 = vmatmul.mubr.f32.gmra.mrb[102].mxu1 %v14489_v4  ;;  %v4506_v63 = vsub.f32 %v4417_v42, %v4505_v21 }
 0x1e8   : > { %12425 = vmatprep.mubr.msk.f32.mxu0 %vm13866_vm1, %v13865_v1  ;;  %12455 = vmatprep.mubr.msk.f32.mxu1 %vm13866_vm1, %v13865_v1 }
 0x1e9   : > { %12443 = vmatpush3.msra.mxu0 %v14511_v13  ;;  %v4507_v0 = vand.u32 4294901760, %v4506_v63 }
 0x1ea   : > { %12464 = vmatprep.subr.mxu0 %v13865_v1 }
 0x1eb   : > { %12426 = vmatmul.mubr.f32.gmra.mrb[108].mxu0 %v14479_v48  ;;  %12456 = vmatmul.mubr.f32.vlgmr.msra.gmra.mrb[104].mxu1 %v14550_v26  ;;  %v4489_v48 = vand.u32 4294901760, %v4488_v25  ;;  %v4508_v3 = vsub.f32 %v4506_v63, %v4507_v0 }
 0x1ec   : > { %12428 = vmatprep.mubr.msk.f32.mxu0 %vm13866_vm1, %v13865_v1  ;;  %12458 = vmatprep.mubr.msk.f32.mxu1 %vm13866_vm1, %v13865_v1 }
 0x1ed   : > { %12476 = vmatpush3.msra.mxu1 %v14511_v13  ;;  %v4509_v5 = vand.u32 4294901760, %v4508_v3 }
 0x1ee   : > { %12497 = vmatprep.subr.mxu1 %v13865_v1 }
 0x1ef   : > { %12429 = vmatmul.mubr.f32.gmra.mrb[110].mxu0 %v14489_v4  ;;  %12459 = vmatmul.mubr.f32.gmra.mrb[106].mxu1 %v14560_v32  ;;  %v4499_v4 = vand.u32 4294901760, %v4498_v2 }
 0x1f0   : > { %12444 = vmatprep.mubr.msk.f32.mxu0 %vm13866_vm1, %v13865_v1  ;;  %12461 = vmatprep.mubr.msk.f32.mxu1 %vm13866_vm1, %v13865_v1 }
 0x1f3   : > { %12445 = vmatmul.mubr.f32.vlgmr.msra.gmra.mrb[112].mxu0 %v3941_v40  ;;  %12462 = vmatmul.mubr.f32.gmra.mrb[108].mxu1 %v14570_v34 }
 0x1f4   : > { %12447 = vmatprep.mubr.msk.f32.mxu0 %vm13866_vm1, %v13865_v1  ;;  %12477 = vmatprep.mubr.msk.f32.mxu1 %vm13866_vm1, %v13865_v1 }
 0x1f5   : > { %12465 = vmatpush3.msra.mxu0 %v14520_v16 }
 0x1f6   : > { %12486 = vmatprep.subr.mxu0 %v13865_v1 }
 0x1f7   : > { %12448 = vmatmul.mubr.f32.gmra.mrb[114].mxu0 %v3951_v47  ;;  %12478 = vmatmul.mubr.f32.vlgmr.msra.gmra.mrb[110].mxu1 %v3939_v33 }
 0x1f8   : > { %12450 = vmatprep.mubr.msk.f32.mxu0 %vm13866_vm1, %v13865_v1  ;;  %12480 = vmatprep.mubr.msk.f32.mxu1 %vm13866_vm1, %v13865_v1 }
 0x1f9   : > { %12498 = vmatpush3.msra.mxu1 %v14511_v13 }
 0x1fa   : > { %12519 = vmatprep.subr.mxu1 %v13865_v1 }
 0x1fb   : > { %12451 = vmatmul.mubr.f32.gmra.mrb[116].mxu0 %v3961_v50  ;;  %12481 = vmatmul.mubr.f32.gmra.mrb[112].mxu1 %v3949_v38  ;;  %v4983_v50 = vld [vmem:[%s15381_s5 + $0x18] sm:$0xff] }
 0x1fc   : > { %12466 = vmatprep.mubr.msk.f32.mxu0 %vm13866_vm1, %v13865_v1  ;;  %12483 = vmatprep.mubr.msk.f32.mxu1 %vm13866_vm1, %v13865_v1 }
 0x1ff   : > { %12467 = vmatmul.mubr.f32.vlgmr.msra.gmra.mrb[118].mxu0 %v3938_v31  ;;  %12484 = vmatmul.mubr.f32.gmra.mrb[114].mxu1 %v3959_v44 }
 0x200   : > { %12469 = vmatprep.mubr.msk.f32.mxu0 %vm13866_vm1, %v13865_v1  ;;  %12499 = vmatprep.mubr.msk.f32.mxu1 %vm13866_vm1, %v13865_v1 }
 0x201   : > { %12487 = vmatpush3.msra.mxu0 %v3970_v18 }
 0x202   : > { %12508 = vmatprep.subr.mxu0 %v13865_v1 }
 0x203   : > { %12470 = vmatmul.mubr.f32.gmra.mrb[120].mxu0 %v3948_v35  ;;  %12500 = vmatmul.mubr.f32.vlgmr.msra.gmra.mrb[116].mxu1 %v14550_v26 }
 0x204   : > { %12472 = vmatprep.mubr.msk.f32.mxu0 %vm13866_vm1, %v13865_v1  ;;  %12502 = vmatprep.mubr.msk.f32.mxu1 %vm13866_vm1, %v13865_v1 }
 0x205   : > { %12520 = vmatpush3.msra.mxu1 %v4520_v53  ;;  %v4994_v53 = vand.u32 4294901760, %v4983_v50 }
 0x206   : > { %12541 = vmatprep.subr.mxu1 %v13865_v1 }
 0x207   : > { %12473 = vmatmul.mubr.f32.gmra.mrb[122].mxu0 %v3958_v39  ;;  %12503 = vmatmul.mubr.f32.gmra.mrb[118].mxu1 %v14560_v32 }
 0x208   : > { %12488 = vmatprep.mubr.msk.f32.mxu0 %vm13866_vm1, %v13865_v1  ;;  %12505 = vmatprep.mubr.msk.f32.mxu1 %vm13866_vm1, %v13865_v1 }
 0x20b   : > { %12489 = vmatmul.mubr.f32.vlgmr.msra.gmra.mrb[124].mxu0 %v14550_v26  ;;  %12506 = vmatmul.mubr.f32.gmra.mrb[120].mxu1 %v14570_v34 }
 0x20c   : > { %12491 = vmatprep.mubr.msk.f32.mxu0 %vm13866_vm1, %v13865_v1  ;;  %12521 = vmatprep.mubr.msk.f32.mxu1 %vm13866_vm1, %v13865_v1 }
 0x20d   : > { %12509 = vmatpush3.msra.mxu0 %v14592_v46 }
 0x20e   : > { %12530 = vmatprep.subr.mxu0 %v13865_v1 }
 0x20f   : > { %12492 = vmatmul.mubr.f32.gmra.mrb[126].mxu0 %v14560_v32  ;;  %12522 = vmatmul.mubr.f32.vlgmr.msra.gmra.mrb[122].mxu1 %v14631_v56 }
 0x210   : > { %12494 = vmatprep.mubr.msk.f32.mxu0 %vm13866_vm1, %v13865_v1  ;;  %12524 = vmatprep.mubr.msk.f32.mxu1 %vm13866_vm1, %v13865_v1 }
 0x211   : > { %12542 = vmatpush3.msra.mxu1 %v14592_v46 }
 0x212   : > { %12563 = vmatprep.subr.mxu1 %v13865_v1 }
 0x213   : > { %12495 = vmatmul.mubr.f32.gmra.mrb[128].mxu0 %v14570_v34  ;;  %12525 = vmatmul.mubr.f32.gmra.mrb[124].mxu1 %v4495_v60 }
 0x214   : > { %12510 = vmatprep.mubr.msk.f32.mxu0 %vm13866_vm1, %v13865_v1  ;;  %12527 = vmatprep.mubr.msk.f32.mxu1 %vm13866_vm1, %v13865_v1 }
 0x217   : > { %12511 = vmatmul.mubr.f32.vlgmr.msra.gmra.mrb[130].mxu0 %v4489_v48  ;;  %12528 = vmatmul.mubr.f32.gmra.mrb[126].mxu1 %v4505_v21 }
 0x218   : > { %12513 = vmatprep.mubr.msk.f32.mxu0 %vm13866_vm1, %v13865_v1  ;;  %12543 = vmatprep.mubr.msk.f32.mxu1 %vm13866_vm1, %v13865_v1 }
 0x219   : > { %12531 = vmatpush3.msra.mxu0 %v14601_v49  ;;  %v4982_v49 = vld [vmem:[%s15381_s5 + $0x10] sm:$0xff] }
 0x21a   : > { %12552 = vmatprep.subr.mxu0 %v13865_v1  ;;  %v4991_v36 = vand.u32 4294901760, %v4982_v49 }
 0x21b   : > { %12514 = vmatmul.mubr.f32.gmra.mrb[132].mxu0 %v4499_v4  ;;  %12544 = vmatmul.mubr.f32.vlgmr.msra.gmra.mrb[128].mxu1 %v4487_v61 }
 0x21c   : > { %12516 = vmatprep.mubr.msk.f32.mxu0 %vm13866_vm1, %v13865_v1  ;;  %12546 = vmatprep.mubr.msk.f32.mxu1 %vm13866_vm1, %v13865_v1  ;;  %v14711_v57 = vpack.c.bf16 %v4994_v53, %v4991_v36 }
 0x21d   : > { %12564 = vmatpush3.msra.mxu1 %v14592_v46 }
 0x21f   : > { %12517 = vmatmul.mubr.f32.gmra.mrb[134].mxu0 %v4509_v5  ;;  %12547 = vmatmul.mubr.f32.gmra.mrb[130].mxu1 %v4497_v29 }
 0x220   : > { %12532 = vmatprep.mubr.msk.f32.mxu0 %vm13866_vm1, %v13865_v1  ;;  %12549 = vmatprep.mubr.msk.f32.mxu1 %vm13866_vm1, %v13865_v1 }
 0x223   : > { %12533 = vmatmul.mubr.f32.vlgmr.msra.gmra.mrb[136].mxu0 %v4486_v59  ;;  %12550 = vmatmul.mubr.f32.gmra.mrb[132].mxu1 %v4507_v0 }
 0x224   : > { %12535 = vmatprep.mubr.msk.f32.mxu0 %vm13866_vm1, %v13865_v1  ;;  %12565 = vmatprep.mubr.msk.f32.mxu1 %vm13866_vm1, %v13865_v1 }
 0x225   : > { %12553 = vmatpush3.msra.mxu0 %v4518_v51 }
 0x226   : > { %13265 = vmatprep.subr.bf16.mxu0 %v14711_v57 }
 0x227   : > { %12536 = vmatmul.mubr.f32.gmra.mrb[138].mxu0 %v4496_v62  ;;  %12566 = vmatmul.mubr.f32.vlgmr.msra.gmra.mrb[134].mxu1 %v14631_v56 }
 0x228   : > { %12538 = vmatprep.mubr.msk.f32.mxu0 %vm13866_vm1, %v13865_v1  ;;  %12568 = vmatprep.mubr.msk.f32.mxu1 %vm13866_vm1, %v13865_v1 }
 0x22b   : > { %12539 = vmatmul.mubr.f32.gmra.mrb[140].mxu0 %v4506_v63  ;;  %12569 = vmatmul.mubr.f32.gmra.mrb[136].mxu1 %v4495_v60 }
 0x22c   : > { %12554 = vmatprep.mubr.msk.f32.mxu0 %vm13866_vm1, %v13865_v1  ;;  %12571 = vmatprep.mubr.msk.f32.mxu1 %vm13866_vm1, %v13865_v1 }
 0x22f   : > { %12555 = vmatmul.mubr.f32.vlgmr.msra.gmra.mrb[142].mxu0 %v14631_v56  ;;  %12572 = vmatmul.mubr.f32.gmra.mrb[138].mxu1 %v4505_v21 }
 0x230   : > { %12557 = vmatprep.mubr.msk.f32.mxu0 %vm13866_vm1, %v13865_v1  ;;  %12746 = vmatprep.mubr.msk.f32.mxu1 %vm13866_vm1, %v13865_v1 }
 0x231   : > { %13267 = vmatpush3.bf16.msra.mxu0 %v14711_v57 }
 0x233   : > { %12558 = vmatmul.mubr.f32.gmra.mrb[144].mxu0 %v4495_v60 }
 0x234   : > { %12560 = vmatprep.mubr.msk.f32.mxu0 %vm13866_vm1, %v13865_v1 }
 0x237   : > { %12561 = vmatmul.mubr.f32.gmra.mrb[146].mxu0 %v4505_v21 }
 0x276   : > { %v2953_v6 = vpop.f32.mrb[68].mxu1 }
 0x277   : > { %v12325_v7 = vpop.f32.mrb[69].mxu1 }
 0x27a   : > { %v2959_v8 = vpop.f32.mrb[70].mxu1 }
 0x27b   : > { %v12328_v9 = vpop.f32.mrb[71].mxu1 }
 0x27c   : > { %v5079_v9 = vsub.f32 %v4982_v49, %v4991_v36 }
 0x27e   : > { %v2857_v10 = vpop.f32.mrb[76].mxu0  ;;  %v2965_v11 = vpop.f32.mrb[72].mxu1 }
 0x27f   : > { %v2954_v12 = vadd.f32 %v2953_v6, %v2857_v10  ;;  %v12314_v13 = vpop.f32.mrb[77].mxu0  ;;  %v12331_v14 = vpop.f32.mrb[73].mxu1  ;;  %v5086_v10 = vsub.f32 %v4983_v50, %v4994_v53 }
 0x282   : > { %v2867_v15 = vpop.f32.mrb[78].mxu0  ;;  %v3127_v16 = vpop.f32.mrb[74].mxu1 }
 0x283   : > { %v2960_v17 = vadd.f32 %v2959_v8, %v2867_v15  ;;  %v12317_v18 = vpop.f32.mrb[79].mxu0  ;;  %v12347_v19 = vpop.f32.mrb[75].mxu1 }
 0x286   : > { %v2877_v20 = vpop.f32.mrb[80].mxu0  ;;  %v3135_v22 = vpop.f32.mrb[76].mxu1 }
 0x287   : > { %v2966_v23 = vadd.f32 %v2965_v11, %v2877_v20  ;;  %v12320_v24 = vpop.f32.mrb[81].mxu0  ;;  %v12350_v26 = vpop.f32.mrb[77].mxu1 }
 0x28a   : > { %v3039_v27 = vpop.f32.mrb[82].mxu0  ;;  %v3143_v28 = vpop.f32.mrb[78].mxu1 }
 0x28b   : > { %v3040_v31 = vadd.f32 %v3039_v27, %v2954_v12  ;;  %v12336_v32 = vpop.f32.mrb[83].mxu0  ;;  %v12353_v30 = vpop.f32.mrb[79].mxu1 }
 0x28d   : > { %v3128_v33 = vadd.f32 %v3127_v16, %v3040_v31  ;;  %v5080_v16 = vand.u32 4294901760, %v5079_v9 }
 0x28e   : > { %v3046_v34 = vpop.f32.mrb[84].mxu0  ;;  %v3301_v35 = vpop.f32.mrb[80].mxu1 }
 0x28f   : > { %v3047_v37 = vadd.f32 %v3046_v34, %v2960_v17  ;;  %v12339_v38 = vpop.f32.mrb[85].mxu0  ;;  %v12369_v39 = vpop.f32.mrb[81].mxu1  ;;  %v5087_v17 = vand.u32 4294901760, %v5086_v10  ;;  %v5081_v19 = vsub.f32 %v5079_v9, %v5080_v16 }
 0x291   : > { %v3136_v41 = vadd.f32 %v3135_v22, %v3047_v37  ;;  %v5088_v20 = vsub.f32 %v5086_v10, %v5087_v17 }
 0x292   : > { %v3053_v40 = vpop.f32.mrb[86].mxu0  ;;  %v3307_v43 = vpop.f32.mrb[82].mxu1 }
 0x293   : > { %v3054_v44 = vadd.f32 %v3053_v40, %v2966_v23  ;;  %v12342_v46 = vpop.f32.mrb[87].mxu0  ;;  %v12372_v47 = vpop.f32.mrb[83].mxu1  ;;  %v5089_v31 = vand.u32 4294901760, %v5088_v20 }
 0x295   : > { %v3144_v45 = vadd.f32 %v3143_v28, %v3054_v44  ;;  %v5082_v28 = vand.u32 4294901760, %v5081_v19 }
 0x296   : > { %v3217_v51 = vpop.f32.mrb[88].mxu0  ;;  %v3313_v52 = vpop.f32.mrb[84].mxu1 }
 0x297   : > { %v3218_v54 = vadd.f32 %v3217_v51, %v3128_v33  ;;  %v12358_v55 = vpop.f32.mrb[89].mxu0  ;;  %v12375_v56 = vpop.f32.mrb[85].mxu1  ;;  %v14715_v30 = vpack.c.bf16 %v5089_v31, %v5082_v28  ;;  %v14717_v33 = vpack.c.bf16 %v5086_v10, %v5079_v9 }
 0x299   : > { %v3302_v58 = vadd.f32 %v3301_v35, %v3218_v54  ;;  %13269 = vmatprep.subr.bf16.mxu0 %v14715_v30 }
 0x29a   : > { %v3223_v42 = vpop.f32.mrb[90].mxu0  ;;  %v3494_v59 = vpop.f32.mrb[86].mxu1 }
 0x29b   : > { %v3224_v60 = vadd.f32 %v3223_v42, %v3136_v41  ;;  %v12361_v21 = vpop.f32.mrb[91].mxu0  ;;  %v12391_v61 = vpop.f32.mrb[87].mxu1 }
 0x29d   : > { %v3308_v62 = vadd.f32 %v3307_v43, %v3224_v60  ;;  %v14720_v60 = vpack.c.bf16 %v5087_v17, %v5080_v16 }
 0x29e   : > { %v3229_v63 = vpop.f32.mrb[92].mxu0  ;;  %v3500_v25 = vpop.f32.mrb[88].mxu1 }
 0x29f   : > { %v3230_v29 = vadd.f32 %v3229_v63, %v3144_v45  ;;  %v12364_v0 = vpop.f32.mrb[93].mxu0  ;;  %v12394_v48 = vpop.f32.mrb[89].mxu1 }
 0x2a1   : > { %v3314_v2 = vadd.f32 %v3313_v52, %v3230_v29 }
 0x2a2   : > { %v3398_v3 = vpop.f32.mrb[94].mxu0  ;;  %v3506_v4 = vpop.f32.mrb[90].mxu1 }
 0x2a3   : > { %v3399_v5 = vadd.f32 %v3398_v3, %v3302_v58  ;;  %v12380_v6 = vpop.f32.mrb[95].mxu0  ;;  %v12397_v7 = vpop.f32.mrb[91].mxu1 }
 0x2a5   : > { %v3495_v8 = vadd.f32 %v3494_v59, %v3399_v5 }
 0x2a6   : > { %v3408_v11 = vpop.f32.mrb[96].mxu0  ;;  %v3668_v12 = vpop.f32.mrb[92].mxu1 }
 0x2a7   : > { %v3409_v13 = vadd.f32 %v3408_v11, %v3308_v62  ;;  %v12383_v14 = vpop.f32.mrb[97].mxu0  ;;  %v12413_v15 = vpop.f32.mrb[93].mxu1 }
 0x2a9   : > { %v3501_v18 = vadd.f32 %v3500_v25, %v3409_v13 }
 0x2aa   : > { %v3418_v22 = vpop.f32.mrb[98].mxu0  ;;  %v3676_v23 = vpop.f32.mrb[94].mxu1 }
 0x2ab   : > { %v3419_v24 = vadd.f32 %v3418_v22, %v3314_v2  ;;  %v12386_v26 = vpop.f32.mrb[99].mxu0  ;;  %v12416_v27 = vpop.f32.mrb[95].mxu1 }
 0x2ad   : > { %v3507_v32 = vadd.f32 %v3506_v4, %v3419_v24 }
 0x2ae   : > { %v3580_v34 = vpop.f32.mrb[100].mxu0  ;;  %v3684_v35 = vpop.f32.mrb[96].mxu1 }
 0x2af   : > { %v3581_v37 = vadd.f32 %v3580_v34, %v3495_v8  ;;  %v12402_v38 = vpop.f32.mrb[101].mxu0  ;;  %v12419_v39 = vpop.f32.mrb[97].mxu1 }
 0x2b1   : > { %v3669_v41 = vadd.f32 %v3668_v12, %v3581_v37 }
 0x2b2   : > { %v3587_v40 = vpop.f32.mrb[102].mxu0  ;;  %v3842_v43 = vpop.f32.mrb[98].mxu1 }
 0x2b3   : > { %v3588_v44 = vadd.f32 %v3587_v40, %v3501_v18  ;;  %v12405_v46 = vpop.f32.mrb[103].mxu0  ;;  %v12435_v47 = vpop.f32.mrb[99].mxu1 }
 0x2b5   : > { %v3677_v45 = vadd.f32 %v3676_v23, %v3588_v44 }
 0x2b6   : > { %v3594_v49 = vpop.f32.mrb[104].mxu0  ;;  %v3848_v50 = vpop.f32.mrb[100].mxu1 }
 0x2b7   : > { %v3595_v51 = vadd.f32 %v3594_v49, %v3507_v32  ;;  %v12408_v52 = vpop.f32.mrb[105].mxu0  ;;  %v12438_v36 = vpop.f32.mrb[101].mxu1 }
 0x2b9   : > { %v3685_v53 = vadd.f32 %v3684_v35, %v3595_v51 }
 0x2ba   : > { %v3758_v54 = vpop.f32.mrb[106].mxu0  ;;  %v3854_v55 = vpop.f32.mrb[102].mxu1 }
 0x2bb   : > { %v3759_v56 = vadd.f32 %v3758_v54, %v3669_v41  ;;  %v12424_v58 = vpop.f32.mrb[107].mxu0  ;;  %v12441_v42 = vpop.f32.mrb[103].mxu1 }
 0x2bd   : > { %v3843_v59 = vadd.f32 %v3842_v43, %v3759_v56 }
 0x2be   : > { %v3764_v21 = vpop.f32.mrb[108].mxu0  ;;  %v4039_v61 = vpop.f32.mrb[104].mxu1 }
 0x2bf   : > { %v3765_v62 = vadd.f32 %v3764_v21, %v3677_v45  ;;  %v12427_v63 = vpop.f32.mrb[109].mxu0  ;;  %v12457_v25 = vpop.f32.mrb[105].mxu1 }
 0x2c1   : > { %v3849_v29 = vadd.f32 %v3848_v50, %v3765_v62 }
 0x2c2   : > { %v3770_v0 = vpop.f32.mrb[110].mxu0  ;;  %v4045_v48 = vpop.f32.mrb[106].mxu1 }
 0x2c3   : > { %v3771_v2 = vadd.f32 %v3770_v0, %v3685_v53  ;;  %v12430_v3 = vpop.f32.mrb[111].mxu0  ;;  %v12460_v4 = vpop.f32.mrb[107].mxu1 }
 0x2c5   : > { %v3855_v5 = vadd.f32 %v3854_v55, %v3771_v2 }
 0x2c6   : > { %v3943_v6 = vpop.f32.mrb[112].mxu0  ;;  %v4051_v7 = vpop.f32.mrb[108].mxu1 }
 0x2c7   : > { %v4040_v8 = vadd.f32 %v4039_v61, %v3943_v6  ;;  %v12446_v9 = vpop.f32.mrb[113].mxu0  ;;  %v12463_v10 = vpop.f32.mrb[109].mxu1 }
 0x2ca   : > { %v3953_v11 = vpop.f32.mrb[114].mxu0  ;;  %v4213_v12 = vpop.f32.mrb[110].mxu1 }
 0x2cb   : > { %v4046_v13 = vadd.f32 %v4045_v48, %v3953_v11  ;;  %v12449_v14 = vpop.f32.mrb[115].mxu0  ;;  %v12479_v15 = vpop.f32.mrb[111].mxu1 }
 0x2ce   : > { %v3963_v16 = vpop.f32.mrb[116].mxu0  ;;  %v4221_v17 = vpop.f32.mrb[112].mxu1 }
 0x2cf   : > { %v4052_v18 = vadd.f32 %v4051_v7, %v3963_v16  ;;  %v12452_v19 = vpop.f32.mrb[117].mxu0  ;;  %v12482_v20 = vpop.f32.mrb[113].mxu1 }
 0x2d2   : > { %v4125_v22 = vpop.f32.mrb[118].mxu0  ;;  %v4229_v23 = vpop.f32.mrb[114].mxu1 }
 0x2d3   : > { %v4126_v24 = vadd.f32 %v4125_v22, %v4040_v8  ;;  %v12468_v26 = vpop.f32.mrb[119].mxu0  ;;  %v12485_v27 = vpop.f32.mrb[115].mxu1 }
 0x2d5   : > { %v4214_v28 = vadd.f32 %v4213_v12, %v4126_v24 }
 0x2d6   : > { %v4132_v31 = vpop.f32.mrb[120].mxu0  ;;  %v4387_v32 = vpop.f32.mrb[116].mxu1 }
 0x2d7   : > { %v4133_v34 = vadd.f32 %v4132_v31, %v4046_v13  ;;  %v12471_v35 = vpop.f32.mrb[121].mxu0  ;;  %v12501_v37 = vpop.f32.mrb[117].mxu1 }
 0x2d9   : > { %v4222_v38 = vadd.f32 %v4221_v17, %v4133_v34 }
 0x2da   : > { %v4139_v39 = vpop.f32.mrb[122].mxu0  ;;  %v4393_v41 = vpop.f32.mrb[118].mxu1 }
 0x2db   : > { %v4140_v40 = vadd.f32 %v4139_v39, %v4052_v18  ;;  %v12474_v43 = vpop.f32.mrb[123].mxu0  ;;  %v12504_v44 = vpop.f32.mrb[119].mxu1 }
 0x2dd   : > { %v4230_v46 = vadd.f32 %v4229_v23, %v4140_v40 }
 0x2de   : > { %v4303_v47 = vpop.f32.mrb[124].mxu0  ;;  %v4399_v45 = vpop.f32.mrb[120].mxu1 }
 0x2df   : > { %v4304_v49 = vadd.f32 %v4303_v47, %v4214_v28  ;;  %v12490_v50 = vpop.f32.mrb[125].mxu0  ;;  %v12507_v51 = vpop.f32.mrb[121].mxu1 }
 0x2e1   : > { %v4388_v52 = vadd.f32 %v4387_v32, %v4304_v49 }
 0x2e2   : > { %v4309_v36 = vpop.f32.mrb[126].mxu0  ;;  %v4587_v53 = vpop.f32.mrb[122].mxu1 }
 0x2e3   : > { %v4403_v54 = vadd.f32 %v4388_v52, %v3843_v59  ;;  %v4310_v55 = vadd.f32 %v4309_v36, %v4222_v38  ;;  %v12493_v56 = vpop.f32.mrb[127].mxu0  ;;  %v12523_v58 = vpop.f32.mrb[123].mxu1 }
 0x2e5   : > { %v4394_v42 = vadd.f32 %v4393_v41, %v4310_v55 }
 0x2e6   : > { %v4315_v21 = vpop.f32.mrb[128].mxu0  ;;  %v4593_v61 = vpop.f32.mrb[124].mxu1 }
 0x2e7   : > { %v4404_v62 = vadd.f32 %v4394_v42, %v3849_v29  ;;  %v4316_v63 = vadd.f32 %v4315_v21, %v4230_v46  ;;  %v12496_v25 = vpop.f32.mrb[129].mxu0  ;;  %v12526_v0 = vpop.f32.mrb[125].mxu1 }
 0x2e9   : > { %v4400_v48 = vadd.f32 %v4399_v45, %v4316_v63  ;;  %v11508_v45 = vld [vmem:[%s15412_s4] ss:$0 sm:$0xff]  ;;  %s13807_s4 = scalar_lea.vmem %s13806_s26, 32 }
 0x2ea   : > { %v4491_v2 = vpop.f32.mrb[130].mxu0  ;;  %v4599_v3 = vpop.f32.mrb[126].mxu1  ;;  %p13809_p1 = scmp.lt.s32.totalorder %s13807_s4, %s13801_s3 }
 0x2eb   : > { %v4588_v4 = vadd.f32 %v4587_v53, %v4491_v2  ;;  %v12512_v6 = vpop.f32.mrb[131].mxu0  ;;  %v12529_v7 = vpop.f32.mrb[127].mxu1  ;;  %v4405_v8 = vadd.f32 %v4400_v48, %v3855_v5 }
 0x2ec   : > { %p13810_p2 = por %p13809_p1, %p13808_p0 }
 0x2ee   : > { %v4501_v9 = vpop.f32.mrb[132].mxu0  ;;  %v4761_v10 = vpop.f32.mrb[128].mxu1  ;;  %p13811_p3 = pnand %p13810_p2, %p13804_p13 }
 0x2ef   : > { %v4594_v59 = vadd.f32 %v4593_v61, %v4501_v9  ;;  %v12515_v11 = vpop.f32.mrb[133].mxu0  ;;  %v12545_v12 = vpop.f32.mrb[129].mxu1 }
 0x2f2   : > { %v4511_v13 = vpop.f32.mrb[134].mxu0  ;;  %v4769_v14 = vpop.f32.mrb[130].mxu1 }
 0x2f3   : > { %v4600_v15 = vadd.f32 %v4599_v3, %v4511_v13  ;;  %v12518_v16 = vpop.f32.mrb[135].mxu0  ;;  %v12548_v29 = vpop.f32.mrb[131].mxu1 }
 0x2f4   : > { %v4979_v16 = vld [vmem:[%s15381_s5 + $0x8] sm:$0xff] }
 0x2f6   : > { %v4673_v17 = vpop.f32.mrb[136].mxu0  ;;  %v4777_v18 = vpop.f32.mrb[132].mxu1 }
 0x2f7   : > { %v4674_v19 = vadd.f32 %v4673_v17, %v4588_v4  ;;  %v12534_v20 = vpop.f32.mrb[137].mxu0  ;;  %v12551_v22 = vpop.f32.mrb[133].mxu1  ;;  %v5502_v17 = vand.u32 4294901760, %v4979_v16 }
 0x2f9   : > { %v4762_v23 = vadd.f32 %v4761_v10, %v4674_v19  ;;  %v5594_v19 = vsub.f32 %v4979_v16, %v5502_v17 }
 0x2fa   : > { %v4680_v24 = vpop.f32.mrb[138].mxu0  ;;  %v4935_v26 = vpop.f32.mrb[134].mxu1 }
 0x2fb   : > { %v4681_v27 = vadd.f32 %v4680_v24, %v4594_v59  ;;  %v12537_v5 = vpop.f32.mrb[139].mxu0  ;;  %v12567_v28 = vpop.f32.mrb[135].mxu1  ;;  %v5595_v24 = vand.u32 4294901760, %v5594_v19 }
 0x2fd   : > { %v4770_v31 = vadd.f32 %v4769_v14, %v4681_v27 }
 0x2fe   : > { %v4687_v32 = vpop.f32.mrb[140].mxu0  ;;  %v4941_v34 = vpop.f32.mrb[136].mxu1 }
 0x2ff   : > { %v4688_v35 = vadd.f32 %v4687_v32, %v4600_v15  ;;  %v12540_v37 = vpop.f32.mrb[141].mxu0  ;;  %v12570_v38 = vpop.f32.mrb[137].mxu1  ;;  %v4978_v15 = vld [vmem:[%s15381_s5] sm:$0xff]  ;;  %v5596_v32 = vsub.f32 %v5594_v19, %v5595_v24 }
 0x300   : > { %v5499_v29 = vand.u32 4294901760, %v4978_v15 }
 0x301   : > { %v4778_v39 = vadd.f32 %v4777_v18, %v4688_v35  ;;  %v5597_v37 = vand.u32 4294901760, %v5596_v32 }
 0x302   : > { %v4851_v41 = vpop.f32.mrb[142].mxu0  ;;  %v4947_v40 = vpop.f32.mrb[138].mxu1  ;;  %v5587_v18 = vsub.f32 %v4978_v15, %v5499_v29  ;;  %v13288_v5 = vpack.c.bf16 %v5502_v17, %v5499_v29 }
 0x303   : > { %v4852_v43 = vadd.f32 %v4851_v41, %v4762_v23  ;;  %v12556_v44 = vpop.f32.mrb[143].mxu0  ;;  %v12573_v46 = vpop.f32.mrb[139].mxu1 }
 0x304   : > { %v5588_v23 = vand.u32 4294901760, %v5587_v18  ;;  %v13296_v46 = vpack.c.bf16 %v5594_v19, %v5587_v18 }
 0x305   : > { %v4936_v47 = vadd.f32 %v4935_v26, %v4852_v43 }
 0x306   : > { %v4857_v49 = vpop.f32.mrb[144].mxu0 }
 0x307   : > { %v4951_v50 = vadd.f32 %v4936_v47, %v4403_v54  ;;  %v4858_v51 = vadd.f32 %v4857_v49, %v4770_v31  ;;  %v12559_v52 = vpop.f32.mrb[145].mxu0  ;;  %v5589_v31 = vsub.f32 %v5587_v18, %v5588_v23  ;;  %v6002_v47 = vld [vmem:[%s15381_s5 + $0x20] sm:$0xff] }
 0x309   : > { %v4961_v36 = vadd.f32 %v11508_v45, %v4951_v50  ;;  %v4942_v53 = vadd.f32 %v4941_v34, %v4858_v51  ;;  %v5590_v35 = vand.u32 4294901760, %v5589_v31  ;;  %v6011_v50 = vand.u32 4294901760, %v6002_v47 }
 0x30a   : > { %v4863_v55 = vpop.f32.mrb[146].mxu0 }
 0x30b   : > { %v4964_v56 = vmax.f32 %v4961_v36, 0.0  ;;  %v4952_v58 = vadd.f32 %v4942_v53, %v4404_v62  ;;  %v4864_v42 = vadd.f32 %v4863_v55, %v4778_v39  ;;  %v12562_v21 = vpop.f32.mrb[147].mxu0  ;;  %v13292_v41 = vpack.c.bf16 %v5597_v37, %v5590_v35 }
 0x30c   : > { %v6099_v36 = vsub.f32 %v6002_v47, %v6011_v50 }
 0x30d   : > { %4972 = vst.msk [vmem:[#allocation3 + $0x1] sm:$0xff] %vm4967_vm6, %v4964_v56  ;;  %v4962_v61 = vadd.f32 %v11508_v45, %v4952_v58  ;;  %v4948_v63 = vadd.f32 %v4947_v40, %v4864_v42 }
 0x30e   : > { %v6100_v58 = vand.u32 4294901760, %v6099_v36 }
 0x30f   : > { %v4965_v25 = vmax.f32 %v4962_v61, 0.0  ;;  %v4953_v0 = vadd.f32 %v4948_v63, %v4405_v8 }
 0x311   : > { %v4963_v48 = vadd.f32 %v11508_v45, %v4953_v0  ;;  %4973 = vst.msk [vmem:[#allocation3 + $0x9] sm:$0xff] %vm4967_vm6, %v4965_v25  ;;  %v6003_v45 = vld [vmem:[%s15381_s5 + $0x28] sm:$0xff]  ;;  %v6101_v0 = vsub.f32 %v6099_v36, %v6100_v58 }
 0x312   : > { %v6014_v51 = vand.u32 4294901760, %v6003_v45 }
 0x313   : > { %v4966_v54 = vmax.f32 %v4963_v48, 0.0 }
 0x314   : > { %v4980_v2 = vld [vmem:[#allocation3 + $0x1] sm:$0xff]  ;;  %v6106_v53 = vsub.f32 %v6003_v45, %v6014_v51  ;;  %v13312_v63 = vpack.c.bf16 %v6014_v51, %v6011_v50 }
 0x315   : > { %4975 = vst.msk [vmem:[#allocation3 + $0x11] sm:$0x1] %vm4974_vm8, %v4966_v54  ;;  %v4985_v3 = vsel %vm4967_vm6, %v4980_v2, 0 }
 0x316   : > { %v5057_v4 = vand.u32 4294901760, %v4985_v3  ;;  %v6107_v42 = vand.u32 4294901760, %v6106_v53 }
 0x318   : > { %v5058_v6 = vsub.f32 %v4985_v3, %v5057_v4  ;;  %v4981_v62 = vld [vmem:[#allocation3 + $0x9] sm:$0xff]  ;;  %v6108_v48 = vsub.f32 %v6106_v53, %v6107_v42  ;;  %v6102_v3 = vand.u32 4294901760, %v6101_v0 }
 0x319   : > { %v4988_v7 = vsel %vm4967_vm6, %v4981_v62, 0  ;;  %v4977_v22 = vld [vmem:[#allocation3 + $0x8] sm:$0xff] }
 0x31a   : > { %v5059_v9 = vand.u32 4294901760, %v5058_v6  ;;  %v5067_v10 = vand.u32 4294901760, %v4988_v7  ;;  %v5496_v27 = vsel %vm4967_vm6, %v4977_v22, 0  ;;  %v6000_v49 = vld [vmem:[#allocation3 + $0x2] sm:$0xff] }
 0x31b   : > { %v14748_v28 = vand.u32 4294901760, %v5496_v27  ;;  %v6005_v52 = vsel %vm4967_vm6, %v6000_v49, 0 }
 0x31c   : > { %v5060_v59 = vsub.f32 %v5058_v6, %v5059_v9  ;;  %v5068_v11 = vsub.f32 %v4988_v7, %v5067_v10  ;;  %v14761_v55 = vand.u32 4294901760, %v6005_v52  ;;  %v6001_v56 = vld [vmem:[#allocation3 + $0xa] sm:$0xff] }
 0x31d   : > { %v6008_v61 = vsel %vm4967_vm6, %v6001_v56, 0  ;;  %v6515_v18 = vld [vmem:[#allocation3 + $0xb] sm:$0xff] }
 0x31e   : > { %v5061_v12 = vand.u32 4294901760, %v5060_v59  ;;  %v5069_v8 = vand.u32 4294901760, %v5068_v11  ;;  %v6078_v21 = vsub.f32 %v6005_v52, %v14761_v55  ;;  %v14766_v25 = vand.u32 4294901760, %v6008_v61  ;;  %v11509_v52 = vld [vmem:[%s15382_s6] ss:$0 sm:$0xff] }
 0x320   : > { %12578 = vmatprep.mubr.f32.mxu0 %v5061_v12  ;;  %v5070_v13 = vsub.f32 %v5068_v11, %v5069_v8  ;;  %v6079_v54 = vand.u32 4294901760, %v6078_v21  ;;  %v6088_v2 = vsub.f32 %v6008_v61, %v14766_v25  ;;  %v13328_v12 = vpack.c.bf16 %v6107_v42, %v6100_v58 }
 0x322   : > { %v5071_v14 = vand.u32 4294901760, %v5070_v13  ;;  %v6089_v62 = vand.u32 4294901760, %v6088_v2  ;;  %v6517_v13 = vld [vmem:[%s15381_s5 + $0x38] sm:$0xff] }
 0x323   : > { %v6528_v16 = vand.u32 4294901760, %v6517_v13 }
 0x324   : > { %12579 = vmatmul.mubr.f32.vlgmr.msra.gmra.mrb[148].mxu0 %v5071_v14  ;;  %v6514_v14 = vld [vmem:[#allocation3 + $0x3] sm:$0xff] }
 0x325   : > { %12585 = vmatprep.mubr.f32.mxu0 %v5057_v4  ;;  %13271 = vmatpush3.bf16.msra.mxu0 %v14715_v30  ;;  %v4976_v30 = vld [vmem:[#allocation3] sm:$0xff]  ;;  %v6620_v17 = vsub.f32 %v6517_v13, %v6528_v16 }
 0x326   : > { %13273 = vmatprep.subr.bf16.mxu0 %v14717_v33 }
 0x32c   : > { %12586 = vmatmul.mubr.f32.vlgmr.msra.gmra.mrb[148].mxu0 %v5067_v10 }
 0x32d   : > { %12592 = vmatprep.mubr.f32.mxu0 %v5058_v6  ;;  %13275 = vmatpush3.bf16.msra.mxu0 %v14717_v33  ;;  %v5493_v33 = vsel %vm4967_vm6, %v4976_v30, 0  ;;  %v6080_v6 = vsub.f32 %v6078_v21, %v6079_v54  ;;  %v6519_v30 = vsel %vm4967_vm6, %v6514_v14, 0 }
 0x32e   : > { %13277 = vmatprep.subr.bf16.mxu0 %v14711_v57  ;;  %v14742_v20 = vand.u32 4294901760, %v5493_v33 }
 0x330   : > { %v5566_v26 = vsub.f32 %v5493_v33, %v14742_v20  ;;  %v6591_v33 = vand.u32 4294901760, %v6519_v30 }
 0x332   : > { %v5567_v34 = vand.u32 4294901760, %v5566_v26  ;;  %v6592_v22 = vsub.f32 %v6519_v30, %v6591_v33 }
 0x334   : > { %12593 = vmatmul.mubr.f32.vlgmr.msra.gmra.mrb[148].mxu0 %v5068_v11  ;;  %v5568_v38 = vsub.f32 %v5566_v26, %v5567_v34  ;;  %v13320_v11 = vpack.c.bf16 %v6106_v53, %v6099_v36 }
 0x335   : > { %12599 = vmatprep.mubr.f32.mxu0 %v5059_v9  ;;  %13279 = vmatpush3.bf16.msra.mxu0 %v14711_v57  ;;  %v6081_v9 = vand.u32 4294901760, %v6080_v6 }
 0x336   : > { %13281 = vmatprep.subr.bf16.mxu0 %v14720_v60  ;;  %v5569_v40 = vand.u32 4294901760, %v5568_v38 }
 0x33c   : > { %12600 = vmatmul.mubr.f32.vlgmr.msra.gmra.mrb[148].mxu0 %v5069_v8  ;;  %v6516_v8 = vld [vmem:[%s15381_s5 + $0x30] sm:$0xff] }
 0x33d   : > { %12606 = vmatprep.mubr.f32.mxu0 %v5057_v4  ;;  %13283 = vmatpush3.bf16.msra.mxu0 %v14720_v60  ;;  %v5576_v60 = vsub.f32 %v5496_v27, %v14748_v28  ;;  %v6525_v15 = vand.u32 4294901760, %v6516_v8 }
 0x33e   : > { %13285 = vmatprep.subr.bf16.mxu0 %v14711_v57 }
 0x33f   : > { %v5577_v39 = vand.u32 4294901760, %v5576_v60  ;;  %v6613_v29 = vsub.f32 %v6516_v8, %v6525_v15 }
 0x341   : > { %v5578_v43 = vsub.f32 %v5576_v60, %v5577_v39  ;;  %v6614_v19 = vand.u32 4294901760, %v6613_v29 }
 0x343   : > { %v5579_v44 = vand.u32 4294901760, %v5578_v43  ;;  %v6615_v27 = vsub.f32 %v6613_v29, %v6614_v19 }
 0x344   : > { %12607 = vmatmul.mubr.f32.vlgmr.msra.gmra.mrb[148].mxu0 %v5067_v10 }
 0x345   : > { %12613 = vmatprep.mubr.f32.mxu0 %v5057_v4  ;;  %13287 = vmatpush3.bf16.msra.mxu0 %v14711_v57  ;;  %v13304_v57 = vpack.c.bf16 %v5595_v24, %v5588_v23  ;;  %v6109_v4 = vand.u32 4294901760, %v6108_v48  ;;  %v6522_v23 = vsel %vm4967_vm6, %v6515_v18, 0  ;;  %v13336_v24 = vpack.c.bf16 %v6528_v16, %v6525_v15 }
 0x346   : > { %13289 = vmatprep.subr.bf16.mxu0 %v13288_v5  ;;  %v6616_v32 = vand.u32 4294901760, %v6615_v27 }
 0x347   : > { %v13316_v7 = vpack.c.bf16 %v6109_v4, %v6102_v3 }
 0x34c   : > { %12614 = vmatmul.mubr.f32.vlgmr.msra.gmra.mrb[148].mxu0 %v5067_v10  ;;  %v6090_v10 = vsub.f32 %v6088_v2, %v6089_v62 }
 0x34d   : > { %12620 = vmatprep.mubr.f32.mxu0 %v5569_v40  ;;  %13291 = vmatpush3.bf16.msra.mxu0 %v13288_v5  ;;  %v13344_v40 = vpack.c.bf16 %v6620_v17, %v6613_v29  ;;  %v7976_v29 = vld [vmem:[%s15383_s7] sm:$0xff] }
 0x34e   : > { %13293 = vmatprep.subr.bf16.mxu0 %v13292_v41  ;;  %v6091_v59 = vand.u32 4294901760, %v6090_v10  ;;  %v7992_v18 = vand.u32 4294901760, %v7976_v29 }
 0x354   : > { %12621 = vmatmul.mubr.f32.vlgmr.msra.gmra.mrb[148].mxu0 %v5579_v44  ;;  %v13867_v44 = vmov 0.0|0.0  }
 0x355   : > { %12627 = vmatprep.mubr.f32.mxu0 %v14742_v20  ;;  %13295 = vmatpush3.bf16.msra.mxu0 %v13292_v41 }
 0x356   : > { %13297 = vmatprep.subr.bf16.mxu0 %v13296_v46  ;;  %13360 = vmatprep.subr.bf16.mxu1 %v13867_v44 }
 0x35c   : > { %12628 = vmatmul.mubr.f32.vlgmr.msra.gmra.mrb[148].mxu0 %v14748_v28 }
 0x35d   : > { %12634 = vmatprep.mubr.f32.mxu0 %v5566_v26  ;;  %13299 = vmatpush3.bf16.msra.mxu0 %v13296_v46  ;;  %v6601_v26 = vand.u32 4294901760, %v6522_v23  ;;  %v7039_v46 = vlaneseq }
 0x35e   : > { %13301 = vmatprep.subr.bf16.mxu0 %v13288_v5 }
 0x35f   : > { %v6602_v31 = vsub.f32 %v6522_v23, %v6601_v26  ;;  %v7042_v47 = vand.u32 127, %v7039_v46  ;;  %v7978_v23 = vld [vmem:[%s15383_s7 + $0x10] sm:$0xff] }
 0x360   : > { %v7998_v27 = vand.u32 4294901760, %v7978_v23 }
 0x361   : > { %v6603_v35 = vand.u32 4294901760, %v6602_v31 }
 0x364   : > { %12635 = vmatmul.mubr.f32.vlgmr.msra.gmra.mrb[148].mxu0 %v5576_v60 }
 0x365   : > { %12641 = vmatprep.mubr.f32.mxu0 %v5567_v34  ;;  %13303 = vmatpush3.bf16.msra.mxu0 %v13288_v5 }
 0x366   : > { %13305 = vmatprep.subr.bf16.mxu0 %v13304_v57 }
 0x36c   : > { %12642 = vmatmul.mubr.f32.vlgmr.msra.gmra.mrb[148].mxu0 %v5577_v39  ;;  %v6604_v39 = vsub.f32 %v6602_v31, %v6603_v35 }
 0x36d   : > { %12648 = vmatprep.mubr.f32.mxu0 %v14742_v20  ;;  %13307 = vmatpush3.bf16.msra.mxu0 %v13304_v57  ;;  %v7040_v57 = vshrl.u32 %v7039_v46, 7 }
 0x36e   : > { %13309 = vmatprep.subr.bf16.mxu0 %v13288_v5  ;;  %v6605_v41 = vand.u32 4294901760, %v6604_v39  ;;  %v14883_v39 = vsub.f32 %v7978_v23, %v7998_v27 }
 0x36f   : > { %v7043_v45 = vmul.u32 2, %v7040_v57 }
 0x371   : > { %vm7044_vm9 = vcmp.eq.s32.totalorder %v7042_v47, %v7043_v45 }
 0x372   : > { %v11510_v49 = vsel %vm7044_vm9, 1.0, %v13865_v1 }
 0x373   : > { %v7052_v50 = vsel %vm4967_vm6, %v11510_v49, 0 }
 0x374   : > { %12649 = vmatmul.mubr.f32.vlgmr.msra.gmra.mrb[148].mxu0 %v14748_v28  ;;  %v7122_v51 = vsub.f32 %v7052_v50, %v7052_v50 }
 0x375   : > { %12655 = vmatprep.mubr.f32.mxu0 %v14742_v20  ;;  %13311 = vmatpush3.bf16.msra.mxu0 %v13288_v5  ;;  %v6621_v20 = vand.u32 4294901760, %v6620_v17 }
 0x376   : > { %13313 = vmatprep.subr.bf16.mxu0 %v13312_v63  ;;  %v7123_v56 = vand.u32 4294901760, %v7122_v51 }
 0x377   : > { %v6622_v5 = vsub.f32 %v6620_v17, %v6621_v20  ;;  %v13352_v43 = vpack.c.bf16 %v6621_v20, %v6614_v19  ;;  %v7977_v17 = vld [vmem:[%s15383_s7 + $0x8] sm:$0xff] }
 0x378   : > { %v7995_v19 = vand.u32 4294901760, %v7977_v17  ;;  %v8477_v20 = vld [vmem:[%s15385_s9 + $0x8] sm:$0xff] }
 0x379   : > { %v6623_v34 = vand.u32 4294901760, %v6622_v5 }
 0x37b   : > { %v13340_v37 = vpack.c.bf16 %v6623_v34, %v6616_v32  ;;  %v14871_v32 = vpack.c.bf16 %v7995_v19, %v7992_v18  ;;  %v14873_v34 = vsub.f32 %v7976_v29, %v7992_v18 }
 0x37c   : > { %12656 = vmatmul.mubr.f32.vlgmr.msra.gmra.mrb[148].mxu0 %v14748_v28  ;;  %v6593_v28 = vand.u32 4294901760, %v6592_v22 }
 0x37d   : > { %12662 = vmatprep.mubr.f32.mxu0 %v6081_v9  ;;  %13315 = vmatpush3.bf16.msra.mxu0 %v13312_v63 }
 0x37e   : > { %13317 = vmatprep.subr.bf16.mxu0 %v13316_v7  ;;  %v6594_v60 = vsub.f32 %v6592_v22, %v6593_v28 }
 0x380   : > { %v6595_v38 = vand.u32 4294901760, %v6594_v60  ;;  %v14875_v60 = vsub.f32 %v7977_v17, %v7995_v19 }
 0x382   : > { %v8080_v50 = vand.u32 4294901760, %v14875_v60 }
 0x384   : > { %12663 = vmatmul.mubr.f32.vlgmr.msra.gmra.mrb[148].mxu0 %v6091_v59 }
 0x385   : > { %12669 = vmatprep.mubr.f32.mxu0 %v14761_v55  ;;  %13319 = vmatpush3.bf16.msra.mxu0 %v13316_v7 }
 0x386   : > { %13321 = vmatprep.subr.bf16.mxu0 %v13320_v11 }
 0x38c   : > { %12670 = vmatmul.mubr.f32.vlgmr.msra.gmra.mrb[148].mxu0 %v14766_v25 }
 0x38d   : > { %12676 = vmatprep.mubr.f32.mxu0 %v6078_v21  ;;  %13323 = vmatpush3.bf16.msra.mxu0 %v13320_v11 }
 0x38e   : > { %13325 = vmatprep.subr.bf16.mxu0 %v13312_v63 }
 0x394   : > { %12677 = vmatmul.mubr.f32.vlgmr.msra.gmra.mrb[148].mxu0 %v6088_v2 }
 0x395   : > { %12683 = vmatprep.mubr.f32.mxu0 %v6079_v54  ;;  %13327 = vmatpush3.bf16.msra.mxu0 %v13312_v63 }
 0x396   : > { %13329 = vmatprep.subr.bf16.mxu0 %v13328_v12 }
 0x39c   : > { %12684 = vmatmul.mubr.f32.vlgmr.msra.gmra.mrb[148].mxu0 %v6089_v62 }
 0x39d   : > { %12690 = vmatprep.mubr.f32.mxu0 %v14761_v55  ;;  %13331 = vmatpush3.bf16.msra.mxu0 %v13328_v12  ;;  %v7047_v12 = vadd.s32 1, %v7043_v45 }
 0x39e   : > { %13333 = vmatprep.subr.bf16.mxu0 %v13312_v63 }
 0x39f   : > { %vm7048_vm10 = vcmp.eq.s32.totalorder %v7042_v47, %v7047_v12 }
 0x3a0   : > { %v11511_v8 = vsel %vm7048_vm10, 1.0, %v13865_v1 }
 0x3a1   : > { %v7514_v13 = vsel %vm4967_vm6, %v11511_v8, 0 }
 0x3a2   : > { %v7584_v14 = vsub.f32 %v7514_v13, %v7514_v13 }
 0x3a4   : > { %12691 = vmatmul.mubr.f32.vlgmr.msra.gmra.mrb[148].mxu0 %v14766_v25  ;;  %v7585_v15 = vand.u32 4294901760, %v7584_v14 }
 0x3a5   : > { %12697 = vmatprep.mubr.f32.mxu0 %v14761_v55  ;;  %13335 = vmatpush3.bf16.msra.mxu0 %v13312_v63  ;;  %v7124_v63 = vsub.f32 %v7122_v51, %v7123_v56 }
 0x3a6   : > { %13337 = vmatprep.subr.bf16.mxu0 %v13336_v24  ;;  %v7586_v16 = vsub.f32 %v7584_v14, %v7585_v15 }
 0x3a7   : > { %v7125_v3 = vand.u32 4294901760, %v7124_v63 }
 0x3a8   : > { %v7587_v30 = vand.u32 4294901760, %v7586_v16 }
 0x3ac   : > { %12698 = vmatmul.mubr.f32.vlgmr.msra.gmra.mrb[148].mxu0 %v14766_v25 }
 0x3ad   : > { %12704 = vmatprep.mubr.f32.mxu0 %v6595_v38  ;;  %13339 = vmatpush3.bf16.msra.mxu0 %v13336_v24 }
 0x3ae   : > { %13341 = vmatprep.subr.bf16.mxu0 %v13340_v37 }
 0x3b4   : > { %12705 = vmatmul.mubr.f32.vlgmr.msra.gmra.mrb[148].mxu0 %v6605_v41 }
 0x3b5   : > { %12711 = vmatprep.mubr.f32.mxu0 %v6591_v33  ;;  %13343 = vmatpush3.bf16.msra.mxu0 %v13340_v37 }
 0x3b6   : > { %13345 = vmatprep.subr.bf16.mxu0 %v13344_v40 }
 0x3bc   : > { %12712 = vmatmul.mubr.f32.vlgmr.msra.gmra.mrb[148].mxu0 %v6601_v26 }
 0x3bd   : > { %12718 = vmatprep.mubr.f32.mxu0 %v6592_v22  ;;  %13347 = vmatpush3.bf16.msra.mxu0 %v13344_v40 }
 0x3be   : > { %13349 = vmatprep.subr.bf16.mxu0 %v13336_v24 }
 0x3c4   : > { %12719 = vmatmul.mubr.f32.vlgmr.msra.gmra.mrb[148].mxu0 %v6602_v31  ;;  %v8479_v31 = vld [vmem:[%s15385_s9 + $0x18] sm:$0xff] }
 0x3c5   : > { %12725 = vmatprep.mubr.f32.mxu0 %v6593_v28  ;;  %13351 = vmatpush3.bf16.msra.mxu0 %v13336_v24  ;;  %v8478_v28 = vld [vmem:[%s15385_s9 + $0x10] sm:$0xff]  ;;  %v8497_v46 = vand.u32 4294901760, %v8479_v31 }
 0x3c6   : > { %13353 = vmatprep.subr.bf16.mxu0 %v13352_v43 }
 0x3c7   : > { %v14897_v45 = vsub.f32 %v8479_v31, %v8497_v46  ;;  %v8972_v31 = vld [vmem:[%s15387_s11] sm:$0xff] }
 0x3cc   : > { %12726 = vmatmul.mubr.f32.vlgmr.msra.gmra.mrb[148].mxu0 %v6603_v35 }
 0x3cd   : > { %12732 = vmatprep.mubr.f32.mxu0 %v6591_v33  ;;  %13355 = vmatpush3.bf16.msra.mxu0 %v13352_v43  ;;  %v8494_v43 = vand.u32 4294901760, %v8478_v28 }
 0x3ce   : > { %13357 = vmatprep.subr.bf16.mxu0 %v13336_v24 }
 0x3cf   : > { %v14893_v57 = vpack.c.bf16 %v8497_v46, %v8494_v43  ;;  %v14895_v47 = vsub.f32 %v8478_v28, %v8494_v43 }
 0x3d4   : > { %12733 = vmatmul.mubr.f32.vlgmr.msra.gmra.mrb[148].mxu0 %v6601_v26 }
 0x3d5   : > { %12739 = vmatprep.mubr.f32.mxu0 %v6591_v33  ;;  %13359 = vmatpush3.bf16.msra.mxu0 %v13336_v24  ;;  %v8476_v33 = vld [vmem:[%s15385_s9] sm:$0xff]  ;;  %v7979_v24 = vld [vmem:[%s15383_s7 + $0x18] sm:$0xff] }
 0x3d6   : > { %13432 = vmatprep.subr.bf16.mxu0 %v13867_v44  ;;  %v8488_v22 = vand.u32 4294901760, %v8476_v33  ;;  %v8001_v5 = vand.u32 4294901760, %v7979_v24 }
 0x3d8   : > { %v14877_v35 = vsub.f32 %v8476_v33, %v8488_v22  ;;  %v14886_v41 = vpack.c.bf16 %v8001_v5, %v7998_v27  ;;  %v14888_v40 = vsub.f32 %v7979_v24, %v8001_v5 }
 0x3da   : > { %v13412_v13 = vpack.c.bf16 %v14888_v40, %v14883_v39 }
 0x3dc   : > { %12740 = vmatmul.mubr.f32.vlgmr.msra.gmra.mrb[148].mxu0 %v6601_v26  ;;  %v8491_v26 = vand.u32 4294901760, %v8477_v20 }
 0x3dd   : > { %12900 = vmatprep.mubr.msk.f32.mxu0 %vm13866_vm1, %v13865_v1 }
 0x3de   : > { %v14879_v37 = vpack.c.bf16 %v8491_v26, %v8488_v22  ;;  %v14881_v38 = vsub.f32 %v8477_v20, %v8491_v26 }
 0x3e0   : > { %13434 = vmatpush3.bf16.msra.mxu0 %v14879_v37 }
 0x3e1   : > { %13435 = vmatprep.subr.bf16.mxu0 %v13867_v44 }
 0x3e4   : > { %13437 = vmatpush3.bf16.msra.mxu0 %v14893_v57 }
 0x3e5   : > { %13438 = vmatprep.subr.bf16.mxu0 %v13867_v44 }
 0x4af   : > { %v12741_v36 = vpop.f32.mrb[148].mxu0 }
 0x4b0   : > { %v7036_v53 = vadd.f32 %v12741_v36, %v11509_v52  ;;  %v7016_v55 = vpop.f32.mrb[149].mxu0 }
 0x4b1   : > { %v7035_v58 = vadd.f32 %v11509_v52, %v7016_v55  ;;  %v8576_v52 = vand.u32 4294901760, %v14881_v38 }
 0x4b2   : > { %v7038_v42 = vmax.f32 %v7036_v53, 0.0  ;;  %v8081_v53 = vsub.f32 %v14875_v60, %v8080_v50 }
 0x4b3   : > { %v7037_v21 = vmax.f32 %v7035_v58, 0.0  ;;  %v8087_v58 = vand.u32 4294901760, %v14883_v39 }
 0x4b4   : > { %v7058_v61 = vand.u32 4294901760, %v7038_v42 }
 0x4b5   : > { %v7055_v25 = vand.u32 4294901760, %v7037_v21 }
 0x4b6   : > { %v7140_v0 = vsub.f32 %v7038_v42, %v7058_v61 }
 0x4b7   : > { %v14795_v48 = vpack.c.bf16 %v7058_v61, %v7055_v25  ;;  %v7133_v54 = vsub.f32 %v7037_v21, %v7055_v25  ;;  %v8094_v21 = vand.u32 4294901760, %v14888_v40  ;;  %v8082_v61 = vand.u32 4294901760, %v8081_v53 }
 0x4b8   : > { %v7141_v2 = vand.u32 4294901760, %v7140_v0 }
 0x4b9   : > { %v7134_v4 = vand.u32 4294901760, %v7133_v54  ;;  %13362 = vmatpush3.bf16.msra.mxu1 %v14795_v48  ;;  %v13367_v6 = vpack.c.bf16 %v7140_v0, %v7133_v54  ;;  %v14927_v29 = vpack.c.bf16 %v8094_v21, %v8087_v58 }
 0x4ba   : > { %v7142_v62 = vsub.f32 %v7140_v0, %v7141_v2  ;;  %13363 = vmatprep.subr.bf16.mxu1 %v13867_v44  ;;  %v8088_v0 = vsub.f32 %v14883_v39, %v8087_v58  ;;  %v8975_v39 = vld [vmem:[%s15387_s11 + $0x18] sm:$0xff] }
 0x4bb   : > { %v7135_v7 = vsub.f32 %v7133_v54, %v7134_v4  ;;  %v13373_v9 = vpack.c.bf16 %v7141_v2, %v7134_v4  ;;  %v8583_v54 = vand.u32 4294901760, %v14895_v47  ;;  %v8590_v2 = vand.u32 4294901760, %v14897_v45 }
 0x4bc   : > { %v7143_v10 = vand.u32 4294901760, %v7142_v62  ;;  %12747 = vmatmul.mubr.f32.vlgmr.msra.gmra.mrb[140].mxu1 %v7125_v3 }
 0x4bd   : > { %v7136_v59 = vand.u32 4294901760, %v7135_v7  ;;  %12753 = vmatprep.mubr.msk.f32.mxu1 %vm13866_vm1, %v13865_v1  ;;  %v8584_v7 = vsub.f32 %v14895_v47, %v8583_v54  ;;  %v14929_v17 = vpack.c.bf16 %v8590_v2, %v8583_v54 }
 0x4bf   : > { %v13364_v11 = vpack.c.bf16 %v7143_v10, %v7136_v59  ;;  %v13409_v10 = vpack.c.bf16 %v14875_v60, %v14873_v34  ;;  %v8984_v60 = vand.u32 4294901760, %v8972_v31 }
 0x4c1   : > { %13365 = vmatpush3.bf16.msra.mxu1 %v13364_v11 }
 0x4c2   : > { %13366 = vmatprep.subr.bf16.mxu1 %v13867_v44 }
 0x4c4   : > { %12754 = vmatmul.mubr.msk.f32.vlgmr.msra.gmra.mrb[140].mxu1 %vm4967_vm6, %v11510_v49 }
 0x4c5   : > { %13368 = vmatpush3.bf16.msra.mxu1 %v13367_v6  ;;  %12760 = vmatprep.mubr.msk.f32.mxu1 %vm13866_vm1, %v13865_v1 }
 0x4c6   : > { %13369 = vmatprep.subr.bf16.mxu1 %v13867_v44 }
 0x4cc   : > { %12761 = vmatmul.mubr.f32.vlgmr.msra.gmra.mrb[140].mxu1 %v7122_v51  ;;  %v8569_v51 = vand.u32 4294901760, %v14877_v35 }
 0x4cd   : > { %13371 = vmatpush3.bf16.msra.mxu1 %v14795_v48  ;;  %12767 = vmatprep.mubr.msk.f32.mxu1 %vm13866_vm1, %v13865_v1 }
 0x4ce   : > { %13372 = vmatprep.subr.bf16.mxu1 %v13867_v44  ;;  %v8570_v55 = vsub.f32 %v14877_v35, %v8569_v51 }
 0x4d0   : > { %v8571_v63 = vand.u32 4294901760, %v8570_v55 }
 0x4d4   : > { %12768 = vmatmul.mubr.f32.vlgmr.msra.gmra.mrb[140].mxu1 %v7123_v56  ;;  %v8577_v56 = vsub.f32 %v14881_v38, %v8576_v52 }
 0x4d5   : > { %13374 = vmatpush3.bf16.msra.mxu1 %v13373_v9  ;;  %12774 = vmatprep.mubr.msk.f32.mxu1 %vm13866_vm1, %v13865_v1 }
 0x4d6   : > { %13375 = vmatprep.subr.bf16.mxu1 %v13867_v44  ;;  %v8578_v25 = vand.u32 4294901760, %v8577_v56 }
 0x4d8   : > { %v13439_v4 = vpack.c.bf16 %v8578_v25, %v8571_v63 }
 0x4dc   : > { %12775 = vmatmul.mubr.msk.f32.vlgmr.msra.gmra.mrb[140].mxu1 %vm4967_vm6, %v11510_v49 }
 0x4dd   : > { %13377 = vmatpush3.bf16.msra.mxu1 %v14795_v48  ;;  %12781 = vmatprep.mubr.msk.f32.mxu1 %vm13866_vm1, %v13865_v1 }
 0x4de   : > { %13378 = vmatprep.subr.bf16.mxu1 %v13867_v44 }
 0x4e4   : > { %12782 = vmatmul.mubr.msk.f32.vlgmr.msra.gmra.mrb[140].mxu1 %vm4967_vm6, %v11510_v49  ;;  %v8073_v49 = vand.u32 4294901760, %v14873_v34 }
 0x4e5   : > { %13380 = vmatpush3.bf16.msra.mxu1 %v14795_v48  ;;  %12788 = vmatprep.mubr.msk.f32.mxu1 %vm13866_vm1, %v13865_v1 }
 0x4e6   : > { %13381 = vmatprep.subr.bf16.mxu1 %v13867_v44  ;;  %v8074_v36 = vsub.f32 %v14873_v34, %v8073_v49  ;;  %v13421_v16 = vpack.c.bf16 %v8080_v50, %v8073_v49  ;;  %v8973_v34 = vld [vmem:[%s15387_s11 + $0x8] sm:$0xff] }
 0x4e8   : > { %12789 = vmatmul.mubr.f32.vlgmr.msra.gmra.mrb[142].mxu1 %v7587_v30  ;;  %v8075_v42 = vand.u32 4294901760, %v8074_v36  ;;  %v13457_v30 = vpack.c.bf16 %v8576_v52, %v8569_v51 }
 0x4e9   : > { %13383 = vmatpush3.bf16.msra.mxu1 %v13364_v11  ;;  %12795 = vmatprep.mubr.msk.f32.mxu1 %vm13866_vm1, %v13865_v1  ;;  %v8585_v11 = vand.u32 4294901760, %v8584_v7 }
 0x4ea   : > { %13384 = vmatprep.subr.bf16.mxu1 %v13867_v44  ;;  %v13403_v3 = vpack.c.bf16 %v8082_v61, %v8075_v42 }
 0x4f0   : > { %12796 = vmatmul.mubr.msk.f32.vlgmr.msra.gmra.mrb[142].mxu1 %vm4967_vm6, %v11511_v8 }
 0x4f1   : > { %13386 = vmatpush3.bf16.msra.mxu1 %v13367_v6  ;;  %12802 = vmatprep.mubr.msk.f32.mxu1 %vm13866_vm1, %v13865_v1  ;;  %v8089_v6 = vand.u32 4294901760, %v8088_v0 }
 0x4f2   : > { %13387 = vmatprep.subr.bf16.mxu1 %v13867_v44 }
 0x4f8   : > { %12803 = vmatmul.mubr.f32.vlgmr.msra.gmra.mrb[142].mxu1 %v7584_v14 }
 0x4f9   : > { %13389 = vmatpush3.bf16.msra.mxu1 %v14795_v48  ;;  %12809 = vmatprep.mubr.msk.f32.mxu1 %vm13866_vm1, %v13865_v1 }
 0x4fa   : > { %13390 = vmatprep.subr.bf16.mxu1 %v13867_v44 }
 0x500   : > { %12810 = vmatmul.mubr.f32.vlgmr.msra.gmra.mrb[142].mxu1 %v7585_v15  ;;  %v13448_v15 = vpack.c.bf16 %v14897_v45, %v14895_v47  ;;  %v8993_v47 = vand.u32 4294901760, %v8975_v39 }
 0x501   : > { %13392 = vmatpush3.bf16.msra.mxu1 %v13373_v9  ;;  %12816 = vmatprep.mubr.msk.f32.mxu1 %vm13866_vm1, %v13865_v1  ;;  %v8591_v9 = vsub.f32 %v14897_v45, %v8590_v2  ;;  %v11518_v2 = vld [vmem:[%s15384_s8] ss:$0 sm:$0xff] }
 0x502   : > { %13393 = vmatprep.subr.bf16.mxu1 %v13867_v44  ;;  %v9085_v49 = vsub.f32 %v8975_v39, %v8993_v47 }
 0x503   : > { %v8592_v12 = vand.u32 4294901760, %v8591_v9 }
 0x504   : > { %v9086_v53 = vand.u32 4294901760, %v9085_v49 }
 0x505   : > { %v13442_v14 = vpack.c.bf16 %v8592_v12, %v8585_v11 }
 0x506   : > { %v9087_v58 = vsub.f32 %v9085_v49, %v9086_v53 }
 0x508   : > { %12817 = vmatmul.mubr.msk.f32.vlgmr.msra.gmra.mrb[142].mxu1 %vm4967_vm6, %v11511_v8  ;;  %v9088_v61 = vand.u32 4294901760, %v9087_v58 }
 0x509   : > { %13395 = vmatpush3.bf16.msra.mxu1 %v14795_v48  ;;  %12823 = vmatprep.mubr.msk.f32.mxu1 %vm13866_vm1, %v13865_v1  ;;  %v8095_v48 = vsub.f32 %v14888_v40, %v8094_v21  ;;  %v15000_v40 = vsub.f32 %v8972_v31, %v8984_v60 }
 0x50a   : > { %13396 = vmatprep.subr.bf16.mxu1 %v13867_v44 }
 0x50b   : > { %v8096_v62 = vand.u32 4294901760, %v8095_v48  ;;  %v9065_v50 = vand.u32 4294901760, %v15000_v40 }
 0x50d   : > { %v13406_v59 = vpack.c.bf16 %v8096_v62, %v8089_v6 }
 0x510   : > { %12824 = vmatmul.mubr.msk.f32.vlgmr.msra.gmra.mrb[142].mxu1 %vm4967_vm6, %v11511_v8  ;;  %v13445_v8 = vpack.c.bf16 %v14881_v38, %v14877_v35  ;;  %v8987_v35 = vand.u32 4294901760, %v8973_v34  ;;  %v8974_v38 = vld [vmem:[%s15387_s11 + $0x10] sm:$0xff] }
 0x511   : > { %12834 = vmatprep.mubr.msk.f32.mxu1 %vm13866_vm1, %v13865_v1  ;;  %13398 = vmatpush3.bf16.msra.mxu1 %v14871_v32  ;;  %v8990_v46 = vand.u32 4294901760, %v8974_v38 }
 0x512   : > { %13399 = vmatprep.subr.bf16.mxu1 %v13867_v44  ;;  %v15002_v43 = vsub.f32 %v8973_v34, %v8987_v35  ;;  %v13469_v52 = vpack.c.bf16 %v8987_v35, %v8984_v60 }
 0x513   : > { %v9078_v45 = vsub.f32 %v8974_v38, %v8990_v46  ;;  %v13472_v55 = vpack.c.bf16 %v8993_v47, %v8990_v46 }
 0x514   : > { %v9072_v51 = vand.u32 4294901760, %v15002_v43  ;;  %v13481_v25 = vpack.c.bf16 %v15002_v43, %v15000_v40 }
 0x515   : > { %13401 = vmatpush3.bf16.msra.mxu1 %v14886_v41  ;;  %v9079_v36 = vand.u32 4294901760, %v9078_v45  ;;  %v13484_v0 = vpack.c.bf16 %v9085_v49, %v9078_v45 }
 0x516   : > { %13402 = vmatprep.subr.bf16.mxu1 %v13867_v44  ;;  %v13493_v48 = vpack.c.bf16 %v9072_v51, %v9065_v50 }
 0x517   : > { %v9080_v56 = vsub.f32 %v9078_v45, %v9079_v36  ;;  %v13496_v54 = vpack.c.bf16 %v9086_v53, %v9079_v36  ;;  %v10389_v36 = vld [vmem:[%s15389_s13] sm:$0xff]  ;;  %v10390_v53 = vld [vmem:[%s15389_s13 + $0x8] sm:$0xff] }
 0x519   : > { %v9081_v21 = vand.u32 4294901760, %v9080_v56  ;;  %v10392_v56 = vld [vmem:[%s15389_s13 + $0x18] sm:$0xff] }
 0x51b   : > { %v13478_v63 = vpack.c.bf16 %v9088_v61, %v9081_v21 }
 0x5b7   : > { %v7509_v33 = vpop.f32.mrb[140].mxu1 }
 0x5b8   : > { %v12783_v18 = vpop.f32.mrb[141].mxu1 }
 0x5b9   : > { %v11520_v18 = vld [vmem:[%s15388_s12] ss:$0 sm:$0xff] }
 0x5e3   : > { %v7971_v19 = vpop.f32.mrb[142].mxu1 }
 0x5e4   : > { %v7975_v20 = vmax.f32 %v7509_v33, %v7971_v19  ;;  %v12825_v22 = vpop.f32.mrb[143].mxu1 }
 0x5e6   : > { %v7989_v23 = vsel %vm7987_vm11, %v7975_v20, 0 }
 0x5e7   : > { %v14932_v24 = vand.u32 4294901760, %v7989_v23 }
 0x5e9   : > { %v14935_v26 = vsub.f32 %v7989_v23, %v14932_v24 }
 0x5eb   : > { %v14938_v27 = vand.u32 4294901760, %v14935_v26 }
 0x5ed   : > { %v8063_v5 = vsub.f32 %v14935_v26, %v14938_v27 }
 0x5ef   : > { %v14942_v28 = vand.u32 4294901760, %v8063_v5 }
 0x5f1   : > { %12835 = vmatmul.mubr.f32.vlgmr.msra.gmra.mrb[144].mxu1 %v14942_v28  ;;  %12901 = vmatmul.mubr.f32.vlgmr.msra.gmra.mrb[150].mxu0 %v14942_v28 }
 0x5f2   : > { %13404 = vmatpush3.bf16.msra.mxu1 %v13403_v3  ;;  %13440 = vmatpush3.bf16.msra.mxu0 %v13439_v4  ;;  %v11519_v3 = vld [vmem:[%s15386_s10] ss:$0 sm:$0xff] }
 0x5f3   : > { %13405 = vmatprep.subr.bf16.mxu1 %v13867_v44  ;;  %13441 = vmatprep.subr.bf16.mxu0 %v13867_v44 }
 0x5f4   : > { %12845 = vmatprep.mubr.msk.f32.mxu1 %vm13866_vm1, %v13865_v1  ;;  %12911 = vmatprep.mubr.msk.f32.mxu0 %vm13866_vm1, %v13865_v1 }
 0x5f6   : > { %13407 = vmatpush3.bf16.msra.mxu1 %v13406_v59  ;;  %13443 = vmatpush3.bf16.msra.mxu0 %v13442_v14 }
 0x5f7   : > { %13408 = vmatprep.subr.bf16.mxu1 %v13867_v44  ;;  %13444 = vmatprep.subr.bf16.mxu0 %v13867_v44 }
 0x5f9   : > { %12846 = vmatmul.mubr.f32.vlgmr.msra.gmra.mrb[144].mxu1 %v14932_v24  ;;  %12912 = vmatmul.mubr.f32.vlgmr.msra.gmra.mrb[150].mxu0 %v14932_v24 }
 0x5fa   : > { %13410 = vmatpush3.bf16.msra.mxu1 %v13409_v10  ;;  %13446 = vmatpush3.bf16.msra.mxu0 %v13445_v8 }
 0x5fb   : > { %13411 = vmatprep.subr.bf16.mxu1 %v13867_v44  ;;  %13447 = vmatprep.subr.bf16.mxu0 %v13867_v44 }
 0x5fc   : > { %12856 = vmatprep.mubr.msk.f32.mxu1 %vm13866_vm1, %v13865_v1  ;;  %12922 = vmatprep.mubr.msk.f32.mxu0 %vm13866_vm1, %v13865_v1 }
 0x5fe   : > { %13413 = vmatpush3.bf16.msra.mxu1 %v13412_v13  ;;  %13449 = vmatpush3.bf16.msra.mxu0 %v13448_v15 }
 0x5ff   : > { %13414 = vmatprep.subr.bf16.mxu1 %v13867_v44  ;;  %13450 = vmatprep.subr.bf16.mxu0 %v13867_v44 }
 0x601   : > { %12857 = vmatmul.mubr.f32.vlgmr.msra.gmra.mrb[144].mxu1 %v14935_v26  ;;  %12923 = vmatmul.mubr.f32.vlgmr.msra.gmra.mrb[150].mxu0 %v14935_v26 }
 0x602   : > { %13416 = vmatpush3.bf16.msra.mxu1 %v14871_v32  ;;  %13452 = vmatpush3.bf16.msra.mxu0 %v14879_v37 }
 0x603   : > { %13417 = vmatprep.subr.bf16.mxu1 %v13867_v44  ;;  %13453 = vmatprep.subr.bf16.mxu0 %v13867_v44 }
 0x604   : > { %12867 = vmatprep.mubr.msk.f32.mxu1 %vm13866_vm1, %v13865_v1  ;;  %12933 = vmatprep.mubr.msk.f32.mxu0 %vm13866_vm1, %v13865_v1 }
 0x606   : > { %13419 = vmatpush3.bf16.msra.mxu1 %v14886_v41  ;;  %13455 = vmatpush3.bf16.msra.mxu0 %v14893_v57 }
 0x607   : > { %13420 = vmatprep.subr.bf16.mxu1 %v13867_v44  ;;  %13456 = vmatprep.subr.bf16.mxu0 %v13867_v44 }
 0x609   : > { %12868 = vmatmul.mubr.f32.vlgmr.msra.gmra.mrb[144].mxu1 %v14938_v27  ;;  %12934 = vmatmul.mubr.f32.vlgmr.msra.gmra.mrb[150].mxu0 %v14938_v27 }
 0x60a   : > { %13422 = vmatpush3.bf16.msra.mxu1 %v13421_v16  ;;  %13458 = vmatpush3.bf16.msra.mxu0 %v13457_v30 }
 0x60b   : > { %13423 = vmatprep.subr.bf16.mxu1 %v13867_v44  ;;  %13459 = vmatprep.subr.bf16.mxu0 %v13867_v44 }
 0x60c   : > { %12878 = vmatprep.mubr.msk.f32.mxu1 %vm13866_vm1, %v13865_v1  ;;  %12944 = vmatprep.mubr.msk.f32.mxu0 %vm13866_vm1, %v13865_v1 }
 0x60e   : > { %13425 = vmatpush3.bf16.msra.mxu1 %v14927_v29  ;;  %13461 = vmatpush3.bf16.msra.mxu0 %v14929_v17 }
 0x60f   : > { %13426 = vmatprep.subr.bf16.mxu1 %v13867_v44  ;;  %13462 = vmatprep.subr.bf16.mxu0 %v13867_v44 }
 0x611   : > { %12879 = vmatmul.mubr.f32.vlgmr.msra.gmra.mrb[144].mxu1 %v14932_v24  ;;  %12945 = vmatmul.mubr.f32.vlgmr.msra.gmra.mrb[150].mxu0 %v14932_v24 }
 0x612   : > { %13428 = vmatpush3.bf16.msra.mxu1 %v14871_v32  ;;  %13464 = vmatpush3.bf16.msra.mxu0 %v14879_v37  ;;  %v9066_v32 = vsub.f32 %v15000_v40, %v9065_v50  ;;  %v9073_v37 = vsub.f32 %v15002_v43, %v9072_v51 }
 0x613   : > { %13429 = vmatprep.subr.bf16.mxu1 %v13867_v44  ;;  %13465 = vmatprep.subr.bf16.mxu0 %v13867_v44 }
 0x614   : > { %12889 = vmatprep.mubr.msk.f32.mxu1 %vm13866_vm1, %v13865_v1  ;;  %12955 = vmatprep.mubr.msk.f32.mxu0 %vm13866_vm1, %v13865_v1 }
 0x616   : > { %13431 = vmatpush3.bf16.msra.mxu1 %v14886_v41  ;;  %13467 = vmatpush3.bf16.msra.mxu0 %v14893_v57  ;;  %v9067_v41 = vand.u32 4294901760, %v9066_v32  ;;  %v9074_v57 = vand.u32 4294901760, %v9073_v37 }
 0x617   : > { %13468 = vmatprep.subr.bf16.mxu1 %v13867_v44  ;;  %13024 = vmatprep.subr.mxu0 %v13865_v1 }
 0x618   : > { %v13475_v42 = vpack.c.bf16 %v9074_v57, %v9067_v41  ;;  %v10398_v41 = vand.u32 4294901760, %v10389_v36  ;;  %v10401_v57 = vand.u32 4294901760, %v10390_v53 }
 0x619   : > { %12890 = vmatmul.mubr.f32.vlgmr.msra.gmra.mrb[144].mxu1 %v14932_v24  ;;  %12956 = vmatmul.mubr.f32.vlgmr.msra.gmra.mrb[150].mxu0 %v14932_v24 }
 0x61a   : > { %13470 = vmatpush3.bf16.msra.mxu1 %v13469_v52  ;;  %12966 = vmatprep.mubr.msk.f32.mxu1 %vm13866_vm1, %v13865_v1  ;;  %v15124_v21 = vpack.c.bf16 %v10401_v57, %v10398_v41  ;;  %v15126_v61 = vsub.f32 %v10389_v36, %v10398_v41 }
 0x61b   : > { %13471 = vmatprep.subr.bf16.mxu1 %v13867_v44  ;;  %13026 = vmatprep.mubr.msk.f32.mxu0 %vm13866_vm1, %v13865_v1 }
 0x61e   : > { %13473 = vmatpush3.bf16.msra.mxu1 %v13472_v55 }
 0x61f   : > { %13474 = vmatprep.subr.bf16.mxu1 %v13867_v44 }
 0x621   : > { %12967 = vmatmul.mubr.f32.vlgmr.msra.gmra.mrb[146].mxu1 %v14942_v28 }
 0x622   : > { %13476 = vmatpush3.bf16.msra.mxu1 %v13475_v42  ;;  %12977 = vmatprep.mubr.msk.f32.mxu1 %vm13866_vm1, %v13865_v1  ;;  %v10407_v42 = vand.u32 4294901760, %v10392_v56 }
 0x623   : > { %13477 = vmatprep.subr.bf16.mxu1 %v13867_v44 }
 0x626   : > { %13479 = vmatpush3.bf16.msra.mxu1 %v13478_v63  ;;  %v15128_v63 = vsub.f32 %v10390_v53, %v10401_v57 }
 0x627   : > { %13480 = vmatprep.subr.bf16.mxu1 %v13867_v44 }
 0x629   : > { %12978 = vmatmul.mubr.f32.vlgmr.msra.gmra.mrb[146].mxu1 %v14932_v24 }
 0x62a   : > { %13482 = vmatpush3.bf16.msra.mxu1 %v13481_v25  ;;  %12988 = vmatprep.mubr.msk.f32.mxu1 %vm13866_vm1, %v13865_v1 }
 0x62b   : > { %13483 = vmatprep.subr.bf16.mxu1 %v13867_v44 }
 0x62e   : > { %13485 = vmatpush3.bf16.msra.mxu1 %v13484_v0  ;;  %v15132_v0 = vsub.f32 %v10392_v56, %v10407_v42 }
 0x62f   : > { %13486 = vmatprep.subr.bf16.mxu1 %v13867_v44 }
 0x631   : > { %12989 = vmatmul.mubr.f32.vlgmr.msra.gmra.mrb[146].mxu1 %v14935_v26 }
 0x632   : > { %13488 = vmatpush3.bf16.msra.mxu1 %v13469_v52  ;;  %12999 = vmatprep.mubr.msk.f32.mxu1 %vm13866_vm1, %v13865_v1 }
 0x633   : > { %13489 = vmatprep.subr.bf16.mxu1 %v13867_v44 }
 0x636   : > { %13491 = vmatpush3.bf16.msra.mxu1 %v13472_v55 }
 0x637   : > { %13492 = vmatprep.subr.bf16.mxu1 %v13867_v44 }
 0x639   : > { %13000 = vmatmul.mubr.f32.vlgmr.msra.gmra.mrb[146].mxu1 %v14938_v27 }
 0x63a   : > { %13494 = vmatpush3.bf16.msra.mxu1 %v13493_v48  ;;  %13010 = vmatprep.mubr.msk.f32.mxu1 %vm13866_vm1, %v13865_v1 }
 0x63b   : > { %13495 = vmatprep.subr.bf16.mxu1 %v13867_v44 }
 0x63e   : > { %13497 = vmatpush3.bf16.msra.mxu1 %v13496_v54  ;;  %v10479_v54 = vand.u32 4294901760, %v15126_v61 }
 0x63f   : > { %13498 = vmatprep.subr.bf16.mxu1 %v13867_v44 }
 0x641   : > { %13011 = vmatmul.mubr.f32.vlgmr.msra.gmra.mrb[146].mxu1 %v14932_v24 }
 0x642   : > { %13500 = vmatpush3.bf16.msra.mxu1 %v13469_v52  ;;  %13021 = vmatprep.mubr.msk.f32.mxu1 %vm13866_vm1, %v13865_v1 }
 0x643   : > { %13501 = vmatprep.subr.bf16.mxu1 %v13867_v44 }
 0x646   : > { %13503 = vmatpush3.bf16.msra.mxu1 %v13472_v55  ;;  %v10391_v55 = vld [vmem:[%s15389_s13 + $0x10] sm:$0xff] }
 0x647   : > { %13054 = vmatprep.subr.mxu1 %v13865_v1  ;;  %v10404_v58 = vand.u32 4294901760, %v10391_v55 }
 0x649   : > { %13022 = vmatmul.mubr.f32.vlgmr.msra.gmra.mrb[146].mxu1 %v14932_v24  ;;  %v15130_v25 = vsub.f32 %v10391_v55, %v10404_v58  ;;  %v15135_v48 = vpack.c.bf16 %v10407_v42, %v10404_v58 }
 0x64a   : > { %13056 = vmatprep.mubr.msk.f32.mxu1 %vm13866_vm1, %v13865_v1 }
 0x6ec   : > { %v8472_v4 = vpop.f32.mrb[144].mxu1  ;;  %v8968_v6 = vpop.f32.mrb[150].mxu0 }
 0x6ed   : > { %v13614_v62 = vadd.f32 %v11518_v2, %v8472_v4  ;;  %v13615_v7 = vadd.f32 %v11519_v3, %v8968_v6  ;;  %v12891_v9 = vpop.f32.mrb[145].mxu1  ;;  %v12957_v10 = vpop.f32.mrb[151].mxu0  ;;  %v10486_v2 = vand.u32 4294901760, %v15128_v63  ;;  %v10480_v3 = vsub.f32 %v15126_v61, %v10479_v54 }
 0x6ee   : > { %v10493_v6 = vand.u32 4294901760, %v15130_v25 }
 0x6ef   : > { %v9469_v59 = vsel %vm7987_vm11, %v13614_v62, 0  ;;  %v9472_v11 = vsel %vm7987_vm11, %v13615_v7, 0  ;;  %v10487_v4 = vsub.f32 %v15128_v63, %v10486_v2  ;;  %v10500_v62 = vand.u32 4294901760, %v15132_v0 }
 0x6f0   : > { %v9540_v12 = vand.u32 4294901760, %v9469_v59  ;;  %v9475_v8 = vand.u32 4294901760, %v9472_v11  ;;  %v10481_v7 = vand.u32 4294901760, %v10480_v3  ;;  %v10494_v10 = vsub.f32 %v15130_v25, %v10493_v6 }
 0x6f1   : > { %v10488_v9 = vand.u32 4294901760, %v10487_v4 }
 0x6f2   : > { %v9541_v13 = vsub.f32 %v9469_v59, %v9540_v12  ;;  %v9552_v14 = vsub.f32 %v9472_v11, %v9475_v8  ;;  %13025 = vmatpush3.xpose.msra.mxu0 %v9475_v8  ;;  %v10501_v59 = vsub.f32 %v15132_v0, %v10500_v62 }
 0x6f3   : > { %13029 = vmatprep.subr.mxu0 %v13865_v1  ;;  %v13511_v11 = vpack.c.bf16 %v10488_v9, %v10481_v7 }
 0x6f4   : > { %v9542_v15 = vand.u32 4294901760, %v9541_v13  ;;  %v9553_v16 = vand.u32 4294901760, %v9552_v14 }
 0x6f6   : > { %v9543_v30 = vsub.f32 %v9541_v13, %v9542_v15  ;;  %v9554_v29 = vsub.f32 %v9552_v14, %v9553_v16 }
 0x6f8   : > { %v9544_v17 = vand.u32 4294901760, %v9543_v30  ;;  %v9555_v33 = vand.u32 4294901760, %v9554_v29  ;;  %v15154_v30 = vpack.c.bf16 %v10500_v62, %v10493_v6  ;;  %v15159_v29 = vld [vmem:[%s15391_s15] sm:$0xff]  ;;  %v10890_v62 = vld [vmem:[%s15391_s15 + $0x38] sm:$0xff] }
 0x6fa   : > { %13027 = vmatmul.mubr.f32.vlgmr.msra.gmra.mrb[152].mxu0 %v9544_v17  ;;  %v15164_v17 = vld [vmem:[%s15391_s15 + $0x8] sm:$0xff] }
 0x6fb   : > { %13030 = vmatpush3.xpose.msra.mxu0 %v9555_v33  ;;  %13031 = vmatprep.mubr.msk.f32.mxu0 %vm13866_vm1, %v13865_v1  ;;  %v15169_v33 = vld [vmem:[%s15391_s15 + $0x10] sm:$0xff] }
 0x6fc   : > { %13034 = vmatprep.subr.mxu0 %v13865_v1 }
 0x702   : > { %13032 = vmatmul.mubr.f32.vlgmr.msra.gmra.mrb[152].mxu0 %v9540_v12 }
 0x703   : > { %13035 = vmatpush3.xpose.msra.mxu0 %v9552_v14  ;;  %13036 = vmatprep.mubr.msk.f32.mxu0 %vm13866_vm1, %v13865_v1  ;;  %v13517_v14 = vpack.c.bf16 %v15128_v63, %v15126_v61 }
 0x704   : > { %13039 = vmatprep.subr.mxu0 %v13865_v1 }
 0x70a   : > { %13037 = vmatmul.mubr.f32.vlgmr.msra.gmra.mrb[152].mxu0 %v9541_v13 }
 0x70b   : > { %13040 = vmatpush3.xpose.msra.mxu0 %v9475_v8  ;;  %13041 = vmatprep.mubr.msk.f32.mxu0 %vm13866_vm1, %v13865_v1 }
 0x70c   : > { %13044 = vmatprep.subr.mxu0 %v13865_v1 }
 0x712   : > { %13042 = vmatmul.mubr.f32.vlgmr.msra.gmra.mrb[152].mxu0 %v9542_v15  ;;  %v13520_v15 = vpack.c.bf16 %v15132_v0, %v15130_v25 }
 0x713   : > { %13045 = vmatpush3.xpose.msra.mxu0 %v9553_v16  ;;  %13046 = vmatprep.mubr.msk.f32.mxu0 %vm13866_vm1, %v13865_v1  ;;  %v15152_v16 = vpack.c.bf16 %v10486_v2, %v10479_v54  ;;  %v10887_v54 = vld [vmem:[%s15391_s15 + $0x20] sm:$0xff] }
 0x714   : > { %13049 = vmatprep.subr.mxu0 %v13865_v1  ;;  %v10909_v2 = vand.u32 4294901760, %v10887_v54 }
 0x716   : > { %v11009_v4 = vsub.f32 %v10887_v54, %v10909_v2 }
 0x718   : > { %v11010_v7 = vand.u32 4294901760, %v11009_v4 }
 0x71a   : > { %13047 = vmatmul.mubr.f32.vlgmr.msra.gmra.mrb[152].mxu0 %v9540_v12 }
 0x71b   : > { %13050 = vmatpush3.xpose.msra.mxu0 %v9475_v8  ;;  %13051 = vmatprep.mubr.msk.f32.mxu0 %vm13866_vm1, %v13865_v1  ;;  %v10502_v8 = vand.u32 4294901760, %v10501_v59  ;;  %v10918_v59 = vand.u32 4294901760, %v10890_v62 }
 0x71c   : > { %v9464_v19 = vpop.f32.mrb[146].mxu1  ;;  %13504 = vmatprep.subr.bf16.mxu0 %v13867_v44 }
 0x71d   : > { %v13616_v20 = vadd.f32 %v11520_v18, %v9464_v19  ;;  %v13023_v22 = vpop.f32.mrb[147].mxu1  ;;  %v10897_v18 = vand.u32 4294901760, %v15159_v29  ;;  %v10900_v19 = vand.u32 4294901760, %v15164_v17 }
 0x71e   : > { %v10903_v22 = vand.u32 4294901760, %v15169_v33 }
 0x71f   : > { %v9936_v23 = vand.u32 4294901760, %v13616_v20 }
 0x721   : > { %13055 = vmatpush3.msra.mxu1 %v9936_v23  ;;  %v10013_v40 = vsub.f32 %v13616_v20, %v9936_v23  ;;  %v15176_v20 = vld [vmem:[%s15391_s15 + $0x18] sm:$0xff] }
 0x722   : > { %13052 = vmatmul.mubr.f32.vlgmr.msra.gmra.mrb[152].mxu0 %v9540_v12  ;;  %13059 = vmatprep.subr.mxu1 %v13865_v1  ;;  %v10495_v12 = vand.u32 4294901760, %v10494_v10 }
 0x723   : > { %13092 = vmatprep.mubr.msk.f32.mxu0 %vm13866_vm1, %v13865_v1  ;;  %v10014_v45 = vand.u32 4294901760, %v10013_v40  ;;  %13506 = vmatpush3.bf16.msra.mxu0 %v15124_v21 }
 0x724   : > { %13507 = vmatprep.subr.bf16.mxu0 %v13867_v44  ;;  %v13514_v13 = vpack.c.bf16 %v10502_v8, %v10495_v12 }
 0x725   : > { %v10015_v51 = vsub.f32 %v10013_v40, %v10014_v45 }
 0x727   : > { %v10016_v37 = vand.u32 4294901760, %v10015_v51  ;;  %13509 = vmatpush3.bf16.msra.mxu0 %v15135_v48 }
 0x728   : > { %13510 = vmatprep.subr.bf16.mxu0 %v13867_v44 }
 0x7f5   : > { %v9916_v24 = vpop.f32.mrb[152].mxu0 }
 0x7f6   : > { %v9920_v26 = vmul.f32 0.17677669, %v9916_v24  ;;  %v13053_v27 = vpop.f32.mrb[153].mxu0  ;;  %v15183_v24 = vsub.f32 %v15159_v29, %v10897_v18 }
 0x7f7   : > { %v15193_v27 = vsub.f32 %v15169_v33, %v10903_v22 }
 0x7f8   : > { %v9921_v5 = vsel %vm2759_vm3, %v9920_v26, -inf }
 0x7f9   : > { %9922 = vmax.xlane.f32.xlu0 %v9921_v5 }
 0x886   : > { %v9923_v28 = vpop.xlane.xlu0 %9922 }
 0x887   : > { %v9924_v31 = vsub.f32 %v9920_v26, %v9923_v28  ;;  %v15188_v26 = vsub.f32 %v15164_v17, %v10900_v19  ;;  %v10982_v28 = vand.u32 4294901760, %v15183_v24 }
 0x889   : > { %v9925_v34 = vmul.f32 1.442695, %v9924_v31  ;;  %v10989_v31 = vand.u32 4294901760, %v15188_v26 }
 0x88b   : > { %13797 = vpow2.f32 %v9925_v34  ;;  %v10996_v34 = vand.u32 4294901760, %v15193_v27 }
 0x895   : > { %v13798_v60 = vpop.eup %13797 }
 0x896   : > { %v9927_v35 = vsel %vm2759_vm3, %v13798_v60, 0.0 }
 0x897   : > { %9928 = vadd.xlane.f32.xlu0 %v9927_v35  ;;  %v10983_v35 = vsub.f32 %v15183_v24, %v10982_v28 }
 0x924   : > { %v9929_v38 = vpop.xlane.xlu0 %9928 }
 0x925   : > { %13799 = vrcp.f32 %v9929_v38  ;;  %v10990_v38 = vsub.f32 %v15188_v26, %v10989_v31 }
 0x92f   : > { %v13800_v39 = vpop.eup %13799 }
 0x930   : > { %v9931_v43 = vmul.f32 %v13800_v39, %v13798_v60  ;;  %v10997_v39 = vsub.f32 %v15193_v27, %v10996_v34 }
 0x932   : > { %v9933_v46 = vsel %vm2759_vm3, %v9931_v43, 0  ;;  %v10984_v43 = vand.u32 4294901760, %v10983_v35 }
 0x933   : > { %v10001_v47 = vand.u32 4294901760, %v9933_v46 }
 0x935   : > { %v10002_v49 = vsub.f32 %v9933_v46, %v10001_v47  ;;  %v10991_v46 = vand.u32 4294901760, %v10990_v38 }
 0x937   : > { %v10003_v50 = vand.u32 4294901760, %v10002_v49 }
 0x939   : > { %v10004_v52 = vsub.f32 %v10002_v49, %v10003_v50 }
 0x93b   : > { %v10005_v32 = vand.u32 4294901760, %v10004_v52 }
 0x93d   : > { %13057 = vmatmul.mubr.f32.vlgmr.msra.gmra.mrb[148].mxu1 %v10005_v32 }
 0x93e   : > { %13060 = vmatpush3.msra.mxu1 %v10016_v37  ;;  %13061 = vmatprep.mubr.msk.f32.mxu1 %vm13866_vm1, %v13865_v1 }
 0x93f   : > { %13064 = vmatprep.subr.mxu1 %v13865_v1 }
 0x945   : > { %13062 = vmatmul.mubr.f32.vlgmr.msra.gmra.mrb[148].mxu1 %v10001_v47 }
 0x946   : > { %13065 = vmatpush3.msra.mxu1 %v10013_v40  ;;  %13066 = vmatprep.mubr.msk.f32.mxu1 %vm13866_vm1, %v13865_v1 }
 0x947   : > { %13069 = vmatprep.subr.mxu1 %v13865_v1 }
 0x94d   : > { %13067 = vmatmul.mubr.f32.vlgmr.msra.gmra.mrb[148].mxu1 %v10002_v49  ;;  %v13553_v49 = vpack.c.bf16 %v10991_v46, %v10984_v43 }
 0x94e   : > { %13070 = vmatpush3.msra.mxu1 %v9936_v23  ;;  %13071 = vmatprep.mubr.msk.f32.mxu1 %vm13866_vm1, %v13865_v1 }
 0x94f   : > { %13074 = vmatprep.subr.mxu1 %v13865_v1 }
 0x955   : > { %13072 = vmatmul.mubr.f32.vlgmr.msra.gmra.mrb[148].mxu1 %v10003_v50 }
 0x956   : > { %13075 = vmatpush3.msra.mxu1 %v10014_v45  ;;  %13076 = vmatprep.mubr.msk.f32.mxu1 %vm13866_vm1, %v13865_v1 }
 0x957   : > { %13079 = vmatprep.subr.mxu1 %v13865_v1 }
 0x95d   : > { %13077 = vmatmul.mubr.f32.vlgmr.msra.gmra.mrb[148].mxu1 %v10001_v47 }
 0x95e   : > { %13080 = vmatpush3.msra.mxu1 %v9936_v23  ;;  %13081 = vmatprep.mubr.msk.f32.mxu1 %vm13866_vm1, %v13865_v1  ;;  %v10906_v23 = vand.u32 4294901760, %v15176_v20 }
 0x95f   : > { %13552 = vmatprep.subr.bf16.mxu1 %v13867_v44 }
 0x960   : > { %v15198_v5 = vsub.f32 %v15176_v20, %v10906_v23  ;;  %v15273_v29 = vpack.c.bf16 %v10906_v23, %v10903_v22  ;;  %v10393_v23 = vld [vmem:[%s15390_s14] sm:$0x1] }
 0x962   : > { %v11003_v60 = vand.u32 4294901760, %v15198_v5 }
 0x964   : > { %v11004_v40 = vsub.f32 %v15198_v5, %v11003_v60 }
 0x965   : > { %13082 = vmatmul.mubr.f32.vlgmr.msra.gmra.mrb[148].mxu1 %v10001_v47  ;;  %v10998_v47 = vand.u32 4294901760, %v10997_v39  ;;  %v15264_v39 = vpack.c.bf16 %v10900_v19, %v10897_v18 }
 0x966   : > { %13185 = vmatprep.mubr.msk.f32.mxu1 %vm13866_vm1, %v13865_v1  ;;  %v11005_v45 = vand.u32 4294901760, %v11004_v40  ;;  %13554 = vmatpush3.bf16.msra.mxu1 %v13553_v49 }
 0x967   : > { %13555 = vmatprep.subr.bf16.mxu1 %v13867_v44 }
 0x968   : > { %v13556_v50 = vpack.c.bf16 %v11005_v45, %v10998_v47 }
 0x96a   : > { %13557 = vmatpush3.bf16.msra.mxu1 %v13556_v50 }
 0x96b   : > { %13558 = vmatprep.subr.bf16.mxu1 %v13867_v44 }
 0xa38   : > { %v10377_v51 = vpop.f32.mrb[148].mxu1 }
 0xa39   : > { %v10381_v52 = vsel %vm7987_vm11, %v10377_v51, 0.0  ;;  %v13083_v32 = vpop.f32.mrb[149].mxu1 }
 0xa3a   : > { %v10382_v37 = vrot.slane %v10381_v52, 4  ;;  %v13565_v32 = vpack.c.bf16 %v15188_v26, %v15183_v24 }
 0xa3c   : > { %v10383_v36 = vadd.f32 %v10382_v37, %v10381_v52 }
 0xa3e   : > { %v10384_v53 = vrot.slane %v10383_v36, 2 }
 0xa40   : > { %v10385_v55 = vadd.f32 %v10384_v53, %v10383_v36  ;;  %v13568_v53 = vpack.c.bf16 %v15198_v5, %v15193_v27 }
 0xa42   : > { %v10386_v41 = vrot.slane %v10385_v55, 1 }
 0xa44   : > { %v10387_v57 = vadd.f32 %v10386_v41, %v10385_v55 }
 0xa46   : > { %v10388_v56 = vmul.f32 0.125, %v10387_v57 }
 0xa48   : > { %v10395_v58 = vsel %vm7987_vm11, %v10388_v56, 0  ;;  %v13589_v56 = vpack.c.bf16 %v10989_v31, %v10982_v28 }
 0xa49   : > { %v10466_v42 = vand.u32 4294901760, %v10395_v58 }
 0xa4b   : > { %v10467_v61 = vsub.f32 %v10395_v58, %v10466_v42  ;;  %v13592_v58 = vpack.c.bf16 %v11003_v60, %v10996_v34 }
 0xa4d   : > { %v10468_v63 = vand.u32 4294901760, %v10467_v61 }
 0xa4f   : > { %v10469_v25 = vsub.f32 %v10467_v61, %v10468_v63 }
 0xa51   : > { %v10470_v0 = vand.u32 4294901760, %v10469_v25 }
 0xa53   : > { %13093 = vmatmul.mubr.f32.vlgmr.msra.gmra.mrb[154].mxu0 %v10470_v0 }
 0xa54   : > { %13512 = vmatpush3.bf16.msra.mxu0 %v13511_v11  ;;  %13103 = vmatprep.mubr.msk.f32.mxu0 %vm13866_vm1, %v13865_v1  ;;  %v11011_v11 = vsub.f32 %v11009_v4, %v11010_v7 }
 0xa55   : > { %13513 = vmatprep.subr.bf16.mxu0 %v13867_v44 }
 0xa58   : > { %13515 = vmatpush3.bf16.msra.mxu0 %v13514_v13  ;;  %v11030_v13 = vsub.f32 %v10890_v62, %v10918_v59 }
 0xa59   : > { %13516 = vmatprep.subr.bf16.mxu0 %v13867_v44 }
 0xa5b   : > { %13104 = vmatmul.mubr.f32.vlgmr.msra.gmra.mrb[154].mxu0 %v10466_v42 }
 0xa5c   : > { %13518 = vmatpush3.bf16.msra.mxu0 %v13517_v14  ;;  %13114 = vmatprep.mubr.msk.f32.mxu0 %vm13866_vm1, %v13865_v1  ;;  %v11012_v14 = vand.u32 4294901760, %v11011_v11 }
 0xa5d   : > { %13519 = vmatprep.subr.bf16.mxu0 %v13867_v44 }
 0xa60   : > { %13521 = vmatpush3.bf16.msra.mxu0 %v13520_v15 }
 0xa61   : > { %13522 = vmatprep.subr.bf16.mxu0 %v13867_v44 }
 0xa63   : > { %13115 = vmatmul.mubr.f32.vlgmr.msra.gmra.mrb[154].mxu0 %v10467_v61 }
 0xa64   : > { %13524 = vmatpush3.bf16.msra.mxu0 %v15124_v21  ;;  %13125 = vmatprep.mubr.msk.f32.mxu0 %vm13866_vm1, %v13865_v1 }
 0xa65   : > { %13525 = vmatprep.subr.bf16.mxu0 %v13867_v44 }
 0xa68   : > { %13527 = vmatpush3.bf16.msra.mxu0 %v15135_v48 }
 0xa69   : > { %13528 = vmatprep.subr.bf16.mxu0 %v13867_v44 }
 0xa6b   : > { %13126 = vmatmul.mubr.f32.vlgmr.msra.gmra.mrb[154].mxu0 %v10468_v63 }
 0xa6c   : > { %13530 = vmatpush3.bf16.msra.mxu0 %v15152_v16  ;;  %13136 = vmatprep.mubr.msk.f32.mxu0 %vm13866_vm1, %v13865_v1 }
 0xa6d   : > { %13531 = vmatprep.subr.bf16.mxu0 %v13867_v44 }
 0xa70   : > { %13533 = vmatpush3.bf16.msra.mxu0 %v15154_v30  ;;  %v11031_v30 = vand.u32 4294901760, %v11030_v13 }
 0xa71   : > { %13534 = vmatprep.subr.bf16.mxu0 %v13867_v44 }
 0xa72   : > { %v11032_v40 = vsub.f32 %v11030_v13, %v11031_v30 }
 0xa73   : > { %13137 = vmatmul.mubr.f32.vlgmr.msra.gmra.mrb[154].mxu0 %v10466_v42 }
 0xa74   : > { %13536 = vmatpush3.bf16.msra.mxu0 %v15124_v21  ;;  %13147 = vmatprep.mubr.msk.f32.mxu0 %vm13866_vm1, %v13865_v1  ;;  %v10888_v21 = vld [vmem:[%s15391_s15 + $0x28] sm:$0xff]  ;;  %v11033_v46 = vand.u32 4294901760, %v11032_v40 }
 0xa75   : > { %13537 = vmatprep.subr.bf16.mxu0 %v13867_v44  ;;  %v10912_v3 = vand.u32 4294901760, %v10888_v21 }
 0xa77   : > { %v11016_v6 = vsub.f32 %v10888_v21, %v10912_v3  ;;  %v15276_v17 = vpack.c.bf16 %v10912_v3, %v10909_v2 }
 0xa78   : > { %13539 = vmatpush3.bf16.msra.mxu0 %v15135_v48  ;;  %v10889_v48 = vld [vmem:[%s15391_s15 + $0x30] sm:$0xff] }
 0xa79   : > { %13540 = vmatprep.subr.bf16.mxu0 %v13867_v44  ;;  %v11017_v9 = vand.u32 4294901760, %v11016_v6  ;;  %v10915_v10 = vand.u32 4294901760, %v10889_v48  ;;  %v13571_v19 = vpack.c.bf16 %v11016_v6, %v11009_v4 }
 0xa7b   : > { %13148 = vmatmul.mubr.f32.vlgmr.msra.gmra.mrb[154].mxu0 %v10466_v42  ;;  %v11018_v12 = vsub.f32 %v11016_v6, %v11017_v9  ;;  %v11023_v8 = vsub.f32 %v10889_v48, %v10915_v10  ;;  %v13550_v18 = vpack.c.bf16 %v10918_v59, %v10915_v10  ;;  %v13595_v20 = vpack.c.bf16 %v11017_v9, %v11010_v7 }
 0xa7c   : > { %13166 = vmatprep.mubr.msk.f32.mxu0 %vm13866_vm1, %v13865_v1  ;;  %13542 = vmatpush3.bf16.msra.mxu0 %v15264_v39 }
 0xa7d   : > { %v11019_v15 = vand.u32 4294901760, %v11018_v12  ;;  %v11024_v16 = vand.u32 4294901760, %v11023_v8  ;;  %13543 = vmatprep.subr.bf16.mxu0 %v13867_v44  ;;  %v13574_v33 = vpack.c.bf16 %v11030_v13, %v11023_v8 }
 0xa7f   : > { %v13559_v35 = vpack.c.bf16 %v11019_v15, %v11012_v14  ;;  %v11025_v38 = vsub.f32 %v11023_v8, %v11024_v16  ;;  %v13598_v22 = vpack.c.bf16 %v11031_v30, %v11024_v16 }
 0xa80   : > { %13545 = vmatpush3.bf16.msra.mxu0 %v15273_v29 }
 0xa81   : > { %13560 = vmatpush3.bf16.msra.mxu1 %v13559_v35  ;;  %v11026_v43 = vand.u32 4294901760, %v11025_v38  ;;  %13546 = vmatprep.subr.bf16.mxu0 %v13867_v44 }
 0xa82   : > { %13561 = vmatprep.subr.bf16.mxu1 %v13867_v44 }
 0xa83   : > { %v13562_v47 = vpack.c.bf16 %v11033_v46, %v11026_v43 }
 0xa84   : > { %13548 = vmatpush3.bf16.msra.mxu0 %v15276_v17 }
 0xa85   : > { %13563 = vmatpush3.bf16.msra.mxu1 %v13562_v47  ;;  %13549 = vmatprep.subr.bf16.mxu0 %v13867_v44 }
 0xa86   : > { %13564 = vmatprep.subr.bf16.mxu1 %v13867_v44 }
 0xa88   : > { %13551 = vmatpush3.bf16.msra.mxu0 %v13550_v18 }
 0xb4e   : > { %v10878_v45 = vpop.f32.mrb[154].mxu0 }
 0xb4f   : > { %v13617_v49 = vadd.f32 %v10878_v45, %v10393_v23  ;;  %v13149_v50 = vpop.f32.mrb[155].mxu0 }
 0xb51   : > { %v10882_v51 = vmax.f32 %v13617_v49, 0.0 }
 0xb53   : > { %v10894_v52 = vsel %vm10892_vm12, %v10882_v51, 0 }
 0xb54   : > { %v10969_v37 = vand.u32 4294901760, %v10894_v52 }
 0xb56   : > { %v10970_v36 = vsub.f32 %v10894_v52, %v10969_v37  ;;  %13186 = vmatmul.mubr.f32.vlgmr.msra.gmra.mrb[150].mxu1 %v10969_v37 }
 0xb57   : > { %13566 = vmatpush3.bf16.msra.mxu1 %v13565_v32  ;;  %13204 = vmatprep.mubr.msk.f32.mxu1 %vm13866_vm1, %v13865_v1 }
 0xb58   : > { %v10971_v55 = vand.u32 4294901760, %v10970_v36  ;;  %13567 = vmatprep.subr.bf16.mxu1 %v13867_v44 }
 0xb5a   : > { %v10972_v41 = vsub.f32 %v10970_v36, %v10971_v55 }
 0xb5b   : > { %13569 = vmatpush3.bf16.msra.mxu1 %v13568_v53 }
 0xb5c   : > { %13570 = vmatprep.subr.bf16.mxu1 %v13867_v44  ;;  %v10973_v57 = vand.u32 4294901760, %v10972_v41 }
 0xb5e   : > { %13167 = vmatmul.mubr.f32.vlgmr.msra.gmra.mrb[156].mxu0 %v10973_v57 }
 0xb5f   : > { %13572 = vmatpush3.bf16.msra.mxu1 %v13571_v19 }
 0xb60   : > { %13573 = vmatprep.subr.bf16.mxu1 %v13867_v44 }
 0xb63   : > { %13575 = vmatpush3.bf16.msra.mxu1 %v13574_v33 }
 0xb64   : > { %13576 = vmatprep.subr.bf16.mxu1 %v13867_v44 }
 0xb66   : > { %13205 = vmatmul.mubr.f32.vlgmr.msra.gmra.mrb[150].mxu1 %v10970_v36 }
 0xb67   : > { %13578 = vmatpush3.bf16.msra.mxu1 %v15264_v39  ;;  %13223 = vmatprep.mubr.msk.f32.mxu1 %vm13866_vm1, %v13865_v1 }
 0xb68   : > { %13579 = vmatprep.subr.bf16.mxu1 %v13867_v44 }
 0xb6b   : > { %13581 = vmatpush3.bf16.msra.mxu1 %v15273_v29 }
 0xb6c   : > { %13582 = vmatprep.subr.bf16.mxu1 %v13867_v44 }
 0xb6f   : > { %13584 = vmatpush3.bf16.msra.mxu1 %v15276_v17 }
 0xb70   : > { %13585 = vmatprep.subr.bf16.mxu1 %v13867_v44 }
 0xb73   : > { %13587 = vmatpush3.bf16.msra.mxu1 %v13550_v18 }
 0xb74   : > { %13588 = vmatprep.subr.bf16.mxu1 %v13867_v44 }
 0xb76   : > { %13224 = vmatmul.mubr.f32.vlgmr.msra.gmra.mrb[150].mxu1 %v10971_v55 }
 0xb77   : > { %13590 = vmatpush3.bf16.msra.mxu1 %v13589_v56  ;;  %13242 = vmatprep.mubr.msk.f32.mxu1 %vm13866_vm1, %v13865_v1 }
 0xb78   : > { %13591 = vmatprep.subr.bf16.mxu1 %v13867_v44 }
 0xb7b   : > { %13593 = vmatpush3.bf16.msra.mxu1 %v13592_v58 }
 0xb7c   : > { %13594 = vmatprep.subr.bf16.mxu1 %v13867_v44 }
 0xb7f   : > { %13596 = vmatpush3.bf16.msra.mxu1 %v13595_v20 }
 0xb80   : > { %13597 = vmatprep.subr.bf16.mxu1 %v13867_v44 }
 0xb83   : > { %13599 = vmatpush3.bf16.msra.mxu1 %v13598_v22 }
 0xb84   : > { %13600 = vmatprep.subr.bf16.mxu1 %v13867_v44 }
 0xb86   : > { %13243 = vmatmul.mubr.f32.vlgmr.msra.gmra.mrb[150].mxu1 %v10969_v37 }
 0xb87   : > { %13602 = vmatpush3.bf16.msra.mxu1 %v15264_v39  ;;  %13261 = vmatprep.mubr.msk.f32.mxu1 %vm13866_vm1, %v13865_v1  ;;  %v10891_v1 = vld [vmem:[%s15392_s16] sm:$0x1] }
 0xb88   : > { %13603 = vmatprep.subr.bf16.mxu1 %v13867_v44 }
 0xb8b   : > { %13605 = vmatpush3.bf16.msra.mxu1 %v15273_v29 }
 0xb8c   : > { %13606 = vmatprep.subr.bf16.mxu1 %v13867_v44 }
 0xb8f   : > { %13608 = vmatpush3.bf16.msra.mxu1 %v15276_v17 }
 0xb90   : > { %13609 = vmatprep.subr.bf16.mxu1 %v13867_v44 }
 0xb93   : > { %13611 = vmatpush3.bf16.msra.mxu1 %v13550_v18 }
 0xb96   : > { %13262 = vmatmul.mubr.f32.vlgmr.msra.gmra.mrb[150].mxu1 %v10969_v37 }
 0xc31   : > { %v10975_v24 = vpop.f32.mrb[156].mxu0 }
 0xc32   : > { %v13168_v26 = vpop.f32.mrb[157].mxu0  ;;  %v10976_v27 = vadd.f32 %v10975_v24, %v10891_v1 }
 0xc69   : > { %v11429_v5 = vpop.f32.mrb[150].mxu1 }
 0xc6a   : > { %v13619_v28 = vadd.f32 %v11429_v5, %v10976_v27  ;;  %v13263_v31 = vpop.f32.mrb[151].mxu1 }
 0xc6c   : > { %11433 = vst [vmem:[%s540_s0] sm:$0x1] %v13619_v28 }
 0xc6d   : > { %13814 = shalt.err (!%p13811_p3)
}
 0xc6e   : > { %s13815_s2 = scalar_lea.hbm %s15334_s21, 16  ;;  %s13819_s30 = scalar_lea.hbm %s15393_s17, 32 }
 0xc6f   : > { %p13816_p4 = scmp.ne.s32.totalorder %s15334_s21, %s13815_s2  ;;  %p13820_p9 = scmp.lt.u32.totalorder %s15334_s21, %s15393_s17 }
 0xc70   : > { %p13821_p10 = scmp.lt.u32.totalorder %s13819_s30, %s13815_s2  ;;  %p13823_p12 = scmp.lt.u32.totalorder %s13815_s2, %s15334_s21 }
 0xc71   : > { %p13817_p7 = pnand %p13816_p4, %p13997_p5 }
 0xc72   : > { %p13822_p11 = por %p13821_p10, %p13820_p9 }
 0xc73   : > { %p13818_p8 = pneg %p13817_p7 }
 0xc74   : > { %p13824_p13 = por %p13823_p12, %p13822_p11 }
 0xc76   : > { %p13825_p0 = pnand %p13824_p13, %p13818_p8 }
 0xc78   : > { %13828 = shalt.err (!%p13825_p0)
}
 0xc79   : > { %13755 = dma.vmem_to_hbm [thread:$0]  (%p13997_p5), %s15336_s29, 16, %s15334_s21, %s11435_s22  }
 0xc7a PF: > { %p13761_p1 = scmp.ge.s32.totalorder %s13863_s27, 2  ;;  %s11459_s4 = sand.u32 1, %s13851_s24  }
 0xc7b   : > { %s11460_s3 = scalar_lea.sflag [#allocation5], %s11459_s4 }
 0xc7c   : > { %p13758_p2 = pnand %p13761_p1, %p14001_p6 }
 0xc7e   : > { %13846 = dma.done.wait (!%p13758_p2), %s11460_s3, 16  }
 0xc7f   : > { %13848 = vsyncadd (!%p13758_p2), %s11460_s3, 4294967280  ;;  %s15413_s27 = sld [smem:[#allocation8_spill]]  ;;  %s15414_s26 = sld [smem:[#allocation7_spill]] }
 0xc80   : > { %s15415_s2 = sld [smem:[#allocation9_spill]]  ;;  %s15416_s24 = smov %s13855_s25 }
 0xc85   : > { %p27_p3 = scmp.ge.s32.totalorder %s15413_s27, 4   ;;  %s15417_s25 = smov %s15414_s26 }
 0xc86   : > { %s15418_s26 = smov %s15415_s2 }
 0xc87   :  { %29 = sbr.rel (!%p27_p3) target bundleno = 9 (0x9), region = 123 }
 0xc8e   :  { %11464 = vsyncpa [#allocation5], 1 }
 0xc8f   :  { %11466 = vsyncpa [#allocation5 + $0x1], 1 }

</bundles_post_ra>
